<compile_context>
chip_gen: v6e
topology: v6e:2x2x1
jax: 0.10.0
libtpu: 0.0.40
codegen_flags: <defaults>
</compile_context>

<pallas_src>
import jax
import jax.numpy as jnp
from jax.experimental import pallas as pl
from jax.experimental.pallas import tpu as pltpu


def _head_kernel(x_ref, w1_ref, b1_ref, w2_ref, b2_ref, o_ref):
    # First linear: (Bt, D) @ (D, H) on the MXU; bf16 operands, f32 accumulation.
    x_bf = x_ref[...].astype(jnp.bfloat16)          # no-op if the caller already feeds bf16
    h = jnp.dot(x_bf, w1_ref[...], preferred_element_type=jnp.float32)
    h = h + b1_ref[...]                             # f32 epilogue (safe on v5e: no bf16 VPU)
    # Dropout(p) is identity at inference time.
    # TODO(synk): training-mode dropout (pltpu.prng_random_bits mask) is not emitted here.
    h = jnp.maximum(h, 0.0)                         # ReLU in f32
    # Second linear: (Bt, H) @ (H, C_pad); bf16 operands, f32 acc, lane-dense padded C.
    out = jnp.dot(h.astype(jnp.bfloat16), w2_ref[...],
                  preferred_element_type=jnp.float32)
    out = out + b2_ref[...]
    o_ref[...] = out.astype(o_ref.dtype)


def _vmem_limit_bytes():
    """Generation-aware scoped-VMEM limit: 64 MiB on 128-MiB parts, 32 MiB otherwise (v7x)."""
    limit = 32 << 20
    try:
        info = pltpu.get_tpu_info()
        cap = getattr(info, "vmem_capacity_bytes", None)
        if cap is not None and cap >= (100 << 20):   # v5e / v6e: 128 MiB physical VMEM
            limit = 64 << 20
    except Exception:
        pass
    return limit


def _const_block_spec(shape):
    """Full-array block with a constant index map; single-buffered when supported."""
    idx = lambda i: tuple(0 for _ in shape)
    if hasattr(pl, "Buffered"):
        try:
            return pl.BlockSpec(shape, idx, pipeline_mode=pl.Buffered(1))
        except TypeError:
            pass
    return pl.BlockSpec(shape, idx)


def descriptive_task_head(x, w1, b1, w2, b2, *, block_b=512,
                          return_padded=False, out_dtype=None):
    """Fused MLP head: relu(x @ W1 + b1) @ W2 + b2  (Dropout = identity, eval mode).

    x:  (B, D) f32 or bf16
    w1: (D, H)    b1: (1, H)
    w2: (H, C)    b2: (1, C)
    Weights are cast to bf16 for the kernel (explicit precision choice; f32 accumulation),
    biases stay f32.  Set return_padded=True to skip the [:, :C] slice, out_dtype=bf16 to
    halve output store bytes (v5e).
    """
    B, D = x.shape
    H = w1.shape[1]
    C = w2.shape[1]
    out_dtype = x.dtype if out_dtype is None else out_dtype

    # Lane-dense second matmul / output store: pad the class dim up to a multiple of 128.
    C_pad = pl.cdiv(C, 128) * 128
    if C_pad != C:
        w2 = jnp.pad(w2, ((0, 0), (0, C_pad - C)))
        b2 = jnp.pad(b2, ((0, 0), (0, C_pad - C)))

    # HBM-bound kernel: halve the dominant weight traffic; keep biases f32.
    w1 = w1.astype(jnp.bfloat16)
    w2 = w2.astype(jnp.bfloat16)
    b1 = b1.astype(jnp.float32)
    b2 = b2.astype(jnp.float32)

    flops = 2 * B * (D * H + H * C_pad)
    bytes_accessed = (x.size * x.dtype.itemsize
                      + w1.size * 2 + w2.size * 2                     # bf16 weights
                      + b1.size * 4 + b2.size * 4                     # f32 biases
                      + B * C_pad * jnp.dtype(out_dtype).itemsize)    # output
    cost = pl.CostEstimate(flops=flops, transcendentals=0,
                           bytes_accessed=bytes_accessed)

    vmem_limit = _vmem_limit_bytes()

    if B > block_b:
        # Ceiling-divide batch grid: works for any B; the last (partial) tile is masked
        # by Pallas on writeback.  Weights use constant block indices so they stay
        # VMEM-resident across all batch tiles (one weight DMA per call).
        num_tiles = pl.cdiv(B, block_b)
        grid = (num_tiles,)
        in_specs = [
            pl.BlockSpec((block_b, D), lambda i: (i, 0)),
            _const_block_spec((D, H)),
            _const_block_spec((1, H)),
            _const_block_spec((H, C_pad)),
            _const_block_spec((1, C_pad)),
        ]
        out_specs = pl.BlockSpec((block_b, C_pad), lambda i: (i, 0))
        # Only shard across v7x's two TensorCores when per-core compute covers the
        # duplicated ~3.25 MiB per-core weight DMA.
        semantics = ("parallel",) if num_tiles >= 4 else ("arbitrary",)
        compiler_params = pltpu.CompilerParams(
            dimension_semantics=semantics, vmem_limit_bytes=vmem_limit)
    else:
        # Small batch: everything fits comfortably in VMEM — single program.
        grid = ()
        full = lambda shape: pl.BlockSpec(shape, lambda: tuple(0 for _ in shape))
        in_specs = [full((B, D)), full((D, H)), full((1, H)),
                    full((H, C_pad)), full((1, C_pad))]
        out_specs = full((B, C_pad))
        compiler_params = pltpu.CompilerParams(vmem_limit_bytes=vmem_limit)

    # TODO(synk): if this head is called every step, keep W1/W2 VMEM-resident across calls
    # (cross-call prefetch / with_memory_space_constraint) instead of re-streaming ~3.25 MiB
    # of weights per call.
    out_padded = pl.pallas_call(
        _head_kernel,
        out_shape=jax.ShapeDtypeStruct((B, C_pad), out_dtype),
        grid=grid,
        in_specs=in_specs,
        out_specs=out_specs,
        compiler_params=compiler_params,
        cost_estimate=cost,
    )(x, w1, b1, w2, b2)

    if return_padded:
        return out_padded            # consumer can index/fuse; avoids an extra XLA copy
    return out_padded[:, :C]


if __name__ == "__main__":
    # Module defaults: input_dim = 768*2 = 1536, hidden = 1024, n_classes = 21.
    input_dim = 768 * 2
    hidden = 1024
    n_classes = 21

    key = jax.random.PRNGKey(0)
    kx, kw1, kb1, kw2, kb2, kx2 = jax.random.split(key, 6)

    # Deterministic parameter init (PyTorch Linear-like uniform bounds).
    lim1 = 1.0 / (input_dim ** 0.5)
    lim2 = 1.0 / (hidden ** 0.5)
    w1 = jax.random.uniform(kw1, (input_dim, hidden), jnp.float32, -lim1, lim1)
    b1 = jax.random.uniform(kb1, (1, hidden), jnp.float32, -lim1, lim1)
    w2 = jax.random.uniform(kw2, (hidden, n_classes), jnp.float32, -lim2, lim2)
    b2 = jax.random.uniform(kb2, (1, n_classes), jnp.float32, -lim2, lim2)

    def ref_f32(x):
        h = jnp.maximum(x @ w1 + b1, 0.0)
        return h @ w2 + b2

    def ref_bf16(x):
        # Same dtype path as the kernel: bf16 matmul operands, f32 accumulation/epilogue.
        h = jnp.dot(x.astype(jnp.bfloat16), w1.astype(jnp.bfloat16),
                    preferred_element_type=jnp.float32) + b1
        h = jnp.maximum(h, 0.0)
        return jnp.dot(h.astype(jnp.bfloat16), w2.astype(jnp.bfloat16),
                       preferred_element_type=jnp.float32) + b2

    # Small batch: exercises the single-program (grid=()) path.
    batch = 2
    x = jax.random.normal(kx, (batch, input_dim), dtype=jnp.float32)
    out = jax.block_until_ready(descriptive_task_head(x, w1, b1, w2, b2))
    assert out.shape == (batch, n_classes), out.shape
    assert jnp.allclose(out, ref_bf16(x), atol=2e-3, rtol=2e-3), \
        "mismatch vs bf16 reference (small batch)"
    assert jnp.allclose(out, ref_f32(x), atol=6e-2, rtol=6e-2), \
        "mismatch vs f32 reference (small batch)"

    # Larger, non-multiple batch: exercises the cdiv batch grid (3 tiles of 256, partial
    # last tile; VMEM-resident single-buffered weights; "arbitrary" semantics since < 4 tiles).
    big_batch = 600
    x_big = jax.random.normal(kx2, (big_batch, input_dim), dtype=jnp.float32)
    out_big = jax.block_until_ready(
        descriptive_task_head(x_big, w1, b1, w2, b2, block_b=256))
    assert out_big.shape == (big_batch, n_classes), out_big.shape
    assert jnp.allclose(out_big, ref_bf16(x_big), atol=2e-3, rtol=2e-3), \
        "mismatch vs bf16 reference (batch grid)"
    assert jnp.allclose(out_big, ref_f32(x_big), atol=6e-2, rtol=6e-2), \
        "mismatch vs f32 reference (batch grid)"

    print("KERNEL_OK")
</pallas_src>

<mosaic_0001>
module attributes {stable_mosaic.version = 11 : i64} {
  func.func @_head_kernel(%arg0: memref<2x1536xf32, #tpu.memory_space<vmem>>, %arg1: memref<1536x1024xbf16, #tpu.memory_space<vmem>>, %arg2: memref<1x1024xf32, #tpu.memory_space<vmem>>, %arg3: memref<1024x128xbf16, #tpu.memory_space<vmem>>, %arg4: memref<1x128xf32, #tpu.memory_space<vmem>>, %arg5: memref<2x128xf32, #tpu.memory_space<vmem>>) attributes {dimension_semantics = [], scalar_prefetch = 0 : i64, scratch_operands = 0 : i64, tpu.core_type = #tpu.core_type<tc>} {
    %c0 = arith.constant 0 : index
    %c0_0 = arith.constant 0 : index
    %0 = vector.load %arg0[%c0, %c0_0] : memref<2x1536xf32, #tpu.memory_space<vmem>>, vector<2x1536xf32>
    %1 = arith.truncf %0 : vector<2x1536xf32> to vector<2x1536xbf16>
    %c0_1 = arith.constant 0 : index
    %c0_2 = arith.constant 0 : index
    %2 = vector.load %arg1[%c0_1, %c0_2] : memref<1536x1024xbf16, #tpu.memory_space<vmem>>, vector<1536x1024xbf16>
    %cst = arith.constant dense<0.000000e+00> : vector<2x1024xf32>
    %3 = tpu.matmul %1, %2, %cst {dimension_numbers = #tpu.dot_dimension_numbers<[1], [0], [0], [1], [0, 0, 1, 1], [], []>} : vector<2x1536xbf16>, vector<1536x1024xbf16>, vector<2x1024xf32> -> vector<2x1024xf32>
    %c0_3 = arith.constant 0 : index
    %c0_4 = arith.constant 0 : index
    %4 = vector.load %arg2[%c0_3, %c0_4] : memref<1x1024xf32, #tpu.memory_space<vmem>>, vector<1x1024xf32>
    %5 = vector.broadcast %4 : vector<1x1024xf32> to vector<2x1024xf32>
    %6 = arith.addf %3, %5 : vector<2x1024xf32>
    %cst_5 = arith.constant 0.000000e+00 : f32
    %7 = vector.broadcast %cst_5 : f32 to vector<2x1024xf32>
    %8 = arith.maximumf %6, %7 : vector<2x1024xf32>
    %9 = arith.truncf %8 : vector<2x1024xf32> to vector<2x1024xbf16>
    %c0_6 = arith.constant 0 : index
    %c0_7 = arith.constant 0 : index
    %10 = vector.load %arg3[%c0_6, %c0_7] : memref<1024x128xbf16, #tpu.memory_space<vmem>>, vector<1024x128xbf16>
    %cst_8 = arith.constant dense<0.000000e+00> : vector<2x128xf32>
    %11 = tpu.matmul %9, %10, %cst_8 {dimension_numbers = #tpu.dot_dimension_numbers<[1], [0], [0], [1], [0, 0, 1, 1], [], []>} : vector<2x1024xbf16>, vector<1024x128xbf16>, vector<2x128xf32> -> vector<2x128xf32>
    %c0_9 = arith.constant 0 : index
    %c0_10 = arith.constant 0 : index
    %12 = vector.load %arg4[%c0_9, %c0_10] : memref<1x128xf32, #tpu.memory_space<vmem>>, vector<1x128xf32>
    %13 = vector.broadcast %12 : vector<1x128xf32> to vector<2x128xf32>
    %14 = arith.addf %11, %13 : vector<2x128xf32>
    %c0_11 = arith.constant 0 : index
    %c0_12 = arith.constant 0 : index
    %15 = vector.load %arg5[%c0_11, %c0_12] : memref<2x128xf32, #tpu.memory_space<vmem>>, vector<2x128xf32>
    tpu.vector_store %arg5[%c0_11, %c0_12], %14 {strides = array<i32>} : memref<2x128xf32, #tpu.memory_space<vmem>>, vector<2x128xf32>,
    return
  }
}

</mosaic_0001>

<bundles_post_ra>
// kernel: tpu_custom_call.1
= control target key start
LH: loop header
LB: loop body
LE: loop exit
PB: predicated region body
PF: predicated region fallthrough
CT: control target
= control target key end

     0   :  { %10 = vsyncpa [#allocation3], 0  ;;  %s7882_s0 = inlined_call_operand.hbm [shape: f32[2,1536], index: 0, kind: input, shape index: {}]   ;;  %s7883_s1 = inlined_call_operand.hbm [shape: bf16[1536,1024], index: 1, kind: input, shape index: {}]   ;;  %s7884_s2 = inlined_call_operand.hbm [shape: f32[1,1024], index: 2, kind: input, shape index: {}]   ;;  %s7885_s3 = inlined_call_operand.hbm [shape: bf16[1024,128], index: 3, kind: input, shape index: {}]   ;;  %s7886_s4 = inlined_call_operand.hbm [shape: f32[1,128], index: 4, kind: input, shape index: {}]   ;;  %s7887_s5 = inlined_call_operand.hbm [shape: f32[2,128], index: 5, kind: output, shape index: {}]  }
   0x1   :  { %11 = vsyncpa [#allocation6], 0 }
   0x2   :  { %12 = vsyncpa [#allocation9], 0 }
   0x3   :  { %13 = vsyncpa [#allocation4], 0  ;;  %s7642_s18 = smov [#allocation5]  }
   0x4   :  { %s29_s19 = sshll.u32 %s7642_s18, 4  ;;  %s30_s19 = int_to_ptr.vmem [resolvable:$true] %s29_s19 }
   0x5   :  { %s7522_s20 = scalar_lea.vmem %s30_s19, 98304  ;;  %p7527_p1 = scmp.lt.s32.totalorder %s30_s19, %s30_s19 }
   0x6   :  { %p7523_p0 = scmp.ne.s32.totalorder %s30_s19, %s7522_s20  ;;  %p7528_p2 = scmp.lt.s32.totalorder %s7522_s20, %s7522_s20 }
   0x8   :  { %p7529_p3 = por %p7528_p2, %p7527_p1 }
   0xa   :  { %p7530_p4 = pnand %p7529_p3, %p7523_p0 }
   0xc   :  { %7533 = shalt.err (!%p7530_p4)
}
   0xd   :  { %s7643_s21 = smov 512   ;;  %s7644_s22 = smov 32  }
   0xe   :  { %35 = dma.hbm_to_vmem [thread:$0]  %s7883_s1, 98304, %s30_s19, [#allocation6], %s7643_s21, %s7643_s21, %s7644_s22  }
   0xf   :  { %s7645_s25 = smov [#allocation8]  }
  0x10   :  { %s51_s26 = sshll.u32 %s7645_s25, 4  ;;  %s52_s26 = int_to_ptr.vmem [resolvable:$true] %s51_s26 }
  0x11   :  { %s7542_s27 = scalar_lea.vmem %s52_s26, 8192  ;;  %p7547_p6 = scmp.lt.s32.totalorder %s52_s26, %s52_s26 }
  0x12   :  { %p7543_p5 = scmp.ne.s32.totalorder %s52_s26, %s7542_s27  ;;  %p7548_p7 = scmp.lt.s32.totalorder %s7542_s27, %s7542_s27 }
  0x14   :  { %p7549_p8 = por %p7548_p7, %p7547_p6 }
  0x16   :  { %p7550_p9 = pnand %p7549_p8, %p7543_p5 }
  0x18   :  { %7553 = shalt.err (!%p7550_p9)
}
  0x19   :  { %s7646_s28 = smov 64   ;;  %s7647_s29 = smov 4  }
  0x1a   :  { %57 = dma.hbm_to_vmem [thread:$0]  %s7885_s3, 8192, %s52_s26, [#allocation9], %s7646_s28, %s7646_s28, %s7647_s29  }
  0x1b   :  { %s7648_s7 = smov [#allocation2]   ;;  %s7649_s9 = smov [#allocation7]  }
  0x1c   :  { %s20_s8 = sshll.u32 %s7648_s7, 4  ;;  %s42_s1 = sshll.u32 %s7649_s9, 4  ;;  %s21_s8 = int_to_ptr.vmem [resolvable:$true] %s20_s8  ;;  %s43_s1 = int_to_ptr.vmem [resolvable:$true] %s42_s1 }
  0x1d   :  { %s7562_s10 = scalar_lea.vmem %s21_s8, 384  ;;  %p7567_p11 = scmp.lt.s32.totalorder %s21_s8, %s21_s8 }
  0x1e   :  { %p7563_p10 = scmp.ne.s32.totalorder %s21_s8, %s7562_s10  ;;  %p7568_p12 = scmp.lt.s32.totalorder %s7562_s10, %s7562_s10 }
  0x20   :  { %p7569_p13 = por %p7568_p12, %p7567_p11 }
  0x22   :  { %p7570_p0 = pnand %p7569_p13, %p7563_p10 }
  0x24   :  { %7573 = shalt.err (!%p7570_p0)
}
  0x25   :  { %23 = dma.hbm_to_vmem [thread:$0]  %s7882_s0, 384, %s21_s8, [#allocation3]  }
  0x26   :  { %s7582_s13 = scalar_lea.vmem %s43_s1, 128  ;;  %p7587_p2 = scmp.lt.s32.totalorder %s43_s1, %s43_s1 }
  0x27   :  { %p7583_p1 = scmp.ne.s32.totalorder %s43_s1, %s7582_s13  ;;  %p7588_p3 = scmp.lt.s32.totalorder %s7582_s13, %s7582_s13 }
  0x29   :  { %p7589_p4 = por %p7588_p3, %p7587_p2 }
  0x2b   :  { %p7590_p5 = pnand %p7589_p4, %p7583_p1 }
  0x2d   :  { %7593 = shalt.err (!%p7590_p5)
}
  0x2e   :  { %45 = dma.hbm_to_vmem [thread:$0]  %s7884_s2, 128, %s43_s1, [#allocation6]  }
  0x2f   :  { %s7650_s15 = smov [#allocation10]  }
  0x30   :  { %s64_s16 = sshll.u32 %s7650_s15, 4  ;;  %s65_s16 = int_to_ptr.vmem [resolvable:$true] %s64_s16 }
  0x31   :  { %s7602_s17 = scalar_lea.vmem %s65_s16, 16  ;;  %s7606_s18 = scalar_lea.vmem %s65_s16, 32 }
  0x32   :  { %p7603_p6 = scmp.ne.s32.totalorder %s65_s16, %s7602_s17  ;;  %p7607_p7 = scmp.lt.s32.totalorder %s65_s16, %s65_s16 }
  0x33   :  { %p7608_p8 = scmp.lt.s32.totalorder %s7606_s18, %s7602_s17 }
  0x35   :  { %p7609_p9 = por %p7608_p8, %p7607_p7 }
  0x37   :  { %p7610_p10 = pnand %p7609_p9, %p7603_p6 }
  0x39   :  { %7613 = shalt.err (!%p7610_p10)
}
  0x3a   :  { %67 = dma.hbm_to_vmem [thread:$0]  %s7886_s4, 16, %s65_s16, [#allocation9]  }
  0x3b   :  { %7634 = dma.done.wait [#allocation3], 384  }
  0x3c   :  { %7635 = vsyncadd [#allocation3], 4294966912 }
  0x3d   :  { %7636 = dma.done.wait [#allocation6], 98432  }
  0x3e   :  { %7637 = vsyncadd [#allocation6], 4294868864 }
  0x3f   :  { %7638 = dma.done.wait [#allocation9], 8208  }
  0x40   :  { %7639 = vsyncadd [#allocation9], 4294959088  ;;  %v221_v0 = vld [vmem:[#allocation5 + $0x1c0] sm:$0xff]  ;;  %v7651_v32 = vmov 1983009808   ;;  %v94_v34 = vlaneseq  ;;  %v84_v59 = vld [vmem:[#allocation2] sm:$0xff] }
  0x41   :  { %v225_v1 = vld [vmem:[#allocation5 + $0x1e0] sm:$0xff]  ;;  %v92_v33 = vunpack.c.l.s4 %v7651_v32  ;;  %s7652_s2 = smov [#allocation11]  }
  0x42   :  { %v349_v2 = vld [vmem:[#allocation5 + $0x5c0] sm:$0xff]  ;;  %v6569_v3 = vcombine.high %v221_v0, %v225_v1  ;;  %v6568_v5 = vcombine.low %v221_v0, %v225_v1  ;;  %v7698_v44 = vshrl.u32 %v94_v34, 7  ;;  %v90_v0 = vcombine.high %v84_v59, %v84_v59  ;;  %s6501_s4 = sshll.u32 %s7652_s2, 4  ;;  %s6502_s4 = int_to_ptr.vmem [resolvable:$true] %s6501_s4 }
  0x43   :  { %v353_v4 = vld [vmem:[#allocation5 + $0x5e0] sm:$0xff]  ;;  %v93_v43 = vunpack.c.0.s8 %v92_v33  ;;  %s7614_s20 = scalar_lea.vmem %s6502_s4, 32  ;;  %p7619_p12 = scmp.lt.s32.totalorder %s6502_s4, %s6502_s4 }
  0x44   :  { %v213_v6 = vld [vmem:[#allocation5 + $0x180] sm:$0xff]  ;;  %v6697_v8 = vcombine.high %v349_v2, %v353_v4  ;;  %v6696_v9 = vcombine.low %v349_v2, %v353_v4  ;;  %4815 = vmatprep.subr.bf16.mxu0 %v6569_v3  ;;  %p7615_p11 = scmp.ne.s32.totalorder %s6502_s4, %s7614_s20  ;;  %p7620_p13 = scmp.lt.s32.totalorder %s7614_s20, %s7614_s20 }
  0x45   :  { %v217_v7 = vld [vmem:[#allocation5 + $0x1a0] sm:$0xff]  ;;  %4816 = vmatpush1.bf16.msra.mxu0 %v6568_v5  ;;  %v7701_v53 = vsub.s32 %v93_v43, %v7698_v44 }
  0x46   :  { %v6561_v10 = vcombine.high %v213_v6, %v217_v7  ;;  %v341_v11 = vld [vmem:[#allocation5 + $0x580] sm:$0xff]  ;;  %4856 = vmatprep.subr.bf16.mxu1 %v6697_v8  ;;  %v6560_v18 = vcombine.low %v213_v6, %v217_v7  ;;  %p7621_p0 = por %p7620_p13, %p7619_p12 }
  0x47   :  { %v345_v12 = vld [vmem:[#allocation5 + $0x5a0] sm:$0xff]  ;;  %4857 = vmatpush1.bf16.msra.mxu1 %v6696_v9  ;;  %v7704_v63 = vrot.slane %v84_v59, %v7701_v53  ;;  %v7709_v5 = vrot.slane %v90_v0, %v7701_v53 }
  0x48   :  { %v205_v13 = vld [vmem:[#allocation5 + $0x140] sm:$0xff]  ;;  %v6689_v14 = vcombine.high %v341_v11, %v345_v12  ;;  %4817 = vmatprep.subr.bf16.mxu0 %v6561_v10  ;;  %v6688_v19 = vcombine.low %v341_v11, %v345_v12  ;;  %p7622_p1 = pnand %p7621_p0, %p7615_p11 }
  0x49   :  { %v209_v15 = vld [vmem:[#allocation5 + $0x160] sm:$0xff]  ;;  %4818 = vmatpush1.bf16.msra.mxu0 %v6560_v18  ;;  %v105_v4 = vcombine.high %v7704_v63, %v7704_v63  ;;  %v106_v12 = vcombine.high %v7709_v5, %v7709_v5 }
  0x4a   :  { %v333_v16 = vld [vmem:[#allocation5 + $0x540] sm:$0xff]  ;;  %v6553_v20 = vcombine.high %v205_v13, %v209_v15  ;;  %4858 = vmatprep.subr.bf16.mxu1 %v6689_v14  ;;  %v6552_v26 = vcombine.low %v205_v13, %v209_v15 }
  0x4b   :  { %v337_v17 = vld [vmem:[#allocation5 + $0x560] sm:$0xff]  ;;  %4859 = vmatpush1.bf16.msra.mxu1 %v6688_v19  ;;  %v7711_v11 = vpack.c.bf16 %v105_v4, %v105_v4  ;;  %v85_v4 = vld [vmem:[#allocation2 + $0x8] sm:$0xff] }
  0x4c   :  { %v6681_v21 = vcombine.high %v333_v16, %v337_v17  ;;  %v197_v22 = vld [vmem:[#allocation5 + $0x100] sm:$0xff]  ;;  %4819 = vmatprep.subr.bf16.mxu0 %v6553_v20  ;;  %v6680_v27 = vcombine.low %v333_v16, %v337_v17  ;;  %v7716_v16 = vpack.c.bf16 %v106_v12, %v106_v12 }
  0x4d   :  { %v201_v23 = vld [vmem:[#allocation5 + $0x120] sm:$0xff]  ;;  %4820 = vmatpush1.bf16.msra.mxu0 %v6552_v26  ;;  %4847 = vmatprep.mubr.bf16.mxu0 %v7711_v11 }
  0x4e   :  { %v325_v24 = vld [vmem:[#allocation5 + $0x500] sm:$0xff]  ;;  %v6545_v28 = vcombine.high %v197_v22, %v201_v23  ;;  %4860 = vmatprep.subr.bf16.mxu1 %v6681_v21  ;;  %v6544_v37 = vcombine.low %v197_v22, %v201_v23  ;;  %4888 = vmatprep.mubr.bf16.mxu1 %v7716_v16 }
  0x4f   :  { %v329_v25 = vld [vmem:[#allocation5 + $0x520] sm:$0xff]  ;;  %4861 = vmatpush1.bf16.msra.mxu1 %v6680_v27 }
  0x50   :  { %v6673_v29 = vcombine.high %v325_v24, %v329_v25  ;;  %v189_v30 = vld [vmem:[#allocation5 + $0xc0] sm:$0xff]  ;;  %4821 = vmatprep.subr.bf16.mxu0 %v6545_v28  ;;  %v6672_v38 = vcombine.low %v325_v24, %v329_v25 }
  0x51   :  { %v193_v31 = vld [vmem:[#allocation5 + $0xe0] sm:$0xff]  ;;  %4822 = vmatpush1.bf16.msra.mxu0 %v6544_v37 }
  0x52   :  { %v317_v35 = vld [vmem:[#allocation5 + $0x4c0] sm:$0xff]  ;;  %v6537_v39 = vcombine.high %v189_v30, %v193_v31  ;;  %4862 = vmatprep.subr.bf16.mxu1 %v6673_v29  ;;  %v6536_v47 = vcombine.low %v189_v30, %v193_v31 }
  0x53   :  { %v321_v36 = vld [vmem:[#allocation5 + $0x4e0] sm:$0xff]  ;;  %4863 = vmatpush1.bf16.msra.mxu1 %v6672_v38 }
  0x54   :  { %v6665_v40 = vcombine.high %v317_v35, %v321_v36  ;;  %v181_v41 = vld [vmem:[#allocation5 + $0x80] sm:$0xff]  ;;  %4823 = vmatprep.subr.bf16.mxu0 %v6537_v39  ;;  %v6664_v48 = vcombine.low %v317_v35, %v321_v36 }
  0x55   :  { %v185_v42 = vld [vmem:[#allocation5 + $0xa0] sm:$0xff]  ;;  %4824 = vmatpush1.bf16.msra.mxu0 %v6536_v47 }
  0x56   :  { %v309_v45 = vld [vmem:[#allocation5 + $0x480] sm:$0xff]  ;;  %v6529_v49 = vcombine.high %v181_v41, %v185_v42  ;;  %4864 = vmatprep.subr.bf16.mxu1 %v6665_v40  ;;  %v6528_v56 = vcombine.low %v181_v41, %v185_v42 }
  0x57   :  { %v313_v46 = vld [vmem:[#allocation5 + $0x4a0] sm:$0xff]  ;;  %4865 = vmatpush1.bf16.msra.mxu1 %v6664_v48 }
  0x58   :  { %v6657_v50 = vcombine.high %v309_v45, %v313_v46  ;;  %v173_v51 = vld [vmem:[#allocation5 + $0x40] sm:$0xff]  ;;  %4825 = vmatprep.subr.bf16.mxu0 %v6529_v49  ;;  %v6656_v57 = vcombine.low %v309_v45, %v313_v46 }
  0x59   :  { %v177_v52 = vld [vmem:[#allocation5 + $0x60] sm:$0xff]  ;;  %4826 = vmatpush1.bf16.msra.mxu0 %v6528_v56 }
  0x5a   :  { %v301_v54 = vld [vmem:[#allocation5 + $0x440] sm:$0xff]  ;;  %v6521_v58 = vcombine.high %v173_v51, %v177_v52  ;;  %4866 = vmatprep.subr.bf16.mxu1 %v6657_v50  ;;  %v6520_v3 = vcombine.low %v173_v51, %v177_v52 }
  0x5b   :  { %v305_v55 = vld [vmem:[#allocation5 + $0x460] sm:$0xff]  ;;  %4867 = vmatpush1.bf16.msra.mxu1 %v6656_v57 }
  0x5c   :  { %v6649_v60 = vcombine.high %v301_v54, %v305_v55  ;;  %v165_v61 = vld [vmem:[#allocation5] sm:$0xff]  ;;  %4827 = vmatprep.subr.bf16.mxu0 %v6521_v58  ;;  %v6648_v6 = vcombine.low %v301_v54, %v305_v55 }
  0x5d   :  { %v169_v62 = vld [vmem:[#allocation5 + $0x20] sm:$0xff]  ;;  %4828 = vmatpush1.bf16.msra.mxu0 %v6520_v3 }
  0x5e   :  { %v293_v1 = vld [vmem:[#allocation5 + $0x400] sm:$0xff]  ;;  %v6513_v7 = vcombine.high %v165_v61, %v169_v62  ;;  %4868 = vmatprep.subr.bf16.mxu1 %v6649_v60  ;;  %v6512_v15 = vcombine.low %v165_v61, %v169_v62 }
  0x5f   :  { %v297_v2 = vld [vmem:[#allocation5 + $0x420] sm:$0xff]  ;;  %4869 = vmatpush1.bf16.msra.mxu1 %v6648_v6 }
  0x60   :  { %v6641_v8 = vcombine.high %v293_v1, %v297_v2  ;;  %v285_v9 = vld [vmem:[#allocation5 + $0x3c0] sm:$0xff]  ;;  %4829 = vmatprep.subr.bf16.mxu0 %v6513_v7  ;;  %v6640_v17 = vcombine.low %v293_v1, %v297_v2 }
  0x61   :  { %v289_v10 = vld [vmem:[#allocation5 + $0x3e0] sm:$0xff]  ;;  %4830 = vmatpush1.bf16.msra.mxu0 %v6512_v15 }
  0x62   :  { %v413_v13 = vld [vmem:[#allocation5 + $0x7c0] sm:$0xff]  ;;  %v6633_v18 = vcombine.high %v285_v9, %v289_v10  ;;  %4870 = vmatprep.subr.bf16.mxu1 %v6641_v8  ;;  %v6632_v24 = vcombine.low %v285_v9, %v289_v10 }
  0x63   :  { %v417_v14 = vld [vmem:[#allocation5 + $0x7e0] sm:$0xff]  ;;  %4871 = vmatpush1.bf16.msra.mxu1 %v6640_v17 }
  0x64   :  { %v6761_v19 = vcombine.high %v413_v13, %v417_v14  ;;  %v277_v20 = vld [vmem:[#allocation5 + $0x380] sm:$0xff]  ;;  %4831 = vmatprep.subr.bf16.mxu0 %v6633_v18  ;;  %v6760_v25 = vcombine.low %v413_v13, %v417_v14  ;;  %v107_v14 = vcombine.high %v85_v4, %v85_v4 }
  0x65   :  { %v281_v21 = vld [vmem:[#allocation5 + $0x3a0] sm:$0xff]  ;;  %4832 = vmatpush2.bf16.msra.mxu0 %v6632_v24 }
  0x66   :  { %v405_v22 = vld [vmem:[#allocation5 + $0x780] sm:$0xff]  ;;  %v6625_v26 = vcombine.high %v277_v20, %v281_v21  ;;  %4872 = vmatprep.subr.bf16.mxu1 %v6761_v19  ;;  %v6624_v32 = vcombine.low %v277_v20, %v281_v21 }
  0x67   :  { %v409_v23 = vld [vmem:[#allocation5 + $0x7a0] sm:$0xff]  ;;  %4873 = vmatpush2.bf16.msra.mxu1 %v6760_v25  ;;  %v7723_v25 = vrot.slane %v107_v14, %v7701_v53 }
  0x68   :  { %v6753_v27 = vcombine.high %v405_v22, %v409_v23  ;;  %v269_v28 = vld [vmem:[#allocation5 + $0x340] sm:$0xff]  ;;  %4833 = vmatprep.subr.bf16.mxu0 %v6625_v26  ;;  %v6752_v33 = vcombine.low %v405_v22, %v409_v23  ;;  %v7720_v22 = vrot.slane %v85_v4, %v7701_v53 }
  0x69   :  { %v273_v29 = vld [vmem:[#allocation5 + $0x360] sm:$0xff]  ;;  %4834 = vmatpush2.bf16.msra.mxu0 %v6624_v32 }
  0x6a   :  { %v397_v30 = vld [vmem:[#allocation5 + $0x740] sm:$0xff]  ;;  %v6617_v34 = vcombine.high %v269_v28, %v273_v29  ;;  %4874 = vmatprep.subr.bf16.mxu1 %v6753_v27  ;;  %v6616_v40 = vcombine.low %v269_v28, %v273_v29  ;;  %v122_v32 = vcombine.high %v7720_v22, %v7720_v22 }
  0x6b   :  { %v401_v31 = vld [vmem:[#allocation5 + $0x760] sm:$0xff]  ;;  %4875 = vmatpush2.bf16.msra.mxu1 %v6752_v33  ;;  %v7729_v33 = vpack.c.bf16 %v7704_v63, %v7704_v63 }
  0x6c   :  { %v6745_v35 = vcombine.high %v397_v30, %v401_v31  ;;  %v261_v36 = vld [vmem:[#allocation5 + $0x300] sm:$0xff]  ;;  %4835 = vmatprep.subr.bf16.mxu0 %v6617_v34  ;;  %v6744_v41 = vcombine.low %v397_v30, %v401_v31 }
  0x6d   :  { %v265_v37 = vld [vmem:[#allocation5 + $0x320] sm:$0xff]  ;;  %4836 = vmatpush2.bf16.msra.mxu0 %v6616_v40 }
  0x6e   :  { %v389_v38 = vld [vmem:[#allocation5 + $0x700] sm:$0xff]  ;;  %v6609_v42 = vcombine.high %v261_v36, %v265_v37  ;;  %4876 = vmatprep.subr.bf16.mxu1 %v6745_v35  ;;  %v6608_v49 = vcombine.low %v261_v36, %v265_v37  ;;  %v123_v36 = vcombine.high %v7723_v25, %v7723_v25  ;;  %v7735_v37 = vpack.c.bf16 %v7709_v5, %v7709_v5 }
  0x6f   :  { %v393_v39 = vld [vmem:[#allocation5 + $0x720] sm:$0xff]  ;;  %4877 = vmatpush2.bf16.msra.mxu1 %v6744_v41 }
  0x70   :  { %v6737_v43 = vcombine.high %v389_v38, %v393_v39  ;;  %v253_v45 = vld [vmem:[#allocation5 + $0x2c0] sm:$0xff]  ;;  %4837 = vmatprep.subr.bf16.mxu0 %v6609_v42  ;;  %v6736_v50 = vcombine.low %v389_v38, %v393_v39 }
  0x71   :  { %v257_v46 = vld [vmem:[#allocation5 + $0x2e0] sm:$0xff]  ;;  %4838 = vmatpush2.bf16.msra.mxu0 %v6608_v49 }
  0x72   :  { %v381_v47 = vld [vmem:[#allocation5 + $0x6c0] sm:$0xff]  ;;  %v6601_v51 = vcombine.high %v253_v45, %v257_v46  ;;  %4878 = vmatprep.subr.bf16.mxu1 %v6737_v43  ;;  %v6600_v58 = vcombine.low %v253_v45, %v257_v46  ;;  %v7737_v46 = vpack.c.bf16 %v122_v32, %v122_v32 }
  0x73   :  { %v385_v48 = vld [vmem:[#allocation5 + $0x6e0] sm:$0xff]  ;;  %4879 = vmatpush2.bf16.msra.mxu1 %v6736_v50 }
  0x74   :  { %v6729_v52 = vcombine.high %v381_v47, %v385_v48  ;;  %v245_v54 = vld [vmem:[#allocation5 + $0x280] sm:$0xff]  ;;  %4839 = vmatprep.subr.bf16.mxu0 %v6601_v51  ;;  %v6728_v59 = vcombine.low %v381_v47, %v385_v48  ;;  %v7740_v47 = vpack.c.bf16 %v123_v36, %v123_v36 }
  0x75   :  { %v249_v55 = vld [vmem:[#allocation5 + $0x2a0] sm:$0xff]  ;;  %4840 = vmatpush2.bf16.msra.mxu0 %v6600_v58 }
  0x76   :  { %v373_v56 = vld [vmem:[#allocation5 + $0x680] sm:$0xff]  ;;  %v6593_v60 = vcombine.high %v245_v54, %v249_v55  ;;  %4880 = vmatprep.subr.bf16.mxu1 %v6729_v52  ;;  %v6592_v3 = vcombine.low %v245_v54, %v249_v55 }
  0x77   :  { %v377_v57 = vld [vmem:[#allocation5 + $0x6a0] sm:$0xff]  ;;  %4881 = vmatpush2.bf16.msra.mxu1 %v6728_v59 }
  0x78   :  { %v6721_v61 = vcombine.high %v373_v56, %v377_v57  ;;  %v237_v62 = vld [vmem:[#allocation5 + $0x240] sm:$0xff]  ;;  %4841 = vmatprep.subr.bf16.mxu0 %v6593_v60  ;;  %v6720_v6 = vcombine.low %v373_v56, %v377_v57 }
  0x79   :  { %v241_v0 = vld [vmem:[#allocation5 + $0x260] sm:$0xff]  ;;  %4842 = vmatpush2.bf16.msra.mxu0 %v6592_v3 }
  0x7a   :  { %v365_v1 = vld [vmem:[#allocation5 + $0x640] sm:$0xff]  ;;  %v6585_v7 = vcombine.high %v237_v62, %v241_v0  ;;  %4882 = vmatprep.subr.bf16.mxu1 %v6721_v61  ;;  %v6584_v15 = vcombine.low %v237_v62, %v241_v0 }
  0x7b   :  { %v369_v2 = vld [vmem:[#allocation5 + $0x660] sm:$0xff]  ;;  %4883 = vmatpush2.bf16.msra.mxu1 %v6720_v6 }
  0x7c   :  { %v6713_v8 = vcombine.high %v365_v1, %v369_v2  ;;  %v229_v9 = vld [vmem:[#allocation5 + $0x200] sm:$0xff]  ;;  %4843 = vmatprep.subr.bf16.mxu0 %v6585_v7  ;;  %v6712_v17 = vcombine.low %v365_v1, %v369_v2 }
  0x7d   :  { %v233_v10 = vld [vmem:[#allocation5 + $0x220] sm:$0xff]  ;;  %4844 = vmatpush2.bf16.msra.mxu0 %v6584_v15 }
  0x7e   :  { %v357_v12 = vld [vmem:[#allocation5 + $0x600] sm:$0xff]  ;;  %v6577_v18 = vcombine.high %v229_v9, %v233_v10  ;;  %4884 = vmatprep.subr.bf16.mxu1 %v6713_v8  ;;  %v6576_v26 = vcombine.low %v229_v9, %v233_v10 }
  0x7f   :  { %v361_v13 = vld [vmem:[#allocation5 + $0x620] sm:$0xff]  ;;  %4885 = vmatpush2.bf16.msra.mxu1 %v6712_v17 }
  0x80   :  { %v6705_v19 = vcombine.high %v357_v12, %v361_v13  ;;  %v477_v20 = vld [vmem:[#allocation5 + $0x9c0] sm:$0xff]  ;;  %4845 = vmatprep.subr.bf16.mxu0 %v6577_v18  ;;  %v6704_v27 = vcombine.low %v357_v12, %v361_v13 }
  0x81   :  { %v481_v21 = vld [vmem:[#allocation5 + $0x9e0] sm:$0xff]  ;;  %4846 = vmatpush2.bf16.msra.mxu0 %v6576_v26 }
  0x82   :  { %v605_v23 = vld [vmem:[#allocation5 + $0xdc0] sm:$0xff]  ;;  %v6825_v28 = vcombine.high %v477_v20, %v481_v21  ;;  %4886 = vmatprep.subr.bf16.mxu1 %v6705_v19  ;;  %v6824_v38 = vcombine.low %v477_v20, %v481_v21 }
  0x83   :  { %v609_v24 = vld [vmem:[#allocation5 + $0xde0] sm:$0xff]  ;;  %4887 = vmatpush2.bf16.msra.mxu1 %v6704_v27 }
  0x84   :  { %v6953_v29 = vcombine.high %v605_v23, %v609_v24  ;;  %v469_v30 = vld [vmem:[#allocation5 + $0x980] sm:$0xff]  ;;  %4897 = vmatprep.subr.bf16.mxu0 %v6825_v28  ;;  %v6952_v39 = vcombine.low %v605_v23, %v609_v24  ;;  %4848 = vmatmul.mubr.bf16.vlgmr.msra.gmra.mxu0 %v7729_v33 }
  0x85   :  { %v473_v31 = vld [vmem:[#allocation5 + $0x9a0] sm:$0xff]  ;;  %4898 = vmatpush1.bf16.msra.mxu0 %v6824_v38  ;;  %4929 = vmatprep.mubr.bf16.mxu0 %v7737_v46 }
  0x86   :  { %v597_v34 = vld [vmem:[#allocation5 + $0xd80] sm:$0xff]  ;;  %v6817_v40 = vcombine.high %v469_v30, %v473_v31  ;;  %4938 = vmatprep.subr.bf16.mxu1 %v6953_v29  ;;  %4889 = vmatmul.mubr.bf16.vlgmr.msra.gmra.mxu1 %v7735_v37  ;;  %v6816_v5 = vcombine.low %v469_v30, %v473_v31 }
  0x87   :  { %v601_v35 = vld [vmem:[#allocation5 + $0xda0] sm:$0xff]  ;;  %4939 = vmatpush1.bf16.msra.mxu1 %v6952_v39  ;;  %4970 = vmatprep.mubr.bf16.mxu1 %v7740_v47 }
  0x88   :  { %v461_v41 = vld [vmem:[#allocation5 + $0x940] sm:$0xff]  ;;  %v6945_v63 = vcombine.high %v597_v34, %v601_v35  ;;  %4899 = vmatprep.subr.bf16.mxu0 %v6817_v40  ;;  %v6944_v48 = vcombine.low %v597_v34, %v601_v35 }
  0x89   :  { %v465_v42 = vld [vmem:[#allocation5 + $0x960] sm:$0xff]  ;;  %4900 = vmatpush1.bf16.msra.mxu0 %v6816_v5 }
  0x8a   :  { %v589_v43 = vld [vmem:[#allocation5 + $0xd40] sm:$0xff]  ;;  %v6809_v49 = vcombine.high %v461_v41, %v465_v42  ;;  %4940 = vmatprep.subr.bf16.mxu1 %v6945_v63  ;;  %v6808_v56 = vcombine.low %v461_v41, %v465_v42 }
  0x8b   :  { %v593_v45 = vld [vmem:[#allocation5 + $0xd60] sm:$0xff]  ;;  %4941 = vmatpush1.bf16.msra.mxu1 %v6944_v48 }
  0x8c   :  { %v453_v50 = vld [vmem:[#allocation5 + $0x900] sm:$0xff]  ;;  %v6937_v54 = vcombine.high %v589_v43, %v593_v45  ;;  %4901 = vmatprep.subr.bf16.mxu0 %v6809_v49  ;;  %v6936_v57 = vcombine.low %v589_v43, %v593_v45 }
  0x8d   :  { %v457_v51 = vld [vmem:[#allocation5 + $0x920] sm:$0xff]  ;;  %4902 = vmatpush1.bf16.msra.mxu0 %v6808_v56 }
  0x8e   :  { %v581_v52 = vld [vmem:[#allocation5 + $0xd00] sm:$0xff]  ;;  %v6801_v58 = vcombine.high %v453_v50, %v457_v51  ;;  %4942 = vmatprep.subr.bf16.mxu1 %v6937_v54  ;;  %v6800_v1 = vcombine.low %v453_v50, %v457_v51 }
  0x8f   :  { %v585_v55 = vld [vmem:[#allocation5 + $0xd20] sm:$0xff]  ;;  %4943 = vmatpush1.bf16.msra.mxu1 %v6936_v57 }
  0x90   :  { %v445_v59 = vld [vmem:[#allocation5 + $0x8c0] sm:$0xff]  ;;  %v6929_v62 = vcombine.high %v581_v52, %v585_v55  ;;  %4903 = vmatprep.subr.bf16.mxu0 %v6801_v58  ;;  %v6928_v2 = vcombine.low %v581_v52, %v585_v55 }
  0x91   :  { %v449_v60 = vld [vmem:[#allocation5 + $0x8e0] sm:$0xff]  ;;  %4904 = vmatpush1.bf16.msra.mxu0 %v6800_v1 }
  0x92   :  { %v573_v61 = vld [vmem:[#allocation5 + $0xcc0] sm:$0xff]  ;;  %v6793_v3 = vcombine.high %v445_v59, %v449_v60  ;;  %4944 = vmatprep.subr.bf16.mxu1 %v6929_v62  ;;  %v6792_v10 = vcombine.low %v445_v59, %v449_v60 }
  0x93   :  { %v577_v0 = vld [vmem:[#allocation5 + $0xce0] sm:$0xff]  ;;  %4945 = vmatpush1.bf16.msra.mxu1 %v6928_v2 }
  0x94   :  { %v437_v4 = vld [vmem:[#allocation5 + $0x880] sm:$0xff]  ;;  %v6921_v8 = vcombine.high %v573_v61, %v577_v0  ;;  %4905 = vmatprep.subr.bf16.mxu0 %v6793_v3  ;;  %v6920_v12 = vcombine.low %v573_v61, %v577_v0 }
  0x95   :  { %v441_v6 = vld [vmem:[#allocation5 + $0x8a0] sm:$0xff]  ;;  %4906 = vmatpush1.bf16.msra.mxu0 %v6792_v10 }
  0x96   :  { %v565_v7 = vld [vmem:[#allocation5 + $0xc80] sm:$0xff]  ;;  %v6785_v13 = vcombine.high %v437_v4, %v441_v6  ;;  %4946 = vmatprep.subr.bf16.mxu1 %v6921_v8  ;;  %v6784_v20 = vcombine.low %v437_v4, %v441_v6 }
  0x97   :  { %v569_v9 = vld [vmem:[#allocation5 + $0xca0] sm:$0xff]  ;;  %4947 = vmatpush1.bf16.msra.mxu1 %v6920_v12 }
  0x98   :  { %v429_v14 = vld [vmem:[#allocation5 + $0x840] sm:$0xff]  ;;  %v6913_v18 = vcombine.high %v565_v7, %v569_v9  ;;  %4907 = vmatprep.subr.bf16.mxu0 %v6785_v13  ;;  %v6912_v21 = vcombine.low %v565_v7, %v569_v9 }
  0x99   :  { %v433_v15 = vld [vmem:[#allocation5 + $0x860] sm:$0xff]  ;;  %4908 = vmatpush1.bf16.msra.mxu0 %v6784_v20 }
  0x9a   :  { %v557_v17 = vld [vmem:[#allocation5 + $0xc40] sm:$0xff]  ;;  %v6777_v23 = vcombine.high %v429_v14, %v433_v15  ;;  %4948 = vmatprep.subr.bf16.mxu1 %v6913_v18  ;;  %v6776_v30 = vcombine.low %v429_v14, %v433_v15 }
  0x9b   :  { %v561_v19 = vld [vmem:[#allocation5 + $0xc60] sm:$0xff]  ;;  %4949 = vmatpush1.bf16.msra.mxu1 %v6912_v21 }
  0x9c   :  { %v421_v24 = vld [vmem:[#allocation5 + $0x800] sm:$0xff]  ;;  %v6905_v28 = vcombine.high %v557_v17, %v561_v19  ;;  %4909 = vmatprep.subr.bf16.mxu0 %v6777_v23  ;;  %v6904_v31 = vcombine.low %v557_v17, %v561_v19 }
  0x9d   :  { %v425_v26 = vld [vmem:[#allocation5 + $0x820] sm:$0xff]  ;;  %4910 = vmatpush1.bf16.msra.mxu0 %v6776_v30 }
  0x9e   :  { %v549_v27 = vld [vmem:[#allocation5 + $0xc00] sm:$0xff]  ;;  %v6769_v32 = vcombine.high %v421_v24, %v425_v26  ;;  %4950 = vmatprep.subr.bf16.mxu1 %v6905_v28  ;;  %v6768_v40 = vcombine.low %v421_v24, %v425_v26 }
  0x9f   :  { %v553_v29 = vld [vmem:[#allocation5 + $0xc20] sm:$0xff]  ;;  %4951 = vmatpush1.bf16.msra.mxu1 %v6904_v31 }
  0xa0   :  { %v541_v34 = vld [vmem:[#allocation5 + $0xbc0] sm:$0xff]  ;;  %v6897_v38 = vcombine.high %v549_v27, %v553_v29  ;;  %4911 = vmatprep.subr.bf16.mxu0 %v6769_v32  ;;  %v6896_v41 = vcombine.low %v549_v27, %v553_v29  ;;  %v86_v32 = vld [vmem:[#allocation2 + $0x10] sm:$0xff] }
  0xa1   :  { %v545_v35 = vld [vmem:[#allocation5 + $0xbe0] sm:$0xff]  ;;  %4912 = vmatpush1.bf16.msra.mxu0 %v6768_v40 }
  0xa2   :  { %v669_v36 = vld [vmem:[#allocation5 + $0xfc0] sm:$0xff]  ;;  %v6889_v42 = vcombine.high %v541_v34, %v545_v35  ;;  %4952 = vmatprep.subr.bf16.mxu1 %v6897_v38  ;;  %v6888_v49 = vcombine.low %v541_v34, %v545_v35 }
  0xa3   :  { %v673_v39 = vld [vmem:[#allocation5 + $0xfe0] sm:$0xff]  ;;  %4953 = vmatpush1.bf16.msra.mxu1 %v6896_v41 }
  0xa4   :  { %v533_v43 = vld [vmem:[#allocation5 + $0xb80] sm:$0xff]  ;;  %v7017_v5 = vcombine.high %v669_v36, %v673_v39  ;;  %4913 = vmatprep.subr.bf16.mxu0 %v6889_v42  ;;  %v7016_v50 = vcombine.low %v669_v36, %v673_v39 }
  0xa5   :  { %v537_v63 = vld [vmem:[#allocation5 + $0xba0] sm:$0xff]  ;;  %4914 = vmatpush2.bf16.msra.mxu0 %v6888_v49 }
  0xa6   :  { %v661_v45 = vld [vmem:[#allocation5 + $0xf80] sm:$0xff]  ;;  %v6881_v51 = vcombine.high %v533_v43, %v537_v63  ;;  %4954 = vmatprep.subr.bf16.mxu1 %v7017_v5  ;;  %v6880_v58 = vcombine.low %v533_v43, %v537_v63  ;;  %v124_v43 = vcombine.high %v86_v32, %v86_v32 }
  0xa7   :  { %v665_v48 = vld [vmem:[#allocation5 + $0xfa0] sm:$0xff]  ;;  %4955 = vmatpush2.bf16.msra.mxu1 %v7016_v50 }
  0xa8   :  { %v525_v52 = vld [vmem:[#allocation5 + $0xb40] sm:$0xff]  ;;  %v7009_v56 = vcombine.high %v661_v45, %v665_v48  ;;  %4915 = vmatprep.subr.bf16.mxu0 %v6881_v51  ;;  %v7008_v59 = vcombine.low %v661_v45, %v665_v48 }
  0xa9   :  { %v529_v54 = vld [vmem:[#allocation5 + $0xb60] sm:$0xff]  ;;  %4916 = vmatpush2.bf16.msra.mxu0 %v6880_v58 }
  0xaa   :  { %v653_v55 = vld [vmem:[#allocation5 + $0xf40] sm:$0xff]  ;;  %v6873_v60 = vcombine.high %v525_v52, %v529_v54  ;;  %4956 = vmatprep.subr.bf16.mxu1 %v7009_v56  ;;  %v6872_v3 = vcombine.low %v525_v52, %v529_v54  ;;  %v7746_v54 = vrot.slane %v86_v32, %v7701_v53 }
  0xab   :  { %v657_v57 = vld [vmem:[#allocation5 + $0xf60] sm:$0xff]  ;;  %4957 = vmatpush2.bf16.msra.mxu1 %v7008_v59 }
  0xac   :  { %v517_v61 = vld [vmem:[#allocation5 + $0xb00] sm:$0xff]  ;;  %v7001_v1 = vcombine.high %v653_v55, %v657_v57  ;;  %4917 = vmatprep.subr.bf16.mxu0 %v6873_v60  ;;  %v7000_v4 = vcombine.low %v653_v55, %v657_v57  ;;  %v7749_v55 = vrot.slane %v124_v43, %v7701_v53 }
  0xad   :  { %v521_v62 = vld [vmem:[#allocation5 + $0xb20] sm:$0xff]  ;;  %4918 = vmatpush2.bf16.msra.mxu0 %v6872_v3  ;;  %v7761_v3 = vpack.c.bf16 %v7723_v25, %v7723_v25 }
  0xae   :  { %v645_v0 = vld [vmem:[#allocation5 + $0xf00] sm:$0xff]  ;;  %v6865_v6 = vcombine.high %v517_v61, %v521_v62  ;;  %4958 = vmatprep.subr.bf16.mxu1 %v7001_v1  ;;  %v6864_v13 = vcombine.low %v517_v61, %v521_v62  ;;  %v139_v1 = vcombine.high %v7746_v54, %v7746_v54  ;;  %v140_v53 = vcombine.high %v7749_v55, %v7749_v55 }
  0xaf   :  { %v649_v2 = vld [vmem:[#allocation5 + $0xf20] sm:$0xff]  ;;  %4959 = vmatpush2.bf16.msra.mxu1 %v7000_v4 }
  0xb0   :  { %v509_v7 = vld [vmem:[#allocation5 + $0xac0] sm:$0xff]  ;;  %v6993_v10 = vcombine.high %v645_v0, %v649_v2  ;;  %4919 = vmatprep.subr.bf16.mxu0 %v6865_v6  ;;  %v6992_v14 = vcombine.low %v645_v0, %v649_v2  ;;  %v7755_v2 = vpack.c.bf16 %v7720_v22, %v7720_v22 }
  0xb1   :  { %v513_v8 = vld [vmem:[#allocation5 + $0xae0] sm:$0xff]  ;;  %4920 = vmatpush2.bf16.msra.mxu0 %v6864_v13 }
  0xb2   :  { %v637_v9 = vld [vmem:[#allocation5 + $0xec0] sm:$0xff]  ;;  %v6857_v15 = vcombine.high %v509_v7, %v513_v8  ;;  %4960 = vmatprep.subr.bf16.mxu1 %v6993_v10  ;;  %v6856_v23 = vcombine.low %v509_v7, %v513_v8 }
  0xb3   :  { %v641_v12 = vld [vmem:[#allocation5 + $0xee0] sm:$0xff]  ;;  %4961 = vmatpush2.bf16.msra.mxu1 %v6992_v14  ;;  %v7766_v14 = vpack.c.bf16 %v140_v53, %v140_v53 }
  0xb4   :  { %v501_v17 = vld [vmem:[#allocation5 + $0xa80] sm:$0xff]  ;;  %v6985_v20 = vcombine.high %v637_v9, %v641_v12  ;;  %4921 = vmatprep.subr.bf16.mxu0 %v6857_v15  ;;  %v6984_v26 = vcombine.low %v637_v9, %v641_v12  ;;  %v7763_v12 = vpack.c.bf16 %v139_v1, %v139_v1 }
  0xb5   :  { %v505_v18 = vld [vmem:[#allocation5 + $0xaa0] sm:$0xff]  ;;  %4922 = vmatpush2.bf16.msra.mxu0 %v6856_v23 }
  0xb6   :  { %v629_v19 = vld [vmem:[#allocation5 + $0xe80] sm:$0xff]  ;;  %v6849_v27 = vcombine.high %v501_v17, %v505_v18  ;;  %4962 = vmatprep.subr.bf16.mxu1 %v6985_v20  ;;  %v6848_v34 = vcombine.low %v501_v17, %v505_v18 }
  0xb7   :  { %v633_v21 = vld [vmem:[#allocation5 + $0xea0] sm:$0xff]  ;;  %4963 = vmatpush2.bf16.msra.mxu1 %v6984_v26 }
  0xb8   :  { %v493_v24 = vld [vmem:[#allocation5 + $0xa40] sm:$0xff]  ;;  %v6977_v31 = vcombine.high %v629_v19, %v633_v21  ;;  %4923 = vmatprep.subr.bf16.mxu0 %v6849_v27  ;;  %v6976_v35 = vcombine.low %v629_v19, %v633_v21 }
  0xb9   :  { %v497_v28 = vld [vmem:[#allocation5 + $0xa60] sm:$0xff]  ;;  %4924 = vmatpush2.bf16.msra.mxu0 %v6848_v34 }
  0xba   :  { %v621_v29 = vld [vmem:[#allocation5 + $0xe40] sm:$0xff]  ;;  %v6841_v36 = vcombine.high %v493_v24, %v497_v28  ;;  %4964 = vmatprep.subr.bf16.mxu1 %v6977_v31  ;;  %v6840_v63 = vcombine.low %v493_v24, %v497_v28 }
  0xbb   :  { %v625_v30 = vld [vmem:[#allocation5 + $0xe60] sm:$0xff]  ;;  %4965 = vmatpush2.bf16.msra.mxu1 %v6976_v35 }
  0xbc   :  { %v485_v38 = vld [vmem:[#allocation5 + $0xa00] sm:$0xff]  ;;  %v6969_v41 = vcombine.high %v621_v29, %v625_v30  ;;  %4925 = vmatprep.subr.bf16.mxu0 %v6841_v36  ;;  %v6968_v45 = vcombine.low %v621_v29, %v625_v30 }
  0xbd   :  { %v489_v39 = vld [vmem:[#allocation5 + $0xa20] sm:$0xff]  ;;  %4926 = vmatpush2.bf16.msra.mxu0 %v6840_v63 }
  0xbe   :  { %v613_v40 = vld [vmem:[#allocation5 + $0xe00] sm:$0xff]  ;;  %v6833_v5 = vcombine.high %v485_v38, %v489_v39  ;;  %4966 = vmatprep.subr.bf16.mxu1 %v6969_v41  ;;  %v6832_v56 = vcombine.low %v485_v38, %v489_v39 }
  0xbf   :  { %v617_v42 = vld [vmem:[#allocation5 + $0xe20] sm:$0xff]  ;;  %4967 = vmatpush2.bf16.msra.mxu1 %v6968_v45 }
  0xc0   :  { %v733_v48 = vld [vmem:[#allocation5 + $0x11c0] sm:$0xff]  ;;  %v6961_v51 = vcombine.high %v613_v40, %v617_v42  ;;  %4927 = vmatprep.subr.bf16.mxu0 %v6833_v5  ;;  %v6960_v57 = vcombine.low %v613_v40, %v617_v42 }
  0xc1   :  { %v737_v49 = vld [vmem:[#allocation5 + $0x11e0] sm:$0xff]  ;;  %4928 = vmatpush2.bf16.msra.mxu0 %v6832_v56 }
  0xc2   :  { %v861_v50 = vld [vmem:[#allocation5 + $0x15c0] sm:$0xff]  ;;  %v7081_v58 = vcombine.high %v733_v48, %v737_v49  ;;  %4968 = vmatprep.subr.bf16.mxu1 %v6961_v51  ;;  %v7080_v4 = vcombine.low %v733_v48, %v737_v49 }
  0xc3   :  { %v865_v52 = vld [vmem:[#allocation5 + $0x15e0] sm:$0xff]  ;;  %4969 = vmatpush2.bf16.msra.mxu1 %v6960_v57 }
  0xc4   :  { %v725_v59 = vld [vmem:[#allocation5 + $0x1180] sm:$0xff]  ;;  %v7209_v62 = vcombine.high %v861_v50, %v865_v52  ;;  %4979 = vmatprep.subr.bf16.mxu0 %v7081_v58  ;;  %v7208_v6 = vcombine.low %v861_v50, %v865_v52  ;;  %4930 = vmatmul.mubr.bf16.vlgmr.msra.gmra.mxu0 %v7755_v2 }
  0xc5   :  { %v729_v60 = vld [vmem:[#allocation5 + $0x11a0] sm:$0xff]  ;;  %4980 = vmatpush1.bf16.msra.mxu0 %v7080_v4  ;;  %5011 = vmatprep.mubr.bf16.mxu0 %v7763_v12 }
  0xc6   :  { %v853_v61 = vld [vmem:[#allocation5 + $0x1580] sm:$0xff]  ;;  %v7073_v7 = vcombine.high %v725_v59, %v729_v60  ;;  %5020 = vmatprep.subr.bf16.mxu1 %v7209_v62  ;;  %4971 = vmatmul.mubr.bf16.vlgmr.msra.gmra.mxu1 %v7761_v3  ;;  %v7072_v25 = vcombine.low %v725_v59, %v729_v60 }
  0xc7   :  { %v857_v0 = vld [vmem:[#allocation5 + $0x15a0] sm:$0xff]  ;;  %5021 = vmatpush1.bf16.msra.mxu1 %v7208_v6  ;;  %5052 = vmatprep.mubr.bf16.mxu1 %v7766_v14 }
  0xc8   :  { %v7201_v8 = vcombine.high %v853_v61, %v857_v0  ;;  %v717_v9 = vld [vmem:[#allocation5 + $0x1140] sm:$0xff]  ;;  %4981 = vmatprep.subr.bf16.mxu0 %v7073_v7  ;;  %v7200_v15 = vcombine.low %v853_v61, %v857_v0 }
  0xc9   :  { %v721_v10 = vld [vmem:[#allocation5 + $0x1160] sm:$0xff]  ;;  %4982 = vmatpush1.bf16.msra.mxu0 %v7072_v25 }
  0xca   :  { %v845_v22 = vld [vmem:[#allocation5 + $0x1540] sm:$0xff]  ;;  %v7065_v17 = vcombine.high %v717_v9, %v721_v10  ;;  %5022 = vmatprep.subr.bf16.mxu1 %v7201_v8  ;;  %v7064_v24 = vcombine.low %v717_v9, %v721_v10 }
  0xcb   :  { %v849_v13 = vld [vmem:[#allocation5 + $0x1560] sm:$0xff]  ;;  %5023 = vmatpush1.bf16.msra.mxu1 %v7200_v15 }
  0xcc   :  { %v7193_v18 = vcombine.high %v845_v22, %v849_v13  ;;  %v709_v19 = vld [vmem:[#allocation5 + $0x1100] sm:$0xff]  ;;  %4983 = vmatprep.subr.bf16.mxu0 %v7065_v17  ;;  %v7192_v26 = vcombine.low %v845_v22, %v849_v13 }
  0xcd   :  { %v713_v20 = vld [vmem:[#allocation5 + $0x1120] sm:$0xff]  ;;  %4984 = vmatpush1.bf16.msra.mxu0 %v7064_v24 }
  0xce   :  { %v837_v21 = vld [vmem:[#allocation5 + $0x1500] sm:$0xff]  ;;  %v7057_v27 = vcombine.high %v709_v19, %v713_v20  ;;  %5024 = vmatprep.subr.bf16.mxu1 %v7193_v18  ;;  %v7056_v34 = vcombine.low %v709_v19, %v713_v20 }
  0xcf   :  { %v841_v23 = vld [vmem:[#allocation5 + $0x1520] sm:$0xff]  ;;  %5025 = vmatpush1.bf16.msra.mxu1 %v7192_v26 }
  0xd0   :  { %v7185_v28 = vcombine.high %v837_v21, %v841_v23  ;;  %v701_v29 = vld [vmem:[#allocation5 + $0x10c0] sm:$0xff]  ;;  %4985 = vmatprep.subr.bf16.mxu0 %v7057_v27  ;;  %v7184_v35 = vcombine.low %v837_v21, %v841_v23 }
  0xd1   :  { %v705_v30 = vld [vmem:[#allocation5 + $0x10e0] sm:$0xff]  ;;  %4986 = vmatpush1.bf16.msra.mxu0 %v7056_v34 }
  0xd2   :  { %v829_v31 = vld [vmem:[#allocation5 + $0x14c0] sm:$0xff]  ;;  %v7049_v36 = vcombine.high %v701_v29, %v705_v30  ;;  %5026 = vmatprep.subr.bf16.mxu1 %v7185_v28  ;;  %v7048_v43 = vcombine.low %v701_v29, %v705_v30 }
  0xd3   :  { %v833_v32 = vld [vmem:[#allocation5 + $0x14e0] sm:$0xff]  ;;  %5027 = vmatpush1.bf16.msra.mxu1 %v7184_v35 }
  0xd4   :  { %v7177_v38 = vcombine.high %v829_v31, %v833_v32  ;;  %v693_v39 = vld [vmem:[#allocation5 + $0x1080] sm:$0xff]  ;;  %4987 = vmatprep.subr.bf16.mxu0 %v7049_v36  ;;  %v7176_v63 = vcombine.low %v829_v31, %v833_v32 }
  0xd5   :  { %v697_v40 = vld [vmem:[#allocation5 + $0x10a0] sm:$0xff]  ;;  %4988 = vmatpush1.bf16.msra.mxu0 %v7048_v43 }
  0xd6   :  { %v821_v41 = vld [vmem:[#allocation5 + $0x1480] sm:$0xff]  ;;  %v7041_v45 = vcombine.high %v693_v39, %v697_v40  ;;  %5028 = vmatprep.subr.bf16.mxu1 %v7177_v38  ;;  %v7040_v52 = vcombine.low %v693_v39, %v697_v40 }
  0xd7   :  { %v825_v42 = vld [vmem:[#allocation5 + $0x14a0] sm:$0xff]  ;;  %5029 = vmatpush1.bf16.msra.mxu1 %v7176_v63 }
  0xd8   :  { %v7169_v5 = vcombine.high %v821_v41, %v825_v42  ;;  %v685_v48 = vld [vmem:[#allocation5 + $0x1040] sm:$0xff]  ;;  %4989 = vmatprep.subr.bf16.mxu0 %v7041_v45  ;;  %v7168_v56 = vcombine.low %v821_v41, %v825_v42 }
  0xd9   :  { %v689_v49 = vld [vmem:[#allocation5 + $0x1060] sm:$0xff]  ;;  %4990 = vmatpush1.bf16.msra.mxu0 %v7040_v52 }
  0xda   :  { %v813_v50 = vld [vmem:[#allocation5 + $0x1440] sm:$0xff]  ;;  %v7033_v57 = vcombine.high %v685_v48, %v689_v49  ;;  %5030 = vmatprep.subr.bf16.mxu1 %v7169_v5  ;;  %v7032_v0 = vcombine.low %v685_v48, %v689_v49 }
  0xdb   :  { %v817_v51 = vld [vmem:[#allocation5 + $0x1460] sm:$0xff]  ;;  %5031 = vmatpush1.bf16.msra.mxu1 %v7168_v56 }
  0xdc   :  { %v7161_v58 = vcombine.high %v813_v50, %v817_v51  ;;  %v677_v59 = vld [vmem:[#allocation5 + $0x1000] sm:$0xff]  ;;  %4991 = vmatprep.subr.bf16.mxu0 %v7033_v57  ;;  %v7160_v1 = vcombine.low %v813_v50, %v817_v51 }
  0xdd   :  { %v681_v60 = vld [vmem:[#allocation5 + $0x1020] sm:$0xff]  ;;  %4992 = vmatpush1.bf16.msra.mxu0 %v7032_v0 }
  0xde   :  { %v805_v61 = vld [vmem:[#allocation5 + $0x1400] sm:$0xff]  ;;  %v7025_v53 = vcombine.high %v677_v59, %v681_v60  ;;  %5032 = vmatprep.subr.bf16.mxu1 %v7161_v58  ;;  %v7024_v10 = vcombine.low %v677_v59, %v681_v60 }
  0xdf   :  { %v809_v62 = vld [vmem:[#allocation5 + $0x1420] sm:$0xff]  ;;  %5033 = vmatpush1.bf16.msra.mxu1 %v7160_v1 }
  0xe0   :  { %v7153_v4 = vcombine.high %v805_v61, %v809_v62  ;;  %v797_v6 = vld [vmem:[#allocation5 + $0x13c0] sm:$0xff]  ;;  %4993 = vmatprep.subr.bf16.mxu0 %v7025_v53  ;;  %v7152_v22 = vcombine.low %v805_v61, %v809_v62 }
  0xe1   :  { %v801_v7 = vld [vmem:[#allocation5 + $0x13e0] sm:$0xff]  ;;  %4994 = vmatpush1.bf16.msra.mxu0 %v7024_v10 }
  0xe2   :  { %v925_v8 = vld [vmem:[#allocation5 + $0x17c0] sm:$0xff]  ;;  %v7145_v13 = vcombine.high %v797_v6, %v801_v7  ;;  %5034 = vmatprep.subr.bf16.mxu1 %v7153_v4  ;;  %v7144_v20 = vcombine.low %v797_v6, %v801_v7 }
  0xe3   :  { %v929_v9 = vld [vmem:[#allocation5 + $0x17e0] sm:$0xff]  ;;  %5035 = vmatpush1.bf16.msra.mxu1 %v7152_v22 }
  0xe4   :  { %v7273_v25 = vcombine.high %v925_v8, %v929_v9  ;;  %v789_v15 = vld [vmem:[#allocation5 + $0x1380] sm:$0xff]  ;;  %4995 = vmatprep.subr.bf16.mxu0 %v7145_v13  ;;  %v7272_v21 = vcombine.low %v925_v8, %v929_v9 }
  0xe5   :  { %v793_v17 = vld [vmem:[#allocation5 + $0x13a0] sm:$0xff]  ;;  %4996 = vmatpush2.bf16.msra.mxu0 %v7144_v20 }
  0xe6   :  { %v917_v18 = vld [vmem:[#allocation5 + $0x1780] sm:$0xff]  ;;  %v7137_v23 = vcombine.high %v789_v15, %v793_v17  ;;  %5036 = vmatprep.subr.bf16.mxu1 %v7273_v25  ;;  %v7136_v30 = vcombine.low %v789_v15, %v793_v17 }
  0xe7   :  { %v921_v19 = vld [vmem:[#allocation5 + $0x17a0] sm:$0xff]  ;;  %5037 = vmatpush2.bf16.msra.mxu1 %v7272_v21  ;;  %v222_v21 = vld [vmem:[#allocation5 + $0x1c8] sm:$0xff] }
  0xe8   :  { %v7265_v24 = vcombine.high %v917_v18, %v921_v19  ;;  %v781_v26 = vld [vmem:[#allocation5 + $0x1340] sm:$0xff]  ;;  %4997 = vmatprep.subr.bf16.mxu0 %v7137_v23  ;;  %v7264_v31 = vcombine.low %v917_v18, %v921_v19  ;;  %v226_v23 = vld [vmem:[#allocation5 + $0x1e8] sm:$0xff] }
  0xe9   :  { %v785_v27 = vld [vmem:[#allocation5 + $0x1360] sm:$0xff]  ;;  %4998 = vmatpush2.bf16.msra.mxu0 %v7136_v30 }
  0xea   :  { %v909_v28 = vld [vmem:[#allocation5 + $0x1740] sm:$0xff]  ;;  %v7129_v32 = vcombine.high %v781_v26, %v785_v27  ;;  %5038 = vmatprep.subr.bf16.mxu1 %v7265_v24  ;;  %v7128_v40 = vcombine.low %v781_v26, %v785_v27  ;;  %v350_v24 = vld [vmem:[#allocation5 + $0x5c8] sm:$0xff] }
  0xeb   :  { %v913_v29 = vld [vmem:[#allocation5 + $0x1760] sm:$0xff]  ;;  %5039 = vmatpush2.bf16.msra.mxu1 %v7264_v31  ;;  %v354_v26 = vld [vmem:[#allocation5 + $0x5e8] sm:$0xff] }
  0xec   :  { %v7257_v34 = vcombine.high %v909_v28, %v913_v29  ;;  %v773_v35 = vld [vmem:[#allocation5 + $0x1300] sm:$0xff]  ;;  %4999 = vmatprep.subr.bf16.mxu0 %v7129_v32  ;;  %v7256_v41 = vcombine.low %v909_v28, %v913_v29  ;;  %v6571_v29 = vcombine.high %v222_v21, %v226_v23  ;;  %v6699_v30 = vcombine.high %v350_v24, %v354_v26  ;;  %v214_v31 = vld [vmem:[#allocation5 + $0x188] sm:$0xff] }
  0xed   :  { %v777_v36 = vld [vmem:[#allocation5 + $0x1320] sm:$0xff]  ;;  %5000 = vmatpush2.bf16.msra.mxu0 %v7128_v40  ;;  %v218_v32 = vld [vmem:[#allocation5 + $0x1a8] sm:$0xff]  ;;  %v6698_v40 = vcombine.low %v350_v24, %v354_v26 }
  0xee   :  { %v901_v38 = vld [vmem:[#allocation5 + $0x1700] sm:$0xff]  ;;  %v7121_v42 = vcombine.high %v773_v35, %v777_v36  ;;  %5040 = vmatprep.subr.bf16.mxu1 %v7257_v34  ;;  %v7120_v49 = vcombine.low %v773_v35, %v777_v36  ;;  %v7773_v34 = vpack.c.bf16 %v7746_v54, %v7746_v54  ;;  %v342_v35 = vld [vmem:[#allocation5 + $0x588] sm:$0xff] }
  0xef   :  { %v905_v39 = vld [vmem:[#allocation5 + $0x1720] sm:$0xff]  ;;  %5041 = vmatpush2.bf16.msra.mxu1 %v7256_v41  ;;  %v346_v36 = vld [vmem:[#allocation5 + $0x5a8] sm:$0xff]  ;;  %v6563_v41 = vcombine.high %v214_v31, %v218_v32 }
  0xf0   :  { %v7249_v43 = vcombine.high %v901_v38, %v905_v39  ;;  %v765_v63 = vld [vmem:[#allocation5 + $0x12c0] sm:$0xff]  ;;  %5001 = vmatprep.subr.bf16.mxu0 %v7121_v42  ;;  %v7248_v50 = vcombine.low %v901_v38, %v905_v39  ;;  %v7777_v38 = vpack.c.bf16 %v7749_v55, %v7749_v55  ;;  %v6570_v39 = vcombine.low %v222_v21, %v226_v23  ;;  %v334_v54 = vld [vmem:[#allocation5 + $0x548] sm:$0xff] }
  0xf1   :  { %v769_v45 = vld [vmem:[#allocation5 + $0x12e0] sm:$0xff]  ;;  %5002 = vmatpush2.bf16.msra.mxu0 %v7120_v49  ;;  %v6691_v42 = vcombine.high %v342_v35, %v346_v36  ;;  %v6690_v55 = vcombine.low %v342_v35, %v346_v36  ;;  %v306_v21 = vld [vmem:[#allocation5 + $0x468] sm:$0xff] }
  0xf2   :  { %v893_v5 = vld [vmem:[#allocation5 + $0x16c0] sm:$0xff]  ;;  %v7113_v51 = vcombine.high %v765_v63, %v769_v45  ;;  %5042 = vmatprep.subr.bf16.mxu1 %v7249_v43  ;;  %v7112_v60 = vcombine.low %v765_v63, %v769_v45  ;;  %v206_v43 = vld [vmem:[#allocation5 + $0x148] sm:$0xff] }
  0xf3   :  { %v897_v48 = vld [vmem:[#allocation5 + $0x16e0] sm:$0xff]  ;;  %5043 = vmatpush2.bf16.msra.mxu1 %v7248_v50  ;;  %v210_v63 = vld [vmem:[#allocation5 + $0x168] sm:$0xff] }
  0xf4   :  { %v7241_v52 = vcombine.high %v893_v5, %v897_v48  ;;  %v757_v56 = vld [vmem:[#allocation5 + $0x1280] sm:$0xff]  ;;  %5003 = vmatprep.subr.bf16.mxu0 %v7113_v51  ;;  %v7240_v61 = vcombine.low %v893_v5, %v897_v48  ;;  %v338_v45 = vld [vmem:[#allocation5 + $0x568] sm:$0xff]  ;;  %v6562_v5 = vcombine.low %v214_v31, %v218_v32  ;;  %v6555_v48 = vcombine.high %v206_v43, %v210_v63 }
  0xf5   :  { %v761_v57 = vld [vmem:[#allocation5 + $0x12a0] sm:$0xff]  ;;  %5004 = vmatpush2.bf16.msra.mxu0 %v7112_v60  ;;  %v6683_v49 = vcombine.high %v334_v54, %v338_v45  ;;  %v198_v50 = vld [vmem:[#allocation5 + $0x108] sm:$0xff] }
  0xf6   :  { %v885_v58 = vld [vmem:[#allocation5 + $0x1680] sm:$0xff]  ;;  %v7105_v62 = vcombine.high %v757_v56, %v761_v57  ;;  %5044 = vmatprep.subr.bf16.mxu1 %v7241_v52  ;;  %v7104_v7 = vcombine.low %v757_v56, %v761_v57  ;;  %v202_v51 = vld [vmem:[#allocation5 + $0x128] sm:$0xff]  ;;  %v6554_v57 = vcombine.low %v206_v43, %v210_v63 }
  0xf7   :  { %v889_v59 = vld [vmem:[#allocation5 + $0x16a0] sm:$0xff]  ;;  %5045 = vmatpush2.bf16.msra.mxu1 %v7240_v61  ;;  %v326_v52 = vld [vmem:[#allocation5 + $0x508] sm:$0xff] }
  0xf8   :  { %v7233_v0 = vcombine.high %v885_v58, %v889_v59  ;;  %v749_v1 = vld [vmem:[#allocation5 + $0x1240] sm:$0xff]  ;;  %5005 = vmatprep.subr.bf16.mxu0 %v7105_v62  ;;  %v7232_v8 = vcombine.low %v885_v58, %v889_v59  ;;  %v330_v56 = vld [vmem:[#allocation5 + $0x528] sm:$0xff]  ;;  %v6682_v58 = vcombine.low %v334_v54, %v338_v45  ;;  %v6547_v59 = vcombine.high %v198_v50, %v202_v51 }
  0xf9   :  { %v753_v53 = vld [vmem:[#allocation5 + $0x1260] sm:$0xff]  ;;  %5006 = vmatpush2.bf16.msra.mxu0 %v7104_v7  ;;  %v6675_v60 = vcombine.high %v326_v52, %v330_v56  ;;  %v190_v61 = vld [vmem:[#allocation5 + $0xc8] sm:$0xff] }
  0xfa   :  { %v877_v4 = vld [vmem:[#allocation5 + $0x1640] sm:$0xff]  ;;  %v7097_v9 = vcombine.high %v749_v1, %v753_v53  ;;  %5046 = vmatprep.subr.bf16.mxu1 %v7233_v0  ;;  %v7096_v17 = vcombine.low %v749_v1, %v753_v53  ;;  %v194_v62 = vld [vmem:[#allocation5 + $0xe8] sm:$0xff]  ;;  %v6546_v53 = vcombine.low %v198_v50, %v202_v51 }
  0xfb   :  { %v881_v6 = vld [vmem:[#allocation5 + $0x1660] sm:$0xff]  ;;  %5047 = vmatpush2.bf16.msra.mxu1 %v7232_v8  ;;  %v318_v0 = vld [vmem:[#allocation5 + $0x4c8] sm:$0xff] }
  0xfc   :  { %v7225_v10 = vcombine.high %v877_v4, %v881_v6  ;;  %v741_v22 = vld [vmem:[#allocation5 + $0x1200] sm:$0xff]  ;;  %5007 = vmatprep.subr.bf16.mxu0 %v7097_v9  ;;  %v7224_v18 = vcombine.low %v877_v4, %v881_v6  ;;  %v322_v1 = vld [vmem:[#allocation5 + $0x4e8] sm:$0xff]  ;;  %v6674_v4 = vcombine.low %v326_v52, %v330_v56  ;;  %v6539_v6 = vcombine.high %v190_v61, %v194_v62 }
  0xfd   :  { %v745_v13 = vld [vmem:[#allocation5 + $0x1220] sm:$0xff]  ;;  %5008 = vmatpush2.bf16.msra.mxu0 %v7096_v17  ;;  %v6667_v7 = vcombine.high %v318_v0, %v322_v1  ;;  %v182_v8 = vld [vmem:[#allocation5 + $0x88] sm:$0xff] }
  0xfe   :  { %v869_v25 = vld [vmem:[#allocation5 + $0x1600] sm:$0xff]  ;;  %v7089_v19 = vcombine.high %v741_v22, %v745_v13  ;;  %5048 = vmatprep.subr.bf16.mxu1 %v7225_v10  ;;  %v7088_v27 = vcombine.low %v741_v22, %v745_v13  ;;  %v186_v9 = vld [vmem:[#allocation5 + $0xa8] sm:$0xff]  ;;  %v6538_v13 = vcombine.low %v190_v61, %v194_v62 }
  0xff   :  { %v873_v15 = vld [vmem:[#allocation5 + $0x1620] sm:$0xff]  ;;  %5049 = vmatpush2.bf16.msra.mxu1 %v7224_v18  ;;  %v310_v10 = vld [vmem:[#allocation5 + $0x488] sm:$0xff]  ;;  %v6530_v23 = vcombine.low %v182_v8, %v186_v9 }
 0x100   :  { %v7217_v20 = vcombine.high %v869_v25, %v873_v15  ;;  %5009 = vmatprep.subr.bf16.mxu0 %v7089_v19  ;;  %v7216_v28 = vcombine.low %v869_v25, %v873_v15  ;;  %v314_v22 = vld [vmem:[#allocation5 + $0x4a8] sm:$0xff]  ;;  %v6666_v25 = vcombine.low %v318_v0, %v322_v1  ;;  %v6531_v15 = vcombine.high %v182_v8, %v186_v9 }
 0x101   :  { %5010 = vmatpush2.bf16.msra.mxu0 %v7088_v27  ;;  %v6659_v17 = vcombine.high %v310_v10, %v314_v22  ;;  %v174_v18 = vld [vmem:[#allocation5 + $0x48] sm:$0xff]  ;;  %v6658_v24 = vcombine.low %v310_v10, %v314_v22 }
 0x102   :  { %5050 = vmatprep.subr.bf16.mxu1 %v7217_v20  ;;  %5061 = vmatprep.subr.bf16.mxu0 %v6571_v29  ;;  %v178_v19 = vld [vmem:[#allocation5 + $0x68] sm:$0xff] }
 0x103   :  { %5051 = vmatpush2.bf16.msra.mxu1 %v7216_v28  ;;  %v302_v20 = vld [vmem:[#allocation5 + $0x448] sm:$0xff]  ;;  %v6523_v26 = vcombine.high %v174_v18, %v178_v19  ;;  %v6522_v32 = vcombine.low %v174_v18, %v178_v19 }
 0x104   :  { %5102 = vmatprep.subr.bf16.mxu1 %v6699_v30  ;;  %5012 = vmatmul.mubr.bf16.vlgmr.msra.gmra.mxu0 %v7773_v34  ;;  %v6651_v27 = vcombine.high %v302_v20, %v306_v21  ;;  %v166_v28 = vld [vmem:[#allocation5 + $0x8] sm:$0xff]  ;;  %v6650_v35 = vcombine.low %v302_v20, %v306_v21 }
 0x105   :  { %5062 = vmatpush1.bf16.msra.mxu0 %v6570_v39  ;;  %5093 = vmatprep.mubr.bf16.mxu0 %v7711_v11  ;;  %v170_v29 = vld [vmem:[#allocation5 + $0x28] sm:$0xff] }
 0x106   :  { %5053 = vmatmul.mubr.bf16.vlgmr.msra.gmra.mxu1 %v7777_v38  ;;  %5063 = vmatprep.subr.bf16.mxu0 %v6563_v41  ;;  %v294_v30 = vld [vmem:[#allocation5 + $0x408] sm:$0xff]  ;;  %v6515_v36 = vcombine.high %v166_v28, %v170_v29  ;;  %v6514_v63 = vcombine.low %v166_v28, %v170_v29 }
 0x107   :  { %5103 = vmatpush1.bf16.msra.mxu1 %v6698_v40  ;;  %5134 = vmatprep.mubr.bf16.mxu1 %v7716_v16  ;;  %v298_v31 = vld [vmem:[#allocation5 + $0x428] sm:$0xff] }
 0x108   :  { %5104 = vmatprep.subr.bf16.mxu1 %v6691_v42  ;;  %v6643_v39 = vcombine.high %v294_v30, %v298_v31  ;;  %v286_v40 = vld [vmem:[#allocation5 + $0x3c8] sm:$0xff]  ;;  %v6642_v54 = vcombine.low %v294_v30, %v298_v31 }
 0x109   :  { %5064 = vmatpush1.bf16.msra.mxu0 %v6562_v5  ;;  %v290_v41 = vld [vmem:[#allocation5 + $0x3e8] sm:$0xff] }
 0x10a   :  { %5065 = vmatprep.subr.bf16.mxu0 %v6555_v48  ;;  %v414_v42 = vld [vmem:[#allocation5 + $0x7c8] sm:$0xff]  ;;  %v6635_v45 = vcombine.high %v286_v40, %v290_v41  ;;  %v6634_v51 = vcombine.low %v286_v40, %v290_v41 }
 0x10b   :  { %5105 = vmatpush1.bf16.msra.mxu1 %v6690_v55  ;;  %v418_v43 = vld [vmem:[#allocation5 + $0x7e8] sm:$0xff] }
 0x10c   :  { %5106 = vmatprep.subr.bf16.mxu1 %v6683_v49  ;;  %v6763_v5 = vcombine.high %v414_v42, %v418_v43  ;;  %v278_v55 = vld [vmem:[#allocation5 + $0x388] sm:$0xff]  ;;  %v6762_v52 = vcombine.low %v414_v42, %v418_v43 }
 0x10d   :  { %5066 = vmatpush1.bf16.msra.mxu0 %v6554_v57  ;;  %v282_v48 = vld [vmem:[#allocation5 + $0x3a8] sm:$0xff] }
 0x10e   :  { %5067 = vmatprep.subr.bf16.mxu0 %v6547_v59  ;;  %v406_v49 = vld [vmem:[#allocation5 + $0x788] sm:$0xff]  ;;  %v6627_v56 = vcombine.high %v278_v55, %v282_v48  ;;  %v6626_v62 = vcombine.low %v278_v55, %v282_v48 }
 0x10f   :  { %5107 = vmatpush1.bf16.msra.mxu1 %v6682_v58  ;;  %v410_v50 = vld [vmem:[#allocation5 + $0x7a8] sm:$0xff] }
 0x110   :  { %5108 = vmatprep.subr.bf16.mxu1 %v6675_v60  ;;  %v6755_v57 = vcombine.high %v406_v49, %v410_v50  ;;  %v270_v58 = vld [vmem:[#allocation5 + $0x348] sm:$0xff]  ;;  %v6754_v0 = vcombine.low %v406_v49, %v410_v50 }
 0x111   :  { %5068 = vmatpush1.bf16.msra.mxu0 %v6546_v53  ;;  %v274_v59 = vld [vmem:[#allocation5 + $0x368] sm:$0xff] }
 0x112   :  { %5069 = vmatprep.subr.bf16.mxu0 %v6539_v6  ;;  %v398_v60 = vld [vmem:[#allocation5 + $0x748] sm:$0xff]  ;;  %v6619_v1 = vcombine.high %v270_v58, %v274_v59  ;;  %v6618_v9 = vcombine.low %v270_v58, %v274_v59 }
 0x113   :  { %5109 = vmatpush1.bf16.msra.mxu1 %v6674_v4  ;;  %v402_v61 = vld [vmem:[#allocation5 + $0x768] sm:$0xff] }
 0x114   :  { %5110 = vmatprep.subr.bf16.mxu1 %v6667_v7  ;;  %v6747_v53 = vcombine.high %v398_v60, %v402_v61  ;;  %v262_v4 = vld [vmem:[#allocation5 + $0x308] sm:$0xff]  ;;  %v6746_v10 = vcombine.low %v398_v60, %v402_v61  ;;  %v937_v60 = vsub.s32 0, %v7698_v44 }
 0x115   :  { %5070 = vmatpush1.bf16.msra.mxu0 %v6538_v13  ;;  %v266_v6 = vld [vmem:[#allocation5 + $0x328] sm:$0xff] }
 0x116   :  { %5071 = vmatprep.subr.bf16.mxu0 %v6531_v15  ;;  %v390_v7 = vld [vmem:[#allocation5 + $0x708] sm:$0xff]  ;;  %v6611_v22 = vcombine.high %v262_v4, %v266_v6  ;;  %v6610_v19 = vcombine.low %v262_v4, %v266_v6 }
 0x117   :  { %5111 = vmatpush1.bf16.msra.mxu1 %v6666_v25  ;;  %v394_v8 = vld [vmem:[#allocation5 + $0x728] sm:$0xff] }
 0x118   :  { %5112 = vmatprep.subr.bf16.mxu1 %v6659_v17  ;;  %v6739_v13 = vcombine.high %v390_v7, %v394_v8  ;;  %v254_v25 = vld [vmem:[#allocation5 + $0x2c8] sm:$0xff]  ;;  %v6738_v20 = vcombine.low %v390_v7, %v394_v8 }
 0x119   :  { %5072 = vmatpush1.bf16.msra.mxu0 %v6530_v23  ;;  %v258_v15 = vld [vmem:[#allocation5 + $0x2e8] sm:$0xff] }
 0x11a   :  { %5073 = vmatprep.subr.bf16.mxu0 %v6523_v26  ;;  %v382_v17 = vld [vmem:[#allocation5 + $0x6c8] sm:$0xff]  ;;  %v6603_v21 = vcombine.high %v254_v25, %v258_v15  ;;  %v6602_v29 = vcombine.low %v254_v25, %v258_v15 }
 0x11b   :  { %5113 = vmatpush1.bf16.msra.mxu1 %v6658_v24  ;;  %v386_v18 = vld [vmem:[#allocation5 + $0x6e8] sm:$0xff] }
 0x11c   :  { %5114 = vmatprep.subr.bf16.mxu1 %v6651_v27  ;;  %v6731_v23 = vcombine.high %v382_v17, %v386_v18  ;;  %v246_v24 = vld [vmem:[#allocation5 + $0x288] sm:$0xff]  ;;  %v6730_v30 = vcombine.low %v382_v17, %v386_v18 }
 0x11d   :  { %5074 = vmatpush1.bf16.msra.mxu0 %v6522_v32  ;;  %v250_v26 = vld [vmem:[#allocation5 + $0x2a8] sm:$0xff] }
 0x11e   :  { %5075 = vmatprep.subr.bf16.mxu0 %v6515_v36  ;;  %v374_v27 = vld [vmem:[#allocation5 + $0x688] sm:$0xff]  ;;  %v6595_v31 = vcombine.high %v246_v24, %v250_v26  ;;  %v6594_v41 = vcombine.low %v246_v24, %v250_v26 }
 0x11f   :  { %5115 = vmatpush1.bf16.msra.mxu1 %v6650_v35  ;;  %v378_v28 = vld [vmem:[#allocation5 + $0x6a8] sm:$0xff] }
 0x120   :  { %5116 = vmatprep.subr.bf16.mxu1 %v6643_v39  ;;  %v6723_v32 = vcombine.high %v374_v27, %v378_v28  ;;  %v238_v35 = vld [vmem:[#allocation5 + $0x248] sm:$0xff]  ;;  %v6722_v42 = vcombine.low %v374_v27, %v378_v28 }
 0x121   :  { %5076 = vmatpush1.bf16.msra.mxu0 %v6514_v63  ;;  %v242_v36 = vld [vmem:[#allocation5 + $0x268] sm:$0xff] }
 0x122   :  { %5077 = vmatprep.subr.bf16.mxu0 %v6635_v45  ;;  %v366_v39 = vld [vmem:[#allocation5 + $0x648] sm:$0xff]  ;;  %v6587_v43 = vcombine.high %v238_v35, %v242_v36  ;;  %v6586_v48 = vcombine.low %v238_v35, %v242_v36 }
 0x123   :  { %5117 = vmatpush1.bf16.msra.mxu1 %v6642_v54  ;;  %v370_v40 = vld [vmem:[#allocation5 + $0x668] sm:$0xff] }
 0x124   :  { %5118 = vmatprep.subr.bf16.mxu1 %v6763_v5  ;;  %v6715_v63 = vcombine.high %v366_v39, %v370_v40  ;;  %v230_v54 = vld [vmem:[#allocation5 + $0x208] sm:$0xff]  ;;  %v6714_v49 = vcombine.low %v366_v39, %v370_v40 }
 0x125   :  { %5078 = vmatpush2.bf16.msra.mxu0 %v6634_v51  ;;  %v234_v45 = vld [vmem:[#allocation5 + $0x228] sm:$0xff] }
 0x126   :  { %5079 = vmatprep.subr.bf16.mxu0 %v6627_v56  ;;  %v358_v5 = vld [vmem:[#allocation5 + $0x608] sm:$0xff]  ;;  %v6579_v50 = vcombine.high %v230_v54, %v234_v45  ;;  %v6578_v59 = vcombine.low %v230_v54, %v234_v45 }
 0x127   :  { %5119 = vmatpush2.bf16.msra.mxu1 %v6762_v52  ;;  %v362_v55 = vld [vmem:[#allocation5 + $0x628] sm:$0xff] }
 0x128   :  { %5120 = vmatprep.subr.bf16.mxu1 %v6755_v57  ;;  %v6707_v51 = vcombine.high %v358_v5, %v362_v55  ;;  %v478_v52 = vld [vmem:[#allocation5 + $0x9c8] sm:$0xff]  ;;  %v6706_v61 = vcombine.low %v358_v5, %v362_v55 }
 0x129   :  { %5080 = vmatpush2.bf16.msra.mxu0 %v6626_v62  ;;  %v482_v56 = vld [vmem:[#allocation5 + $0x9e8] sm:$0xff]  ;;  %v933_v62 = vld [vmem:[#allocation7] sm:$0xff] }
 0x12a   :  { %5081 = vmatprep.subr.bf16.mxu0 %v6619_v1  ;;  %v606_v57 = vld [vmem:[#allocation5 + $0xdc8] sm:$0xff] }
 0x12b   :  { %5121 = vmatpush2.bf16.msra.mxu1 %v6754_v0  ;;  %v610_v58 = vld [vmem:[#allocation5 + $0xde8] sm:$0xff]  ;;  %v6827_v0 = vcombine.high %v478_v52, %v482_v56 }
 0x12c   :  { %5122 = vmatprep.subr.bf16.mxu1 %v6747_v53  ;;  %v6955_v1 = vcombine.high %v606_v57, %v610_v58  ;;  %v941_v53 = vsub.s32 1, %v7698_v44  ;;  %v470_v4 = vld [vmem:[#allocation5 + $0x988] sm:$0xff] }
 0x12d   :  { %5082 = vmatpush2.bf16.msra.mxu0 %v6618_v9  ;;  %v474_v6 = vld [vmem:[#allocation5 + $0x9a8] sm:$0xff]  ;;  %v938_v9 = vrot.slane %v933_v62, %v937_v60 }
 0x12e   :  { %5083 = vmatprep.subr.bf16.mxu0 %v6611_v22  ;;  %v598_v7 = vld [vmem:[#allocation5 + $0xd88] sm:$0xff]  ;;  %v6954_v22 = vcombine.low %v606_v57, %v610_v58  ;;  %v942_v25 = vrot.slane %v933_v62, %v941_v53  ;;  %v6818_v26 = vcombine.low %v470_v4, %v474_v6 }
 0x12f   :  { %5123 = vmatpush2.bf16.msra.mxu1 %v6746_v10  ;;  %v602_v8 = vld [vmem:[#allocation5 + $0xda8] sm:$0xff]  ;;  %v6826_v10 = vcombine.low %v478_v52, %v482_v56 }
 0x130   :  { %5124 = vmatprep.subr.bf16.mxu1 %v6739_v13  ;;  %v6819_v13 = vcombine.high %v470_v4, %v474_v6  ;;  %v6947_v15 = vcombine.high %v598_v7, %v602_v8  ;;  %v462_v17 = vld [vmem:[#allocation5 + $0x948] sm:$0xff]  ;;  %v6946_v28 = vcombine.low %v598_v7, %v602_v8 }
 0x131   :  { %5084 = vmatpush2.bf16.msra.mxu0 %v6610_v19  ;;  %v466_v18 = vld [vmem:[#allocation5 + $0x968] sm:$0xff] }
 0x132   :  { %5085 = vmatprep.subr.bf16.mxu0 %v6603_v21  ;;  %v594_v21 = vld [vmem:[#allocation5 + $0xd68] sm:$0xff]  ;;  %v6810_v54 = vcombine.low %v462_v17, %v466_v18 }
 0x133   :  { %5125 = vmatpush2.bf16.msra.mxu1 %v6738_v20  ;;  %v590_v20 = vld [vmem:[#allocation5 + $0xd48] sm:$0xff] }
 0x134   :  { %5126 = vmatprep.subr.bf16.mxu1 %v6731_v23  ;;  %v6939_v35 = vcombine.high %v590_v20, %v594_v21  ;;  %v454_v36 = vld [vmem:[#allocation5 + $0x908] sm:$0xff]  ;;  %v6938_v5 = vcombine.low %v590_v20, %v594_v21 }
 0x135   :  { %5086 = vmatpush2.bf16.msra.mxu0 %v6602_v29  ;;  %v6811_v29 = vcombine.high %v462_v17, %v466_v18  ;;  %v458_v39 = vld [vmem:[#allocation5 + $0x928] sm:$0xff] }
 0x136   :  { %5087 = vmatprep.subr.bf16.mxu0 %v6595_v31  ;;  %v6803_v55 = vcombine.high %v454_v36, %v458_v39  ;;  %v574_v52 = vld [vmem:[#allocation5 + $0xcc8] sm:$0xff]  ;;  %v6802_v57 = vcombine.low %v454_v36, %v458_v39 }
 0x137   :  { %5127 = vmatpush2.bf16.msra.mxu1 %v6730_v30  ;;  %v578_v56 = vld [vmem:[#allocation5 + $0xce8] sm:$0xff] }
 0x138   :  { %5128 = vmatprep.subr.bf16.mxu1 %v6723_v32  ;;  %v6923_v60 = vcombine.high %v574_v52, %v578_v56  ;;  %v442_v62 = vld [vmem:[#allocation5 + $0x8a8] sm:$0xff]  ;;  %v6922_v4 = vcombine.low %v574_v52, %v578_v56 }
 0x139   :  { %5088 = vmatpush2.bf16.msra.mxu0 %v6594_v41  ;;  %v582_v41 = vld [vmem:[#allocation5 + $0xd08] sm:$0xff] }
 0x13a   :  { %5089 = vmatprep.subr.bf16.mxu0 %v6587_v43  ;;  %v430_v8 = vld [vmem:[#allocation5 + $0x848] sm:$0xff] }
 0x13b   :  { %5129 = vmatpush2.bf16.msra.mxu1 %v6722_v42  ;;  %v586_v42 = vld [vmem:[#allocation5 + $0xd28] sm:$0xff] }
 0x13c   :  { %5130 = vmatprep.subr.bf16.mxu1 %v6715_v63  ;;  %v6930_v58 = vcombine.low %v582_v41, %v586_v42  ;;  %v422_v18 = vld [vmem:[#allocation5 + $0x808] sm:$0xff] }
 0x13d   :  { %5090 = vmatpush2.bf16.msra.mxu0 %v6586_v48  ;;  %v550_v20 = vld [vmem:[#allocation5 + $0xc08] sm:$0xff] }
 0x13e   :  { %5091 = vmatprep.subr.bf16.mxu0 %v6579_v50  ;;  %v446_v50 = vld [vmem:[#allocation5 + $0x8c8] sm:$0xff] }
 0x13f   :  { %5131 = vmatpush2.bf16.msra.mxu1 %v6714_v49  ;;  %v6931_v49 = vcombine.high %v582_v41, %v586_v42  ;;  %v554_v21 = vld [vmem:[#allocation5 + $0xc28] sm:$0xff] }
 0x140   :  { %5132 = vmatprep.subr.bf16.mxu1 %v6707_v51  ;;  %v450_v51 = vld [vmem:[#allocation5 + $0x8e8] sm:$0xff]  ;;  %v6898_v36 = vcombine.low %v550_v20, %v554_v21 }
 0x141   :  { %5092 = vmatpush2.bf16.msra.mxu0 %v6578_v59  ;;  %v6795_v59 = vcombine.high %v446_v50, %v450_v51  ;;  %v6794_v53 = vcombine.low %v446_v50, %v450_v51  ;;  %v534_v41 = vld [vmem:[#allocation5 + $0xb88] sm:$0xff] }
 0x142   :  { %5143 = vmatprep.subr.bf16.mxu0 %v6827_v0  ;;  %v566_v0 = vld [vmem:[#allocation5 + $0xc88] sm:$0xff] }
 0x143   :  { %5133 = vmatpush2.bf16.msra.mxu1 %v6706_v61  ;;  %v438_v61 = vld [vmem:[#allocation5 + $0x888] sm:$0xff] }
 0x144   :  { %5184 = vmatprep.subr.bf16.mxu1 %v6955_v1  ;;  %v4849_v19 = vpop.f32.mrf.mxu0  ;;  %5094 = vmatmul.mubr.bf16.vlgmr.msra.gmra.mxu0 %v7729_v33  ;;  %v570_v1 = vld [vmem:[#allocation5 + $0xca8] sm:$0xff]  ;;  %v6787_v6 = vcombine.high %v438_v61, %v442_v62 }
 0x145   :  { %v4850_v23 = vadd.f32 %v4849_v19, %v938_v9  ;;  %5144 = vmatpush1.bf16.msra.mxu0 %v6826_v10  ;;  %5175 = vmatprep.mubr.bf16.mxu0 %v7737_v46  ;;  %v6915_v7 = vcombine.high %v566_v0, %v570_v1  ;;  %v434_v9 = vld [vmem:[#allocation5 + $0x868] sm:$0xff] }
 0x146   :  { %v4890_v24 = vpop.f32.mrf.mxu1  ;;  %5135 = vmatmul.mubr.bf16.vlgmr.msra.gmra.mxu1 %v7735_v37  ;;  %v4851_v27 = vpop.f32.mrf.mxu0  ;;  %5145 = vmatprep.subr.bf16.mxu0 %v6819_v13  ;;  %v558_v10 = vld [vmem:[#allocation5 + $0xc48] sm:$0xff]  ;;  %v6786_v13 = vcombine.low %v438_v61, %v442_v62 }
 0x147   :  { %5185 = vmatpush1.bf16.msra.mxu1 %v6954_v22  ;;  %v7787_v30 = vadd.f32 %v4890_v24, %v4850_v23  ;;  %v4852_v31 = vadd.f32 %v4851_v27, %v942_v25  ;;  %5216 = vmatprep.mubr.bf16.mxu1 %v7740_v47  ;;  %v562_v22 = vld [vmem:[#allocation5 + $0xc68] sm:$0xff]  ;;  %v6914_v25 = vcombine.low %v566_v0, %v570_v1 }
 0x148   :  { %v4892_v32 = vpop.f32.mrf.mxu1  ;;  %5186 = vmatprep.subr.bf16.mxu1 %v6947_v15  ;;  %v4853_v40 = vpop.f32.mrf.mxu0  ;;  %v6779_v15 = vcombine.high %v430_v8, %v434_v9  ;;  %v6907_v17 = vcombine.high %v558_v10, %v562_v22  ;;  %v426_v19 = vld [vmem:[#allocation5 + $0x828] sm:$0xff]  ;;  %v6778_v23 = vcombine.low %v430_v8, %v434_v9  ;;  %v6906_v24 = vcombine.low %v558_v10, %v562_v22 }
 0x149   :  { %v7791_v43 = vadd.f32 %v4892_v32, %v4852_v31  ;;  %5146 = vmatpush1.bf16.msra.mxu0 %v6818_v26  ;;  %v6771_v26 = vcombine.high %v422_v18, %v426_v19  ;;  %v6899_v27 = vcombine.high %v550_v20, %v554_v21  ;;  %v670_v31 = vld [vmem:[#allocation5 + $0xfc8] sm:$0xff] }
 0x14a   :  { %v4894_v63 = vpop.f32.mrf.mxu1  ;;  %v4854_v45 = vpop.f32.mrf.mxu0  ;;  %5147 = vmatprep.subr.bf16.mxu0 %v6811_v29  ;;  %v546_v29 = vld [vmem:[#allocation5 + $0xbe8] sm:$0xff] }
 0x14b   :  { %5187 = vmatpush1.bf16.msra.mxu1 %v6946_v28  ;;  %v542_v28 = vld [vmem:[#allocation5 + $0xbc8] sm:$0xff] }
 0x14c   :  { %v4895_v48 = vpop.f32.mrf.mxu1  ;;  %5188 = vmatprep.subr.bf16.mxu1 %v6939_v35  ;;  %v674_v32 = vld [vmem:[#allocation5 + $0xfe8] sm:$0xff]  ;;  %v6770_v35 = vcombine.low %v422_v18, %v426_v19  ;;  %v6891_v39 = vcombine.high %v542_v28, %v546_v29  ;;  %v6890_v45 = vcombine.low %v542_v28, %v546_v29 }
 0x14d   :  { %5148 = vmatpush1.bf16.msra.mxu0 %v6810_v54  ;;  %v7019_v40 = vcombine.high %v670_v31, %v674_v32  ;;  %v538_v42 = vld [vmem:[#allocation5 + $0xba8] sm:$0xff] }
 0x14e   :  { %5149 = vmatprep.subr.bf16.mxu0 %v6803_v55  ;;  %v662_v63 = vld [vmem:[#allocation5 + $0xf88] sm:$0xff]  ;;  %v6883_v55 = vcombine.high %v534_v41, %v538_v42  ;;  %v6882_v56 = vcombine.low %v534_v41, %v538_v42 }
 0x14f   :  { %5189 = vmatpush1.bf16.msra.mxu1 %v6938_v5  ;;  %v666_v54 = vld [vmem:[#allocation5 + $0xfa8] sm:$0xff]  ;;  %v7018_v5 = vcombine.low %v670_v31, %v674_v32 }
 0x150   :  { %5190 = vmatprep.subr.bf16.mxu1 %v6931_v49  ;;  %v7011_v48 = vcombine.high %v662_v63, %v666_v54  ;;  %v526_v49 = vld [vmem:[#allocation5 + $0xb48] sm:$0xff] }
 0x151   :  { %5150 = vmatpush1.bf16.msra.mxu0 %v6802_v57  ;;  %v530_v50 = vld [vmem:[#allocation5 + $0xb68] sm:$0xff]  ;;  %v7010_v57 = vcombine.low %v662_v63, %v666_v54 }
 0x152   :  { %5151 = vmatprep.subr.bf16.mxu0 %v6795_v59  ;;  %v654_v51 = vld [vmem:[#allocation5 + $0xf48] sm:$0xff]  ;;  %v6874_v1 = vcombine.low %v526_v49, %v530_v50 }
 0x153   :  { %5191 = vmatpush1.bf16.msra.mxu1 %v6930_v58  ;;  %v658_v52 = vld [vmem:[#allocation5 + $0xf68] sm:$0xff]  ;;  %v6875_v58 = vcombine.high %v526_v49, %v530_v50 }
 0x154   :  { %5192 = vmatprep.subr.bf16.mxu1 %v6923_v60  ;;  %v7003_v59 = vcombine.high %v654_v51, %v658_v52  ;;  %v518_v60 = vld [vmem:[#allocation5 + $0xb08] sm:$0xff] }
 0x155   :  { %5152 = vmatpush1.bf16.msra.mxu0 %v6794_v53  ;;  %v522_v61 = vld [vmem:[#allocation5 + $0xb28] sm:$0xff]  ;;  %v7002_v53 = vcombine.low %v654_v51, %v658_v52 }
 0x156   :  { %5153 = vmatprep.subr.bf16.mxu0 %v6787_v6  ;;  %v646_v62 = vld [vmem:[#allocation5 + $0xf08] sm:$0xff]  ;;  %v6866_v22 = vcombine.low %v518_v60, %v522_v61 }
 0x157   :  { %5193 = vmatpush1.bf16.msra.mxu1 %v6922_v4  ;;  %v650_v0 = vld [vmem:[#allocation5 + $0xf28] sm:$0xff]  ;;  %v6867_v4 = vcombine.high %v518_v60, %v522_v61 }
 0x158   :  { %5194 = vmatprep.subr.bf16.mxu1 %v6915_v7  ;;  %v6995_v6 = vcombine.high %v646_v62, %v650_v0  ;;  %v510_v7 = vld [vmem:[#allocation5 + $0xac8] sm:$0xff] }
 0x159   :  { %5154 = vmatpush1.bf16.msra.mxu0 %v6786_v13  ;;  %v514_v8 = vld [vmem:[#allocation5 + $0xae8] sm:$0xff]  ;;  %v6994_v13 = vcombine.low %v646_v62, %v650_v0 }
 0x15a   :  { %5155 = vmatprep.subr.bf16.mxu0 %v6779_v15  ;;  %v638_v9 = vld [vmem:[#allocation5 + $0xec8] sm:$0xff]  ;;  %v6858_v21 = vcombine.low %v510_v7, %v514_v8 }
 0x15b   :  { %5195 = vmatpush1.bf16.msra.mxu1 %v6914_v25  ;;  %v642_v10 = vld [vmem:[#allocation5 + $0xee8] sm:$0xff]  ;;  %v6859_v25 = vcombine.high %v510_v7, %v514_v8 }
 0x15c   :  { %5196 = vmatprep.subr.bf16.mxu1 %v6907_v17  ;;  %v6987_v15 = vcombine.high %v638_v9, %v642_v10  ;;  %v502_v17 = vld [vmem:[#allocation5 + $0xa88] sm:$0xff] }
 0x15d   :  { %5156 = vmatpush1.bf16.msra.mxu0 %v6778_v23  ;;  %v506_v18 = vld [vmem:[#allocation5 + $0xaa8] sm:$0xff]  ;;  %v6986_v23 = vcombine.low %v638_v9, %v642_v10 }
 0x15e   :  { %5157 = vmatprep.subr.bf16.mxu0 %v6771_v26  ;;  %v630_v19 = vld [vmem:[#allocation5 + $0xe88] sm:$0xff]  ;;  %v6850_v32 = vcombine.low %v502_v17, %v506_v18 }
 0x15f   :  { %5197 = vmatpush1.bf16.msra.mxu1 %v6906_v24  ;;  %v634_v20 = vld [vmem:[#allocation5 + $0xea8] sm:$0xff]  ;;  %v6851_v24 = vcombine.high %v502_v17, %v506_v18 }
 0x160   :  { %5198 = vmatprep.subr.bf16.mxu1 %v6899_v27  ;;  %v6979_v26 = vcombine.high %v630_v19, %v634_v20  ;;  %v494_v27 = vld [vmem:[#allocation5 + $0xa48] sm:$0xff] }
 0x161   :  { %5158 = vmatpush1.bf16.msra.mxu0 %v6770_v35  ;;  %v498_v28 = vld [vmem:[#allocation5 + $0xa68] sm:$0xff]  ;;  %v6978_v35 = vcombine.low %v630_v19, %v634_v20 }
 0x162   :  { %5159 = vmatprep.subr.bf16.mxu0 %v6891_v39  ;;  %v622_v29 = vld [vmem:[#allocation5 + $0xe48] sm:$0xff]  ;;  %v6842_v54 = vcombine.low %v494_v27, %v498_v28 }
 0x163   :  { %5199 = vmatpush1.bf16.msra.mxu1 %v6898_v36  ;;  %v626_v31 = vld [vmem:[#allocation5 + $0xe68] sm:$0xff]  ;;  %v6843_v36 = vcombine.high %v494_v27, %v498_v28 }
 0x164   :  { %5200 = vmatprep.subr.bf16.mxu1 %v7019_v40  ;;  %v6971_v39 = vcombine.high %v622_v29, %v626_v31  ;;  %v486_v40 = vld [vmem:[#allocation5 + $0xa08] sm:$0xff] }
 0x165   :  { %5160 = vmatpush2.bf16.msra.mxu0 %v6890_v45  ;;  %v490_v41 = vld [vmem:[#allocation5 + $0xa28] sm:$0xff]  ;;  %v6970_v45 = vcombine.low %v622_v29, %v626_v31 }
 0x166   :  { %5161 = vmatprep.subr.bf16.mxu0 %v6883_v55  ;;  %v614_v42 = vld [vmem:[#allocation5 + $0xe08] sm:$0xff]  ;;  %v6834_v52 = vcombine.low %v486_v40, %v490_v41 }
 0x167   :  { %5201 = vmatpush2.bf16.msra.mxu1 %v7018_v5  ;;  %v618_v63 = vld [vmem:[#allocation5 + $0xe28] sm:$0xff]  ;;  %v6835_v5 = vcombine.high %v486_v40, %v490_v41 }
 0x168   :  { %5202 = vmatprep.subr.bf16.mxu1 %v7011_v48  ;;  %v6963_v55 = vcombine.high %v614_v42, %v618_v63  ;;  %v734_v48 = vld [vmem:[#allocation5 + $0x11c8] sm:$0xff] }
 0x169   :  { %5162 = vmatpush2.bf16.msra.mxu0 %v6882_v56  ;;  %v738_v49 = vld [vmem:[#allocation5 + $0x11e8] sm:$0xff]  ;;  %v6962_v56 = vcombine.low %v614_v42, %v618_v63 }
 0x16a   :  { %5163 = vmatprep.subr.bf16.mxu0 %v6875_v58  ;;  %v862_v50 = vld [vmem:[#allocation5 + $0x15c8] sm:$0xff]  ;;  %v7082_v0 = vcombine.low %v734_v48, %v738_v49 }
 0x16b   :  { %5203 = vmatpush2.bf16.msra.mxu1 %v7010_v57  ;;  %v866_v51 = vld [vmem:[#allocation5 + $0x15e8] sm:$0xff]  ;;  %v7083_v57 = vcombine.high %v734_v48, %v738_v49 }
 0x16c   :  { %5204 = vmatprep.subr.bf16.mxu1 %v7003_v59  ;;  %v7211_v58 = vcombine.high %v862_v50, %v866_v51  ;;  %v726_v59 = vld [vmem:[#allocation5 + $0x1188] sm:$0xff] }
 0x16d   :  { %5164 = vmatpush2.bf16.msra.mxu0 %v6874_v1  ;;  %v730_v60 = vld [vmem:[#allocation5 + $0x11a8] sm:$0xff]  ;;  %v7210_v1 = vcombine.low %v862_v50, %v866_v51 }
 0x16e   :  { %5165 = vmatprep.subr.bf16.mxu0 %v6867_v4  ;;  %v854_v61 = vld [vmem:[#allocation5 + $0x1588] sm:$0xff] }
 0x16f   :  { %5205 = vmatpush2.bf16.msra.mxu1 %v7002_v53  ;;  %v858_v62 = vld [vmem:[#allocation5 + $0x15a8] sm:$0xff]  ;;  %v7075_v53 = vcombine.high %v726_v59, %v730_v60 }
 0x170   :  { %5206 = vmatprep.subr.bf16.mxu1 %v6995_v6  ;;  %v7203_v4 = vcombine.high %v854_v61, %v858_v62  ;;  %v718_v6 = vld [vmem:[#allocation5 + $0x1148] sm:$0xff]  ;;  %v7202_v17 = vcombine.low %v854_v61, %v858_v62 }
 0x171   :  { %5166 = vmatpush2.bf16.msra.mxu0 %v6866_v22  ;;  %v722_v7 = vld [vmem:[#allocation5 + $0x1168] sm:$0xff] }
 0x172   :  { %5167 = vmatprep.subr.bf16.mxu0 %v6859_v25  ;;  %v846_v9 = vld [vmem:[#allocation5 + $0x1548] sm:$0xff]  ;;  %v7074_v25 = vcombine.low %v726_v59, %v730_v60  ;;  %v7067_v18 = vcombine.high %v718_v6, %v722_v7 }
 0x173   :  { %5207 = vmatpush2.bf16.msra.mxu1 %v6994_v13  ;;  %v850_v10 = vld [vmem:[#allocation5 + $0x1568] sm:$0xff] }
 0x174   :  { %5208 = vmatprep.subr.bf16.mxu1 %v6987_v15  ;;  %v838_v27 = vld [vmem:[#allocation5 + $0x1508] sm:$0xff] }
 0x175   :  { %5168 = vmatpush2.bf16.msra.mxu0 %v6858_v21  ;;  %v842_v28 = vld [vmem:[#allocation5 + $0x1528] sm:$0xff] }
 0x176   :  { %5169 = vmatprep.subr.bf16.mxu0 %v6851_v24  ;;  %v710_v24 = vld [vmem:[#allocation5 + $0x1108] sm:$0xff]  ;;  %v7187_v40 = vcombine.high %v838_v27, %v842_v28 }
 0x177   :  { %5209 = vmatpush2.bf16.msra.mxu1 %v6986_v23  ;;  %v7195_v23 = vcombine.high %v846_v9, %v850_v10  ;;  %v702_v41 = vld [vmem:[#allocation5 + $0x10c8] sm:$0xff] }
 0x178   :  { %5210 = vmatprep.subr.bf16.mxu1 %v6979_v26  ;;  %v714_v26 = vld [vmem:[#allocation5 + $0x1128] sm:$0xff] }
 0x179   :  { %5170 = vmatpush2.bf16.msra.mxu0 %v6850_v32  ;;  %v7066_v32 = vcombine.low %v718_v6, %v722_v7  ;;  %v706_v42 = vld [vmem:[#allocation5 + $0x10e8] sm:$0xff] }
 0x17a   :  { %5171 = vmatprep.subr.bf16.mxu0 %v6843_v36  ;;  %v7059_v36 = vcombine.high %v710_v24, %v714_v26  ;;  %v830_v63 = vld [vmem:[#allocation5 + $0x14c8] sm:$0xff] }
 0x17b   :  { %5211 = vmatpush2.bf16.msra.mxu1 %v6978_v35  ;;  %v694_v49 = vld [vmem:[#allocation5 + $0x1088] sm:$0xff] }
 0x17c   :  { %5212 = vmatprep.subr.bf16.mxu1 %v6971_v39  ;;  %v698_v50 = vld [vmem:[#allocation5 + $0x10a8] sm:$0xff] }
 0x17d   :  { %5172 = vmatpush2.bf16.msra.mxu0 %v6842_v54  ;;  %v834_v54 = vld [vmem:[#allocation5 + $0x14e8] sm:$0xff] }
 0x17e   :  { %5173 = vmatprep.subr.bf16.mxu0 %v6835_v5  ;;  %v7186_v5 = vcombine.low %v838_v27, %v842_v28  ;;  %v7179_v48 = vcombine.high %v830_v63, %v834_v54  ;;  %v822_v51 = vld [vmem:[#allocation5 + $0x1488] sm:$0xff] }
 0x17f   :  { %5213 = vmatpush2.bf16.msra.mxu1 %v6970_v45  ;;  %v7058_v45 = vcombine.low %v710_v24, %v714_v26  ;;  %v686_v60 = vld [vmem:[#allocation5 + $0x1048] sm:$0xff] }
 0x180   :  { %5214 = vmatprep.subr.bf16.mxu1 %v6963_v55  ;;  %v7051_v55 = vcombine.high %v702_v41, %v706_v42  ;;  %v690_v61 = vld [vmem:[#allocation5 + $0x1068] sm:$0xff] }
 0x181   :  { %5174 = vmatpush2.bf16.msra.mxu0 %v6834_v52  ;;  %v826_v52 = vld [vmem:[#allocation5 + $0x14a8] sm:$0xff] }
 0x182   :  { %5225 = vmatprep.subr.bf16.mxu0 %v7083_v57  ;;  %v7178_v57 = vcombine.low %v830_v63, %v834_v54  ;;  %v7171_v59 = vcombine.high %v822_v51, %v826_v52  ;;  %v814_v62 = vld [vmem:[#allocation5 + $0x1448] sm:$0xff] }
 0x183   :  { %5215 = vmatpush2.bf16.msra.mxu1 %v6962_v56  ;;  %v7050_v56 = vcombine.low %v702_v41, %v706_v42  ;;  %v678_v7 = vld [vmem:[#allocation5 + $0x1008] sm:$0xff] }
 0x184   :  { %5266 = vmatprep.subr.bf16.mxu1 %v7211_v58  ;;  %v4931_v8 = vpop.f32.mrf.mxu0  ;;  %5176 = vmatmul.mubr.bf16.vlgmr.msra.gmra.mxu0 %v7755_v2  ;;  %v7043_v58 = vcombine.high %v694_v49, %v698_v50  ;;  %v790_v27 = vld [vmem:[#allocation5 + $0x1388] sm:$0xff] }
 0x185   :  { %v4932_v22 = vadd.f32 %v4931_v8, %v7787_v30  ;;  %5226 = vmatpush1.bf16.msra.mxu0 %v7082_v0  ;;  %5257 = vmatprep.mubr.bf16.mxu0 %v7763_v12  ;;  %v818_v0 = vld [vmem:[#allocation5 + $0x1468] sm:$0xff] }
 0x186   :  { %v4972_v13 = vpop.f32.mrf.mxu1  ;;  %5217 = vmatmul.mubr.bf16.vlgmr.msra.gmra.mxu1 %v7761_v3  ;;  %v4933_v15 = vpop.f32.mrf.mxu0  ;;  %5227 = vmatprep.subr.bf16.mxu0 %v7075_v53  ;;  %v7170_v53 = vcombine.low %v822_v51, %v826_v52  ;;  %v7163_v6 = vcombine.high %v814_v62, %v818_v0  ;;  %v682_v8 = vld [vmem:[#allocation5 + $0x1028] sm:$0xff] }
 0x187   :  { %5267 = vmatpush1.bf16.msra.mxu1 %v7210_v1  ;;  %v7796_v19 = vadd.f32 %v4972_v13, %v4932_v22  ;;  %v4934_v20 = vadd.f32 %v4933_v15, %v7791_v43  ;;  %5298 = vmatprep.mubr.bf16.mxu1 %v7766_v14  ;;  %v7194_v43 = vcombine.low %v846_v9, %v850_v10  ;;  %v806_v9 = vld [vmem:[#allocation5 + $0x1408] sm:$0xff] }
 0x188   :  { %v4974_v21 = vpop.f32.mrf.mxu1  ;;  %5268 = vmatprep.subr.bf16.mxu1 %v7203_v4  ;;  %v4935_v30 = vpop.f32.mrf.mxu0  ;;  %v7042_v1 = vcombine.low %v694_v49, %v698_v50  ;;  %v7035_v4 = vcombine.high %v686_v60, %v690_v61  ;;  %v810_v10 = vld [vmem:[#allocation5 + $0x1428] sm:$0xff]  ;;  %v7034_v22 = vcombine.low %v686_v60, %v690_v61  ;;  %v7162_v13 = vcombine.low %v814_v62, %v818_v0 }
 0x189   :  { %v7801_v29 = vadd.f32 %v4974_v21, %v4934_v20  ;;  %5228 = vmatpush1.bf16.msra.mxu0 %v7074_v25  ;;  %v7027_v25 = vcombine.high %v678_v7, %v682_v8  ;;  %v7155_v15 = vcombine.high %v806_v9, %v810_v10  ;;  %v926_v20 = vld [vmem:[#allocation5 + $0x17c8] sm:$0xff]  ;;  %v7154_v24 = vcombine.low %v806_v9, %v810_v10 }
 0x18a   :  { %v4976_v31 = vpop.f32.mrf.mxu1  ;;  %v4936_v35 = vpop.f32.mrf.mxu0  ;;  %5229 = vmatprep.subr.bf16.mxu0 %v7067_v18  ;;  %v802_v18 = vld [vmem:[#allocation5 + $0x13e8] sm:$0xff] }
 0x18b   :  { %5269 = vmatpush1.bf16.msra.mxu1 %v7202_v17  ;;  %v798_v17 = vld [vmem:[#allocation5 + $0x13c8] sm:$0xff] }
 0x18c   :  { %v4977_v39 = vpop.f32.mrf.mxu1  ;;  %5270 = vmatprep.subr.bf16.mxu1 %v7195_v23  ;;  %v930_v21 = vld [vmem:[#allocation5 + $0x17e8] sm:$0xff]  ;;  %v7026_v23 = vcombine.low %v678_v7, %v682_v8  ;;  %v7147_v26 = vcombine.high %v798_v17, %v802_v18  ;;  %v7146_v35 = vcombine.low %v798_v17, %v802_v18 }
 0x18d   :  { %5230 = vmatpush1.bf16.msra.mxu0 %v7066_v32  ;;  %v7275_v30 = vcombine.high %v926_v20, %v930_v21  ;;  %v794_v28 = vld [vmem:[#allocation5 + $0x13a8] sm:$0xff] }
 0x18e   :  { %5231 = vmatprep.subr.bf16.mxu0 %v7059_v36  ;;  %v918_v31 = vld [vmem:[#allocation5 + $0x1788] sm:$0xff]  ;;  %v7139_v36 = vcombine.high %v790_v27, %v794_v28  ;;  %v7138_v54 = vcombine.low %v790_v27, %v794_v28 }
 0x18f   :  { %5271 = vmatpush1.bf16.msra.mxu1 %v7194_v43  ;;  %v922_v32 = vld [vmem:[#allocation5 + $0x17a8] sm:$0xff]  ;;  %v7274_v43 = vcombine.low %v926_v20, %v930_v21 }
 0x190   :  { %5272 = vmatprep.subr.bf16.mxu1 %v7187_v40  ;;  %v7267_v39 = vcombine.high %v918_v31, %v922_v32  ;;  %v782_v40 = vld [vmem:[#allocation5 + $0x1348] sm:$0xff] }
 0x191   :  { %5232 = vmatpush1.bf16.msra.mxu0 %v7058_v45  ;;  %v786_v41 = vld [vmem:[#allocation5 + $0x1368] sm:$0xff]  ;;  %v7266_v45 = vcombine.low %v918_v31, %v922_v32 }
 0x192   :  { %5233 = vmatprep.subr.bf16.mxu0 %v7051_v55  ;;  %v910_v42 = vld [vmem:[#allocation5 + $0x1748] sm:$0xff]  ;;  %v7130_v52 = vcombine.low %v782_v40, %v786_v41 }
 0x193   :  { %5273 = vmatpush1.bf16.msra.mxu1 %v7186_v5  ;;  %v914_v63 = vld [vmem:[#allocation5 + $0x1768] sm:$0xff]  ;;  %v7131_v5 = vcombine.high %v782_v40, %v786_v41  ;;  %v227_v40 = vld [vmem:[#allocation5 + $0x1f0] sm:$0xff] }
 0x194   :  { %5274 = vmatprep.subr.bf16.mxu1 %v7179_v48  ;;  %v7259_v55 = vcombine.high %v910_v42, %v914_v63  ;;  %v774_v48 = vld [vmem:[#allocation5 + $0x1308] sm:$0xff]  ;;  %v351_v41 = vld [vmem:[#allocation5 + $0x5d0] sm:$0xff] }
 0x195   :  { %5234 = vmatpush1.bf16.msra.mxu0 %v7050_v56  ;;  %v778_v49 = vld [vmem:[#allocation5 + $0x1328] sm:$0xff]  ;;  %v7258_v56 = vcombine.low %v910_v42, %v914_v63  ;;  %v355_v42 = vld [vmem:[#allocation5 + $0x5f0] sm:$0xff] }
 0x196   :  { %5235 = vmatprep.subr.bf16.mxu0 %v7043_v58  ;;  %v902_v50 = vld [vmem:[#allocation5 + $0x1708] sm:$0xff]  ;;  %v7122_v0 = vcombine.low %v774_v48, %v778_v49 }
 0x197   :  { %5275 = vmatpush1.bf16.msra.mxu1 %v7178_v57  ;;  %v906_v51 = vld [vmem:[#allocation5 + $0x1728] sm:$0xff]  ;;  %v7123_v57 = vcombine.high %v774_v48, %v778_v49  ;;  %v219_v48 = vld [vmem:[#allocation5 + $0x1b0] sm:$0xff] }
 0x198   :  { %5276 = vmatprep.subr.bf16.mxu1 %v7171_v59  ;;  %v7251_v58 = vcombine.high %v902_v50, %v906_v51  ;;  %v766_v59 = vld [vmem:[#allocation5 + $0x12c8] sm:$0xff]  ;;  %v343_v49 = vld [vmem:[#allocation5 + $0x590] sm:$0xff] }
 0x199   :  { %5236 = vmatpush1.bf16.msra.mxu0 %v7042_v1  ;;  %v770_v60 = vld [vmem:[#allocation5 + $0x12e8] sm:$0xff]  ;;  %v7250_v1 = vcombine.low %v902_v50, %v906_v51  ;;  %v347_v50 = vld [vmem:[#allocation5 + $0x5b0] sm:$0xff] }
 0x19a   :  { %5237 = vmatprep.subr.bf16.mxu0 %v7035_v4  ;;  %v894_v61 = vld [vmem:[#allocation5 + $0x16c8] sm:$0xff]  ;;  %v7114_v10 = vcombine.low %v766_v59, %v770_v60 }
 0x19b   :  { %5277 = vmatpush1.bf16.msra.mxu1 %v7170_v53  ;;  %v898_v62 = vld [vmem:[#allocation5 + $0x16e8] sm:$0xff]  ;;  %v7115_v53 = vcombine.high %v766_v59, %v770_v60  ;;  %v211_v59 = vld [vmem:[#allocation5 + $0x170] sm:$0xff] }
 0x19c   :  { %5278 = vmatprep.subr.bf16.mxu1 %v7163_v6  ;;  %v7243_v4 = vcombine.high %v894_v61, %v898_v62  ;;  %v758_v6 = vld [vmem:[#allocation5 + $0x1288] sm:$0xff] }
 0x19d   :  { %5238 = vmatpush1.bf16.msra.mxu0 %v7034_v22  ;;  %v762_v7 = vld [vmem:[#allocation5 + $0x12a8] sm:$0xff]  ;;  %v7242_v22 = vcombine.low %v894_v61, %v898_v62  ;;  %v335_v61 = vld [vmem:[#allocation5 + $0x550] sm:$0xff] }
 0x19e   :  { %5239 = vmatprep.subr.bf16.mxu0 %v7027_v25  ;;  %v886_v8 = vld [vmem:[#allocation5 + $0x1688] sm:$0xff]  ;;  %v7106_v21 = vcombine.low %v758_v6, %v762_v7  ;;  %v339_v62 = vld [vmem:[#allocation5 + $0x570] sm:$0xff] }
 0x19f   :  { %5279 = vmatpush1.bf16.msra.mxu1 %v7162_v13  ;;  %v890_v9 = vld [vmem:[#allocation5 + $0x16a8] sm:$0xff]  ;;  %v7107_v13 = vcombine.high %v758_v6, %v762_v7  ;;  %v6692_v6 = vcombine.low %v343_v49, %v347_v50 }
 0x1a0   :  { %5280 = vmatprep.subr.bf16.mxu1 %v7155_v15  ;;  %v7235_v25 = vcombine.high %v886_v8, %v890_v9  ;;  %v750_v15 = vld [vmem:[#allocation5 + $0x1248] sm:$0xff] }
 0x1a1   :  { %5240 = vmatpush1.bf16.msra.mxu0 %v7026_v23  ;;  %v754_v17 = vld [vmem:[#allocation5 + $0x1268] sm:$0xff]  ;;  %v7234_v23 = vcombine.low %v886_v8, %v890_v9 }
 0x1a2   :  { %5241 = vmatprep.subr.bf16.mxu0 %v7147_v26  ;;  %v878_v18 = vld [vmem:[#allocation5 + $0x1648] sm:$0xff]  ;;  %v7098_v32 = vcombine.low %v750_v15, %v754_v17 }
 0x1a3   :  { %5281 = vmatpush1.bf16.msra.mxu1 %v7154_v24  ;;  %v882_v20 = vld [vmem:[#allocation5 + $0x1668] sm:$0xff]  ;;  %v7099_v24 = vcombine.high %v750_v15, %v754_v17  ;;  %v327_v15 = vld [vmem:[#allocation5 + $0x510] sm:$0xff] }
 0x1a4   :  { %5282 = vmatprep.subr.bf16.mxu1 %v7275_v30  ;;  %v7227_v26 = vcombine.high %v878_v18, %v882_v20  ;;  %v742_v30 = vld [vmem:[#allocation5 + $0x1208] sm:$0xff]  ;;  %v331_v17 = vld [vmem:[#allocation5 + $0x530] sm:$0xff] }
 0x1a5   :  { %5242 = vmatpush2.bf16.msra.mxu0 %v7146_v35  ;;  %v746_v27 = vld [vmem:[#allocation5 + $0x1228] sm:$0xff]  ;;  %v7226_v35 = vcombine.low %v878_v18, %v882_v20 }
 0x1a6   :  { %5243 = vmatprep.subr.bf16.mxu0 %v7139_v36  ;;  %v870_v28 = vld [vmem:[#allocation5 + $0x1608] sm:$0xff]  ;;  %v7090_v63 = vcombine.low %v742_v30, %v746_v27 }
 0x1a7   :  { %5283 = vmatpush2.bf16.msra.mxu1 %v7274_v43  ;;  %v874_v31 = vld [vmem:[#allocation5 + $0x1628] sm:$0xff]  ;;  %v7091_v43 = vcombine.high %v742_v30, %v746_v27  ;;  %v6677_v30 = vcombine.high %v327_v15, %v331_v17  ;;  %v191_v27 = vld [vmem:[#allocation5 + $0xd0] sm:$0xff] }
 0x1a8   :  { %5284 = vmatprep.subr.bf16.mxu1 %v7267_v39  ;;  %v7219_v36 = vcombine.high %v870_v28, %v874_v31  ;;  %v223_v39 = vld [vmem:[#allocation5 + $0x1d0] sm:$0xff] }
 0x1a9   :  { %5244 = vmatpush2.bf16.msra.mxu0 %v7138_v54  ;;  %v7218_v54 = vcombine.low %v870_v28, %v874_v31  ;;  %v6572_v51 = vcombine.low %v223_v39, %v227_v40  ;;  %v195_v28 = vld [vmem:[#allocation5 + $0xf0] sm:$0xff] }
 0x1aa   :  { %5245 = vmatprep.subr.bf16.mxu0 %v7131_v5  ;;  %v6701_v5 = vcombine.high %v351_v41, %v355_v42  ;;  %v319_v31 = vld [vmem:[#allocation5 + $0x4d0] sm:$0xff] }
 0x1ab   :  { %5285 = vmatpush2.bf16.msra.mxu1 %v7266_v45  ;;  %v6573_v45 = vcombine.high %v223_v39, %v227_v40  ;;  %v183_v40 = vld [vmem:[#allocation5 + $0x90] sm:$0xff] }
 0x1ac   :  { %5286 = vmatprep.subr.bf16.mxu1 %v7259_v55  ;;  %v215_v55 = vld [vmem:[#allocation5 + $0x190] sm:$0xff] }
 0x1ad   :  { %5246 = vmatpush2.bf16.msra.mxu0 %v7130_v52  ;;  %v6700_v52 = vcombine.low %v351_v41, %v355_v42  ;;  %v187_v41 = vld [vmem:[#allocation5 + $0xb0] sm:$0xff] }
 0x1ae   :  { %5247 = vmatprep.subr.bf16.mxu0 %v7123_v57  ;;  %v6693_v57 = vcombine.high %v343_v49, %v347_v50  ;;  %v311_v42 = vld [vmem:[#allocation5 + $0x490] sm:$0xff] }
 0x1af   :  { %5287 = vmatpush2.bf16.msra.mxu1 %v7258_v56  ;;  %v6565_v56 = vcombine.high %v215_v55, %v219_v48  ;;  %v179_v49 = vld [vmem:[#allocation5 + $0x70] sm:$0xff] }
 0x1b0   :  { %5288 = vmatprep.subr.bf16.mxu1 %v7251_v58  ;;  %v207_v58 = vld [vmem:[#allocation5 + $0x150] sm:$0xff] }
 0x1b1   :  { %5248 = vmatpush2.bf16.msra.mxu0 %v7122_v0  ;;  %v6557_v7 = vcombine.high %v207_v58, %v211_v59  ;;  %v303_v50 = vld [vmem:[#allocation5 + $0x450] sm:$0xff] }
 0x1b2   :  { %5249 = vmatprep.subr.bf16.mxu0 %v7115_v53  ;;  %v6564_v53 = vcombine.low %v215_v55, %v219_v48  ;;  %v175_v48 = vld [vmem:[#allocation5 + $0x50] sm:$0xff] }
 0x1b3   :  { %5289 = vmatpush2.bf16.msra.mxu1 %v7250_v1 }
 0x1b4   :  { %5290 = vmatprep.subr.bf16.mxu1 %v7243_v4 }
 0x1b5   :  { %5250 = vmatpush2.bf16.msra.mxu0 %v7114_v10 }
 0x1b6   :  { %5251 = vmatprep.subr.bf16.mxu0 %v7107_v13  ;;  %v199_v13 = vld [vmem:[#allocation5 + $0x110] sm:$0xff] }
 0x1b7   :  { %5291 = vmatpush2.bf16.msra.mxu1 %v7242_v22  ;;  %v6685_v22 = vcombine.high %v335_v61, %v339_v62 }
 0x1b8   :  { %5292 = vmatprep.subr.bf16.mxu1 %v7235_v25  ;;  %v203_v25 = vld [vmem:[#allocation5 + $0x130] sm:$0xff] }
 0x1b9   :  { %5252 = vmatpush2.bf16.msra.mxu0 %v7106_v21  ;;  %v6556_v21 = vcombine.low %v207_v58, %v211_v59  ;;  %v167_v59 = vld [vmem:[#allocation5 + $0x10] sm:$0xff] }
 0x1ba   :  { %5253 = vmatprep.subr.bf16.mxu0 %v7099_v24  ;;  %v6549_v24 = vcombine.high %v199_v13, %v203_v25 }
 0x1bb   :  { %5293 = vmatpush2.bf16.msra.mxu1 %v7234_v23 }
 0x1bc   :  { %5294 = vmatprep.subr.bf16.mxu1 %v7227_v26 }
 0x1bd   :  { %5254 = vmatpush2.bf16.msra.mxu0 %v7098_v32  ;;  %v323_v32 = vld [vmem:[#allocation5 + $0x4f0] sm:$0xff] }
 0x1be   :  { %5255 = vmatprep.subr.bf16.mxu0 %v7091_v43  ;;  %v6676_v43 = vcombine.low %v327_v15, %v331_v17  ;;  %v6669_v39 = vcombine.high %v319_v31, %v323_v32  ;;  %v279_v15 = vld [vmem:[#allocation5 + $0x390] sm:$0xff] }
 0x1bf   :  { %5295 = vmatpush2.bf16.msra.mxu1 %v7226_v35  ;;  %v6548_v35 = vcombine.low %v199_v13, %v203_v25  ;;  %v283_v17 = vld [vmem:[#allocation5 + $0x3b0] sm:$0xff] }
 0x1c0   :  { %5296 = vmatprep.subr.bf16.mxu1 %v7219_v36  ;;  %v6541_v36 = vcombine.high %v191_v27, %v195_v28 }
 0x1c1   :  { %5256 = vmatpush2.bf16.msra.mxu0 %v7090_v63  ;;  %v315_v63 = vld [vmem:[#allocation5 + $0x4b0] sm:$0xff] }
 0x1c2   :  { %5307 = vmatprep.subr.bf16.mxu0 %v6573_v45  ;;  %v6668_v45 = vcombine.low %v319_v31, %v323_v32  ;;  %v6661_v55 = vcombine.high %v311_v42, %v315_v63  ;;  %v403_v31 = vld [vmem:[#allocation5 + $0x770] sm:$0xff]  ;;  %v6628_v32 = vcombine.low %v279_v15, %v283_v17 }
 0x1c3   :  { %5297 = vmatpush2.bf16.msra.mxu1 %v7218_v54  ;;  %v6540_v54 = vcombine.low %v191_v27, %v195_v28  ;;  %v275_v27 = vld [vmem:[#allocation5 + $0x370] sm:$0xff] }
 0x1c4   :  { %5348 = vmatprep.subr.bf16.mxu1 %v6701_v5  ;;  %v5013_v60 = vpop.f32.mrf.mxu0  ;;  %5258 = vmatmul.mubr.bf16.vlgmr.msra.gmra.mxu0 %v7773_v34  ;;  %v6533_v5 = vcombine.high %v183_v40, %v187_v41  ;;  %v399_v28 = vld [vmem:[#allocation5 + $0x750] sm:$0xff] }
 0x1c5   :  { %v5014_v0 = vadd.f32 %v5013_v60, %v7796_v19  ;;  %5308 = vmatpush1.bf16.msra.mxu0 %v6572_v51  ;;  %5339 = vmatprep.mubr.bf16.mxu0 %v7711_v11  ;;  %v307_v51 = vld [vmem:[#allocation5 + $0x470] sm:$0xff] }
 0x1c6   :  { %v5054_v1 = vpop.f32.mrf.mxu1  ;;  %5299 = vmatmul.mubr.bf16.vlgmr.msra.gmra.mxu1 %v7777_v38  ;;  %v5015_v4 = vpop.f32.mrf.mxu0  ;;  %5309 = vmatprep.subr.bf16.mxu0 %v6565_v56  ;;  %v6660_v56 = vcombine.low %v311_v42, %v315_v63  ;;  %v6653_v58 = vcombine.high %v303_v50, %v307_v51  ;;  %v171_v60 = vld [vmem:[#allocation5 + $0x30] sm:$0xff] }
 0x1c7   :  { %5349 = vmatpush1.bf16.msra.mxu1 %v6700_v52  ;;  %v7806_v8 = vadd.f32 %v5054_v1, %v5014_v0  ;;  %v5016_v9 = vadd.f32 %v5015_v4, %v7801_v29  ;;  %5380 = vmatprep.mubr.bf16.mxu1 %v7716_v16  ;;  %v6684_v29 = vcombine.low %v335_v61, %v339_v62  ;;  %v295_v61 = vld [vmem:[#allocation5 + $0x410] sm:$0xff] }
 0x1c8   :  { %v5056_v10 = vpop.f32.mrf.mxu1  ;;  %5350 = vmatprep.subr.bf16.mxu1 %v6693_v57  ;;  %v5017_v19 = vpop.f32.mrf.mxu0  ;;  %v6532_v52 = vcombine.low %v183_v40, %v187_v41  ;;  %v6525_v57 = vcombine.high %v175_v48, %v179_v49  ;;  %v299_v62 = vld [vmem:[#allocation5 + $0x430] sm:$0xff]  ;;  %v6524_v0 = vcombine.low %v175_v48, %v179_v49  ;;  %v6652_v1 = vcombine.low %v303_v50, %v307_v51 }
 0x1c9   :  { %v7811_v18 = vadd.f32 %v5056_v10, %v5016_v9  ;;  %5310 = vmatpush1.bf16.msra.mxu0 %v6564_v53  ;;  %v6517_v53 = vcombine.high %v167_v59, %v171_v60  ;;  %v6645_v4 = vcombine.high %v295_v61, %v299_v62  ;;  %v415_v9 = vld [vmem:[#allocation5 + $0x7d0] sm:$0xff]  ;;  %v6644_v13 = vcombine.low %v295_v61, %v299_v62 }
 0x1ca   :  { %v5058_v20 = vpop.f32.mrf.mxu1  ;;  %v5018_v23 = vpop.f32.mrf.mxu0  ;;  %5311 = vmatprep.subr.bf16.mxu0 %v6557_v7  ;;  %v291_v7 = vld [vmem:[#allocation5 + $0x3f0] sm:$0xff] }
 0x1cb   :  { %5351 = vmatpush1.bf16.msra.mxu1 %v6692_v6  ;;  %v287_v6 = vld [vmem:[#allocation5 + $0x3d0] sm:$0xff] }
 0x1cc   :  { %v5059_v26 = vpop.f32.mrf.mxu1  ;;  %5352 = vmatprep.subr.bf16.mxu1 %v6685_v22  ;;  %v419_v10 = vld [vmem:[#allocation5 + $0x7f0] sm:$0xff]  ;;  %v6516_v22 = vcombine.low %v167_v59, %v171_v60  ;;  %v6637_v25 = vcombine.high %v287_v6, %v291_v7  ;;  %v6636_v23 = vcombine.low %v287_v6, %v291_v7 }
 0x1cd   :  { %5312 = vmatpush1.bf16.msra.mxu0 %v6556_v21  ;;  %v6765_v19 = vcombine.high %v415_v9, %v419_v10  ;;  %v407_v20 = vld [vmem:[#allocation5 + $0x790] sm:$0xff] }
 0x1ce   :  { %5313 = vmatprep.subr.bf16.mxu0 %v6549_v24  ;;  %v411_v21 = vld [vmem:[#allocation5 + $0x7b0] sm:$0xff]  ;;  %v6629_v24 = vcombine.high %v279_v15, %v283_v17 }
 0x1cf   :  { %5353 = vmatpush1.bf16.msra.mxu1 %v6684_v29  ;;  %v6764_v29 = vcombine.low %v415_v9, %v419_v10  ;;  %v6757_v26 = vcombine.high %v407_v20, %v411_v21  ;;  %v267_v40 = vld [vmem:[#allocation5 + $0x330] sm:$0xff] }
 0x1d0   :  { %5354 = vmatprep.subr.bf16.mxu1 %v6677_v30  ;;  %v271_v30 = vld [vmem:[#allocation5 + $0x350] sm:$0xff] }
 0x1d1   :  { %5314 = vmatpush1.bf16.msra.mxu0 %v6548_v35  ;;  %v6756_v35 = vcombine.low %v407_v20, %v411_v21  ;;  %v391_v41 = vld [vmem:[#allocation5 + $0x710] sm:$0xff]  ;;  %v6620_v63 = vcombine.low %v271_v30, %v275_v27 }
 0x1d2   :  { %5315 = vmatprep.subr.bf16.mxu0 %v6541_v36  ;;  %v6749_v36 = vcombine.high %v399_v28, %v403_v31  ;;  %v395_v42 = vld [vmem:[#allocation5 + $0x730] sm:$0xff] }
 0x1d3   :  { %5355 = vmatpush1.bf16.msra.mxu1 %v6676_v43  ;;  %v6621_v43 = vcombine.high %v271_v30, %v275_v27  ;;  %v259_v48 = vld [vmem:[#allocation5 + $0x2f0] sm:$0xff] }
 0x1d4   :  { %5356 = vmatprep.subr.bf16.mxu1 %v6669_v39  ;;  %v263_v39 = vld [vmem:[#allocation5 + $0x310] sm:$0xff] }
 0x1d5   :  { %5316 = vmatpush1.bf16.msra.mxu0 %v6540_v54  ;;  %v6748_v54 = vcombine.low %v399_v28, %v403_v31  ;;  %v383_v49 = vld [vmem:[#allocation5 + $0x6d0] sm:$0xff]  ;;  %v6612_v51 = vcombine.low %v263_v39, %v267_v40 }
 0x1d6   :  { %5317 = vmatprep.subr.bf16.mxu0 %v6533_v5  ;;  %v6741_v5 = vcombine.high %v391_v41, %v395_v42  ;;  %v387_v50 = vld [vmem:[#allocation5 + $0x6f0] sm:$0xff] }
 0x1d7   :  { %5357 = vmatpush1.bf16.msra.mxu1 %v6668_v45  ;;  %v6613_v45 = vcombine.high %v263_v39, %v267_v40  ;;  %v251_v59 = vld [vmem:[#allocation5 + $0x2b0] sm:$0xff]  ;;  %v949_v39 = vsub.s32 3, %v7698_v44 }
 0x1d8   :  { %5358 = vmatprep.subr.bf16.mxu1 %v6661_v55  ;;  %v255_v55 = vld [vmem:[#allocation5 + $0x2d0] sm:$0xff] }
 0x1d9   :  { %5318 = vmatpush1.bf16.msra.mxu0 %v6532_v52  ;;  %v6740_v52 = vcombine.low %v391_v41, %v395_v42  ;;  %v375_v60 = vld [vmem:[#allocation5 + $0x690] sm:$0xff]  ;;  %v6604_v62 = vcombine.low %v255_v55, %v259_v48 }
 0x1da   :  { %5319 = vmatprep.subr.bf16.mxu0 %v6525_v57  ;;  %v6733_v57 = vcombine.high %v383_v49, %v387_v50  ;;  %v379_v61 = vld [vmem:[#allocation5 + $0x6b0] sm:$0xff] }
 0x1db   :  { %5359 = vmatpush1.bf16.msra.mxu1 %v6660_v56  ;;  %v6605_v56 = vcombine.high %v255_v55, %v259_v48  ;;  %v243_v6 = vld [vmem:[#allocation5 + $0x270] sm:$0xff] }
 0x1dc   :  { %5360 = vmatprep.subr.bf16.mxu1 %v6653_v58  ;;  %v247_v58 = vld [vmem:[#allocation5 + $0x290] sm:$0xff] }
 0x1dd   :  { %5320 = vmatpush1.bf16.msra.mxu0 %v6524_v0  ;;  %v6732_v0 = vcombine.low %v383_v49, %v387_v50  ;;  %v367_v7 = vld [vmem:[#allocation5 + $0x650] sm:$0xff]  ;;  %v6596_v10 = vcombine.low %v247_v58, %v251_v59 }
 0x1de   :  { %5321 = vmatprep.subr.bf16.mxu0 %v6517_v53  ;;  %v6725_v53 = vcombine.high %v375_v60, %v379_v61  ;;  %v371_v9 = vld [vmem:[#allocation5 + $0x670] sm:$0xff] }
 0x1df   :  { %5361 = vmatpush1.bf16.msra.mxu1 %v6652_v1  ;;  %v6597_v1 = vcombine.high %v247_v58, %v251_v59  ;;  %v235_v15 = vld [vmem:[#allocation5 + $0x230] sm:$0xff] }
 0x1e0   :  { %5362 = vmatprep.subr.bf16.mxu1 %v6645_v4  ;;  %v239_v4 = vld [vmem:[#allocation5 + $0x250] sm:$0xff] }
 0x1e1   :  { %5322 = vmatpush1.bf16.msra.mxu0 %v6516_v22  ;;  %v6724_v22 = vcombine.low %v375_v60, %v379_v61  ;;  %v359_v17 = vld [vmem:[#allocation5 + $0x610] sm:$0xff]  ;;  %v6588_v21 = vcombine.low %v239_v4, %v243_v6 }
 0x1e2   :  { %5323 = vmatprep.subr.bf16.mxu0 %v6637_v25  ;;  %v6717_v25 = vcombine.high %v367_v7, %v371_v9  ;;  %v363_v20 = vld [vmem:[#allocation5 + $0x630] sm:$0xff] }
 0x1e3   :  { %5363 = vmatpush1.bf16.msra.mxu1 %v6644_v13  ;;  %v6589_v13 = vcombine.high %v239_v4, %v243_v6  ;;  %v483_v30 = vld [vmem:[#allocation5 + $0x9f0] sm:$0xff] }
 0x1e4   :  { %5364 = vmatprep.subr.bf16.mxu1 %v6765_v19  ;;  %v231_v19 = vld [vmem:[#allocation5 + $0x210] sm:$0xff] }
 0x1e5   :  { %5324 = vmatpush2.bf16.msra.mxu0 %v6636_v23  ;;  %v6716_v23 = vcombine.low %v367_v7, %v371_v9  ;;  %v607_v27 = vld [vmem:[#allocation5 + $0xdd0] sm:$0xff]  ;;  %v6580_v31 = vcombine.low %v231_v19, %v235_v15 }
 0x1e6   :  { %5325 = vmatprep.subr.bf16.mxu0 %v6629_v24  ;;  %v6709_v24 = vcombine.high %v359_v17, %v363_v20  ;;  %v611_v28 = vld [vmem:[#allocation5 + $0xdf0] sm:$0xff] }
 0x1e7   :  { %5365 = vmatpush2.bf16.msra.mxu1 %v6764_v29  ;;  %v6581_v29 = vcombine.high %v231_v19, %v235_v15  ;;  %v471_v40 = vld [vmem:[#allocation5 + $0x990] sm:$0xff]  ;;  %v6956_v55 = vcombine.low %v607_v27, %v611_v28 }
 0x1e8   :  { %5366 = vmatprep.subr.bf16.mxu1 %v6757_v26  ;;  %v479_v26 = vld [vmem:[#allocation5 + $0x9d0] sm:$0xff] }
 0x1e9   :  { %5326 = vmatpush2.bf16.msra.mxu0 %v6628_v32  ;;  %v945_v32 = vsub.s32 2, %v7698_v44  ;;  %v475_v41 = vld [vmem:[#allocation5 + $0x9b0] sm:$0xff] }
 0x1ea   :  { %5327 = vmatprep.subr.bf16.mxu0 %v6621_v43  ;;  %v6829_v43 = vcombine.high %v479_v26, %v483_v30  ;;  %v599_v42 = vld [vmem:[#allocation5 + $0xd90] sm:$0xff]  ;;  %v6821_v48 = vcombine.high %v471_v40, %v475_v41  ;;  %v6820_v61 = vcombine.low %v471_v40, %v475_v41 }
 0x1eb   :  { %5367 = vmatpush2.bf16.msra.mxu1 %v6756_v35  ;;  %v6708_v35 = vcombine.low %v359_v17, %v363_v20  ;;  %v595_v58 = vld [vmem:[#allocation5 + $0xd70] sm:$0xff] }
 0x1ec   :  { %5368 = vmatprep.subr.bf16.mxu1 %v6749_v36  ;;  %v6957_v36 = vcombine.high %v607_v27, %v611_v28  ;;  %v455_v9 = vld [vmem:[#allocation5 + $0x910] sm:$0xff] }
 0x1ed   :  { %5328 = vmatpush2.bf16.msra.mxu0 %v6620_v63  ;;  %v603_v63 = vld [vmem:[#allocation5 + $0xdb0] sm:$0xff] }
 0x1ee   :  { %5329 = vmatprep.subr.bf16.mxu0 %v6613_v45  ;;  %v6949_v50 = vcombine.high %v599_v42, %v603_v63  ;;  %v575_v27 = vld [vmem:[#allocation5 + $0xcd0] sm:$0xff] }
 0x1ef   :  { %5369 = vmatpush2.bf16.msra.mxu1 %v6748_v54  ;;  %v7511_v54 = vld [vmem:[#allocation7] sm:$0xff]  ;;  %v579_v28 = vld [vmem:[#allocation5 + $0xcf0] sm:$0xff] }
 0x1f0   :  { %5370 = vmatprep.subr.bf16.mxu1 %v6741_v5  ;;  %v946_v45 = vrot.slane %v7511_v54, %v945_v32  ;;  %v6828_v5 = vcombine.low %v479_v26, %v483_v30  ;;  %v950_v49 = vrot.slane %v7511_v54, %v949_v39  ;;  %v447_v26 = vld [vmem:[#allocation5 + $0x8d0] sm:$0xff] }
 0x1f1   :  { %5330 = vmatpush2.bf16.msra.mxu0 %v6612_v51  ;;  %v463_v51 = vld [vmem:[#allocation5 + $0x950] sm:$0xff] }
 0x1f2   :  { %5331 = vmatprep.subr.bf16.mxu0 %v6605_v56  ;;  %v451_v30 = vld [vmem:[#allocation5 + $0x8f0] sm:$0xff] }
 0x1f3   :  { %5371 = vmatpush2.bf16.msra.mxu1 %v6740_v52  ;;  %v467_v52 = vld [vmem:[#allocation5 + $0x970] sm:$0xff] }
 0x1f4   :  { %5372 = vmatprep.subr.bf16.mxu1 %v6733_v57  ;;  %v591_v57 = vld [vmem:[#allocation5 + $0xd50] sm:$0xff]  ;;  %v6812_v17 = vcombine.low %v463_v51, %v467_v52 }
 0x1f5   :  { %5332 = vmatpush2.bf16.msra.mxu0 %v6604_v62  ;;  %v6941_v7 = vcombine.high %v591_v57, %v595_v58  ;;  %v443_v39 = vld [vmem:[#allocation5 + $0x8b0] sm:$0xff] }
 0x1f6   :  { %5333 = vmatprep.subr.bf16.mxu0 %v6597_v1  ;;  %v6813_v1 = vcombine.high %v463_v51, %v467_v52  ;;  %v567_v40 = vld [vmem:[#allocation5 + $0xc90] sm:$0xff] }
 0x1f7   :  { %5373 = vmatpush2.bf16.msra.mxu1 %v6732_v0  ;;  %v6948_v0 = vcombine.low %v599_v42, %v603_v63  ;;  %v571_v41 = vld [vmem:[#allocation5 + $0xcb0] sm:$0xff]  ;;  %v6796_v42 = vcombine.low %v447_v26, %v451_v30  ;;  %v6924_v63 = vcombine.low %v575_v27, %v579_v28 }
 0x1f8   :  { %5374 = vmatprep.subr.bf16.mxu1 %v6725_v53  ;;  %v6916_v51 = vcombine.low %v567_v40, %v571_v41 }
 0x1f9   :  { %5334 = vmatpush2.bf16.msra.mxu0 %v6596_v10  ;;  %v459_v10 = vld [vmem:[#allocation5 + $0x930] sm:$0xff] }
 0x1fa   :  { %5335 = vmatprep.subr.bf16.mxu0 %v6589_v13  ;;  %v583_v13 = vld [vmem:[#allocation5 + $0xd10] sm:$0xff] }
 0x1fb   :  { %5375 = vmatpush2.bf16.msra.mxu1 %v6724_v22 }
 0x1fc   :  { %5376 = vmatprep.subr.bf16.mxu1 %v6717_v25  ;;  %v587_v25 = vld [vmem:[#allocation5 + $0xd30] sm:$0xff] }
 0x1fd   :  { %5336 = vmatpush2.bf16.msra.mxu0 %v6588_v21  ;;  %v6940_v21 = vcombine.low %v591_v57, %v595_v58  ;;  %v6932_v32 = vcombine.low %v583_v13, %v587_v25  ;;  %v423_v57 = vld [vmem:[#allocation5 + $0x810] sm:$0xff] }
 0x1fe   :  { %5337 = vmatprep.subr.bf16.mxu0 %v6581_v29  ;;  %v427_v58 = vld [vmem:[#allocation5 + $0x830] sm:$0xff] }
 0x1ff   :  { %5377 = vmatpush2.bf16.msra.mxu1 %v6716_v23  ;;  %v6805_v23 = vcombine.high %v455_v9, %v459_v10 }
 0x200   :  { %5378 = vmatprep.subr.bf16.mxu1 %v6709_v24  ;;  %v6933_v24 = vcombine.high %v583_v13, %v587_v25 }
 0x201   :  { %5338 = vmatpush2.bf16.msra.mxu0 %v6580_v31  ;;  %v6804_v31 = vcombine.low %v455_v9, %v459_v10  ;;  %v675_v9 = vld [vmem:[#allocation5 + $0xff0] sm:$0xff]  ;;  %v6772_v10 = vcombine.low %v423_v57, %v427_v58 }
 0x202   :  { %5389 = vmatprep.subr.bf16.mxu0 %v6829_v43  ;;  %v6925_v43 = vcombine.high %v575_v27, %v579_v28  ;;  %v531_v27 = vld [vmem:[#allocation5 + $0xb70] sm:$0xff] }
 0x203   :  { %5379 = vmatpush2.bf16.msra.mxu1 %v6708_v35  ;;  %v6797_v35 = vcombine.high %v447_v26, %v451_v30  ;;  %v527_v30 = vld [vmem:[#allocation5 + $0xb50] sm:$0xff] }
 0x204   :  { %5430 = vmatprep.subr.bf16.mxu1 %v6957_v36  ;;  %v5095_v56 = vpop.f32.mrf.mxu0  ;;  %5340 = vmatmul.mubr.bf16.vlgmr.msra.gmra.mxu0 %v7729_v33  ;;  %v439_v36 = vld [vmem:[#allocation5 + $0x890] sm:$0xff] }
 0x205   :  { %v5096_v59 = vadd.f32 %v5095_v56, %v946_v45  ;;  %5390 = vmatpush1.bf16.msra.mxu0 %v6828_v5  ;;  %5421 = vmatprep.mubr.bf16.mxu0 %v7737_v46  ;;  %v6789_v54 = vcombine.high %v439_v36, %v443_v39  ;;  %v6917_v45 = vcombine.high %v567_v40, %v571_v41  ;;  %v431_v5 = vld [vmem:[#allocation5 + $0x850] sm:$0xff] }
 0x206   :  { %v5136_v60 = vpop.f32.mrf.mxu1  ;;  %5381 = vmatmul.mubr.bf16.vlgmr.msra.gmra.mxu1 %v7735_v37  ;;  %v5097_v62 = vpop.f32.mrf.mxu0  ;;  %5391 = vmatprep.subr.bf16.mxu0 %v6821_v48  ;;  %v559_v48 = vld [vmem:[#allocation5 + $0xc50] sm:$0xff] }
 0x207   :  { %5431 = vmatpush1.bf16.msra.mxu1 %v6956_v55  ;;  %v7817_v53 = vadd.f32 %v5136_v60, %v5096_v59  ;;  %v5098_v4 = vadd.f32 %v5097_v62, %v950_v49  ;;  %5462 = vmatprep.mubr.bf16.mxu1 %v7740_v47  ;;  %v435_v55 = vld [vmem:[#allocation5 + $0x870] sm:$0xff] }
 0x208   :  { %v5138_v6 = vpop.f32.mrf.mxu1  ;;  %5432 = vmatprep.subr.bf16.mxu1 %v6949_v50  ;;  %v5099_v22 = vpop.f32.mrf.mxu0  ;;  %v563_v49 = vld [vmem:[#allocation5 + $0xc70] sm:$0xff]  ;;  %v6788_v50 = vcombine.low %v439_v36, %v443_v39  ;;  %v6781_v52 = vcombine.high %v431_v5, %v435_v55 }
 0x209   :  { %v7821_v19 = vadd.f32 %v5138_v6, %v5098_v4  ;;  %5392 = vmatpush1.bf16.msra.mxu0 %v6820_v61  ;;  %v6909_v56 = vcombine.high %v559_v48, %v563_v49  ;;  %v551_v59 = vld [vmem:[#allocation5 + $0xc10] sm:$0xff]  ;;  %v6780_v61 = vcombine.low %v431_v5, %v435_v55  ;;  %v6908_v62 = vcombine.low %v559_v48, %v563_v49 }
 0x20a   :  { %v5140_v15 = vpop.f32.mrf.mxu1  ;;  %v5100_v20 = vpop.f32.mrf.mxu0  ;;  %5393 = vmatprep.subr.bf16.mxu0 %v6813_v1  ;;  %v555_v60 = vld [vmem:[#allocation5 + $0xc30] sm:$0xff] }
 0x20b   :  { %5433 = vmatpush1.bf16.msra.mxu1 %v6948_v0  ;;  %v6773_v0 = vcombine.high %v423_v57, %v427_v58  ;;  %v6901_v1 = vcombine.high %v551_v59, %v555_v60  ;;  %v543_v4 = vld [vmem:[#allocation5 + $0xbd0] sm:$0xff]  ;;  %v6900_v22 = vcombine.low %v551_v59, %v555_v60 }
 0x20c   :  { %v5141_v29 = vpop.f32.mrf.mxu1  ;;  %5434 = vmatprep.subr.bf16.mxu1 %v6941_v7  ;;  %v547_v6 = vld [vmem:[#allocation5 + $0xbf0] sm:$0xff] }
 0x20d   :  { %5394 = vmatpush1.bf16.msra.mxu0 %v6812_v17  ;;  %v671_v7 = vld [vmem:[#allocation5 + $0xfd0] sm:$0xff]  ;;  %v6893_v13 = vcombine.high %v543_v4, %v547_v6 }
 0x20e   :  { %5395 = vmatprep.subr.bf16.mxu0 %v6805_v23  ;;  %v7021_v25 = vcombine.high %v671_v7, %v675_v9  ;;  %v535_v15 = vld [vmem:[#allocation5 + $0xb90] sm:$0xff]  ;;  %v6892_v23 = vcombine.low %v543_v4, %v547_v6  ;;  %v7020_v29 = vcombine.low %v671_v7, %v675_v9 }
 0x20f   :  { %5435 = vmatpush1.bf16.msra.mxu1 %v6940_v21  ;;  %v539_v17 = vld [vmem:[#allocation5 + $0xbb0] sm:$0xff] }
 0x210   :  { %5436 = vmatprep.subr.bf16.mxu1 %v6933_v24  ;;  %v663_v20 = vld [vmem:[#allocation5 + $0xf90] sm:$0xff]  ;;  %v6885_v24 = vcombine.high %v535_v15, %v539_v17 }
 0x211   :  { %5396 = vmatpush1.bf16.msra.mxu0 %v6804_v31  ;;  %v667_v21 = vld [vmem:[#allocation5 + $0xfb0] sm:$0xff] }
 0x212   :  { %5397 = vmatprep.subr.bf16.mxu0 %v6797_v35  ;;  %v7013_v26 = vcombine.high %v663_v20, %v667_v21  ;;  %v655_v28 = vld [vmem:[#allocation5 + $0xf50] sm:$0xff]  ;;  %v7012_v35 = vcombine.low %v663_v20, %v667_v21 }
 0x213   :  { %5437 = vmatpush1.bf16.msra.mxu1 %v6932_v32  ;;  %v659_v31 = vld [vmem:[#allocation5 + $0xf70] sm:$0xff]  ;;  %v6884_v32 = vcombine.low %v535_v15, %v539_v17 }
 0x214   :  { %5438 = vmatprep.subr.bf16.mxu1 %v6925_v43  ;;  %v6877_v43 = vcombine.high %v527_v30, %v531_v27  ;;  %v7005_v36 = vcombine.high %v655_v28, %v659_v31  ;;  %v519_v39 = vld [vmem:[#allocation5 + $0xb10] sm:$0xff] }
 0x215   :  { %5398 = vmatpush1.bf16.msra.mxu0 %v6796_v42  ;;  %v523_v40 = vld [vmem:[#allocation5 + $0xb30] sm:$0xff] }
 0x216   :  { %5399 = vmatprep.subr.bf16.mxu0 %v6789_v54  ;;  %v647_v41 = vld [vmem:[#allocation5 + $0xf10] sm:$0xff]  ;;  %v7004_v54 = vcombine.low %v655_v28, %v659_v31 }
 0x217   :  { %5439 = vmatpush1.bf16.msra.mxu1 %v6924_v63  ;;  %v651_v42 = vld [vmem:[#allocation5 + $0xf30] sm:$0xff]  ;;  %v6876_v63 = vcombine.low %v527_v30, %v531_v27 }
 0x218   :  { %5440 = vmatprep.subr.bf16.mxu1 %v6917_v45  ;;  %v6869_v45 = vcombine.high %v519_v39, %v523_v40  ;;  %v6997_v5 = vcombine.high %v647_v41, %v651_v42  ;;  %v511_v55 = vld [vmem:[#allocation5 + $0xad0] sm:$0xff] }
 0x219   :  { %5400 = vmatpush1.bf16.msra.mxu0 %v6788_v50  ;;  %v515_v48 = vld [vmem:[#allocation5 + $0xaf0] sm:$0xff] }
 0x21a   :  { %5401 = vmatprep.subr.bf16.mxu0 %v6781_v52  ;;  %v639_v49 = vld [vmem:[#allocation5 + $0xed0] sm:$0xff]  ;;  %v6996_v52 = vcombine.low %v647_v41, %v651_v42 }
 0x21b   :  { %5441 = vmatpush1.bf16.msra.mxu1 %v6916_v51  ;;  %v643_v50 = vld [vmem:[#allocation5 + $0xef0] sm:$0xff]  ;;  %v6868_v51 = vcombine.low %v519_v39, %v523_v40 }
 0x21c   :  { %5442 = vmatprep.subr.bf16.mxu1 %v6909_v56  ;;  %v6861_v56 = vcombine.high %v511_v55, %v515_v48  ;;  %v6989_v57 = vcombine.high %v639_v49, %v643_v50  ;;  %v503_v58 = vld [vmem:[#allocation5 + $0xa90] sm:$0xff] }
 0x21d   :  { %5402 = vmatpush1.bf16.msra.mxu0 %v6780_v61  ;;  %v507_v59 = vld [vmem:[#allocation5 + $0xab0] sm:$0xff] }
 0x21e   :  { %5403 = vmatprep.subr.bf16.mxu0 %v6773_v0  ;;  %v631_v60 = vld [vmem:[#allocation5 + $0xe90] sm:$0xff]  ;;  %v6988_v0 = vcombine.low %v639_v49, %v643_v50 }
 0x21f   :  { %5443 = vmatpush1.bf16.msra.mxu1 %v6908_v62  ;;  %v635_v61 = vld [vmem:[#allocation5 + $0xeb0] sm:$0xff]  ;;  %v6860_v62 = vcombine.low %v511_v55, %v515_v48 }
 0x220   :  { %5444 = vmatprep.subr.bf16.mxu1 %v6901_v1  ;;  %v6853_v1 = vcombine.high %v503_v58, %v507_v59  ;;  %v6981_v4 = vcombine.high %v631_v60, %v635_v61  ;;  %v495_v6 = vld [vmem:[#allocation5 + $0xa50] sm:$0xff] }
 0x221   :  { %5404 = vmatpush1.bf16.msra.mxu0 %v6772_v10  ;;  %v499_v7 = vld [vmem:[#allocation5 + $0xa70] sm:$0xff] }
 0x222   :  { %5405 = vmatprep.subr.bf16.mxu0 %v6893_v13  ;;  %v623_v9 = vld [vmem:[#allocation5 + $0xe50] sm:$0xff]  ;;  %v6980_v13 = vcombine.low %v631_v60, %v635_v61 }
 0x223   :  { %5445 = vmatpush1.bf16.msra.mxu1 %v6900_v22  ;;  %v627_v10 = vld [vmem:[#allocation5 + $0xe70] sm:$0xff]  ;;  %v6852_v22 = vcombine.low %v503_v58, %v507_v59 }
 0x224   :  { %5446 = vmatprep.subr.bf16.mxu1 %v7021_v25  ;;  %v6845_v25 = vcombine.high %v495_v6, %v499_v7  ;;  %v6973_v15 = vcombine.high %v623_v9, %v627_v10  ;;  %v487_v17 = vld [vmem:[#allocation5 + $0xa10] sm:$0xff] }
 0x225   :  { %5406 = vmatpush2.bf16.msra.mxu0 %v6892_v23  ;;  %v491_v20 = vld [vmem:[#allocation5 + $0xa30] sm:$0xff] }
 0x226   :  { %5407 = vmatprep.subr.bf16.mxu0 %v6885_v24  ;;  %v615_v21 = vld [vmem:[#allocation5 + $0xe10] sm:$0xff]  ;;  %v6972_v24 = vcombine.low %v623_v9, %v627_v10 }
 0x227   :  { %5447 = vmatpush2.bf16.msra.mxu1 %v7020_v29  ;;  %v619_v23 = vld [vmem:[#allocation5 + $0xe30] sm:$0xff]  ;;  %v6844_v29 = vcombine.low %v495_v6, %v499_v7 }
 0x228   :  { %5448 = vmatprep.subr.bf16.mxu1 %v7013_v26  ;;  %v6837_v26 = vcombine.high %v487_v17, %v491_v20  ;;  %v6965_v30 = vcombine.high %v615_v21, %v619_v23  ;;  %v735_v27 = vld [vmem:[#allocation5 + $0x11d0] sm:$0xff] }
 0x229   :  { %5408 = vmatpush2.bf16.msra.mxu0 %v6884_v32  ;;  %v739_v28 = vld [vmem:[#allocation5 + $0x11f0] sm:$0xff] }
 0x22a   :  { %5409 = vmatprep.subr.bf16.mxu0 %v6877_v43  ;;  %v863_v31 = vld [vmem:[#allocation5 + $0x15d0] sm:$0xff]  ;;  %v6964_v43 = vcombine.low %v615_v21, %v619_v23 }
 0x22b   :  { %5449 = vmatpush2.bf16.msra.mxu1 %v7012_v35  ;;  %v867_v32 = vld [vmem:[#allocation5 + $0x15f0] sm:$0xff]  ;;  %v6836_v35 = vcombine.low %v487_v17, %v491_v20 }
 0x22c   :  { %5450 = vmatprep.subr.bf16.mxu1 %v7005_v36  ;;  %v7085_v36 = vcombine.high %v735_v27, %v739_v28  ;;  %v7213_v39 = vcombine.high %v863_v31, %v867_v32  ;;  %v727_v40 = vld [vmem:[#allocation5 + $0x1190] sm:$0xff] }
 0x22d   :  { %5410 = vmatpush2.bf16.msra.mxu0 %v6876_v63  ;;  %v731_v41 = vld [vmem:[#allocation5 + $0x11b0] sm:$0xff] }
 0x22e   :  { %5411 = vmatprep.subr.bf16.mxu0 %v6869_v45  ;;  %v855_v42 = vld [vmem:[#allocation5 + $0x1590] sm:$0xff]  ;;  %v7212_v45 = vcombine.low %v863_v31, %v867_v32  ;;  %v7076_v58 = vcombine.low %v727_v40, %v731_v41 }
 0x22f   :  { %5451 = vmatpush2.bf16.msra.mxu1 %v7004_v54  ;;  %v859_v63 = vld [vmem:[#allocation5 + $0x15b0] sm:$0xff]  ;;  %v7084_v54 = vcombine.low %v735_v27, %v739_v28 }
 0x230   :  { %5452 = vmatprep.subr.bf16.mxu1 %v6997_v5  ;;  %v7077_v5 = vcombine.high %v727_v40, %v731_v41  ;;  %v7205_v55 = vcombine.high %v855_v42, %v859_v63  ;;  %v719_v48 = vld [vmem:[#allocation5 + $0x1150] sm:$0xff]  ;;  %v7204_v60 = vcombine.low %v855_v42, %v859_v63 }
 0x231   :  { %5412 = vmatpush2.bf16.msra.mxu0 %v6868_v51  ;;  %v723_v49 = vld [vmem:[#allocation5 + $0x1170] sm:$0xff] }
 0x232   :  { %5413 = vmatprep.subr.bf16.mxu0 %v6861_v56  ;;  %v847_v51 = vld [vmem:[#allocation5 + $0x1550] sm:$0xff]  ;;  %v7069_v61 = vcombine.high %v719_v48, %v723_v49 }
 0x233   :  { %5453 = vmatpush2.bf16.msra.mxu1 %v6996_v52  ;;  %v851_v52 = vld [vmem:[#allocation5 + $0x1570] sm:$0xff] }
 0x234   :  { %5454 = vmatprep.subr.bf16.mxu1 %v6989_v57  ;;  %v711_v6 = vld [vmem:[#allocation5 + $0x1110] sm:$0xff] }
 0x235   :  { %5414 = vmatpush2.bf16.msra.mxu0 %v6860_v62  ;;  %v715_v7 = vld [vmem:[#allocation5 + $0x1130] sm:$0xff] }
 0x236   :  { %5415 = vmatprep.subr.bf16.mxu0 %v6853_v1  ;;  %v839_v9 = vld [vmem:[#allocation5 + $0x1510] sm:$0xff]  ;;  %v7061_v17 = vcombine.high %v711_v6, %v715_v7 }
 0x237   :  { %5455 = vmatpush2.bf16.msra.mxu1 %v6988_v0  ;;  %v843_v10 = vld [vmem:[#allocation5 + $0x1530] sm:$0xff] }
 0x238   :  { %5456 = vmatprep.subr.bf16.mxu1 %v6981_v4  ;;  %v7197_v4 = vcombine.high %v847_v51, %v851_v52  ;;  %v7189_v21 = vcombine.high %v839_v9, %v843_v10  ;;  %v703_v23 = vld [vmem:[#allocation5 + $0x10d0] sm:$0xff]  ;;  %v7188_v27 = vcombine.low %v839_v9, %v843_v10 }
 0x239   :  { %5416 = vmatpush2.bf16.msra.mxu0 %v6852_v22  ;;  %v695_v32 = vld [vmem:[#allocation5 + $0x1090] sm:$0xff] }
 0x23a   :  { %5417 = vmatprep.subr.bf16.mxu0 %v6845_v25  ;;  %v7068_v25 = vcombine.low %v719_v48, %v723_v49  ;;  %v687_v63 = vld [vmem:[#allocation5 + $0x1050] sm:$0xff] }
 0x23b   :  { %5457 = vmatpush2.bf16.msra.mxu1 %v6980_v13 }
 0x23c   :  { %5458 = vmatprep.subr.bf16.mxu1 %v6973_v15 }
 0x23d   :  { %5418 = vmatpush2.bf16.msra.mxu0 %v6844_v29  ;;  %v707_v29 = vld [vmem:[#allocation5 + $0x10f0] sm:$0xff] }
 0x23e   :  { %5419 = vmatprep.subr.bf16.mxu0 %v6837_v26  ;;  %v835_v26 = vld [vmem:[#allocation5 + $0x14f0] sm:$0xff]  ;;  %v7053_v28 = vcombine.high %v703_v23, %v707_v29 }
 0x23f   :  { %5459 = vmatpush2.bf16.msra.mxu1 %v6972_v24  ;;  %v831_v24 = vld [vmem:[#allocation5 + $0x14d0] sm:$0xff] }
 0x240   :  { %5460 = vmatprep.subr.bf16.mxu1 %v6965_v30  ;;  %v7060_v30 = vcombine.low %v711_v6, %v715_v7  ;;  %v7181_v31 = vcombine.high %v831_v24, %v835_v26  ;;  %v7180_v40 = vcombine.low %v831_v24, %v835_v26  ;;  %v931_v6 = vld [vmem:[#allocation5 + $0x17f0] sm:$0xff] }
 0x241   :  { %5420 = vmatpush2.bf16.msra.mxu0 %v6836_v35  ;;  %v699_v35 = vld [vmem:[#allocation5 + $0x10b0] sm:$0xff] }
 0x242   :  { %5471 = vmatprep.subr.bf16.mxu0 %v7085_v36  ;;  %v827_v36 = vld [vmem:[#allocation5 + $0x14b0] sm:$0xff]  ;;  %v7045_v41 = vcombine.high %v695_v32, %v699_v35 }
 0x243   :  { %5461 = vmatpush2.bf16.msra.mxu1 %v6964_v43  ;;  %v823_v43 = vld [vmem:[#allocation5 + $0x1490] sm:$0xff] }
 0x244   :  { %5512 = vmatprep.subr.bf16.mxu1 %v7213_v39  ;;  %v5177_v50 = vpop.f32.mrf.mxu0  ;;  %5422 = vmatmul.mubr.bf16.vlgmr.msra.gmra.mxu0 %v7755_v2  ;;  %v7052_v39 = vcombine.low %v703_v23, %v707_v29  ;;  %v7173_v42 = vcombine.high %v823_v43, %v827_v36  ;;  %v7172_v48 = vcombine.low %v823_v43, %v827_v36  ;;  %v783_v29 = vld [vmem:[#allocation5 + $0x1350] sm:$0xff] }
 0x245   :  { %v5178_v56 = vadd.f32 %v5177_v50, %v7817_v53  ;;  %5472 = vmatpush1.bf16.msra.mxu0 %v7084_v54  ;;  %5503 = vmatprep.mubr.bf16.mxu0 %v7763_v12  ;;  %v691_v54 = vld [vmem:[#allocation5 + $0x1070] sm:$0xff] }
 0x246   :  { %v5218_v57 = vpop.f32.mrf.mxu1  ;;  %5463 = vmatmul.mubr.bf16.vlgmr.msra.gmra.mxu1 %v7761_v3  ;;  %v5179_v59 = vpop.f32.mrf.mxu0  ;;  %5473 = vmatprep.subr.bf16.mxu0 %v7077_v5  ;;  %v819_v5 = vld [vmem:[#allocation5 + $0x1470] sm:$0xff]  ;;  %v7037_v49 = vcombine.high %v687_v63, %v691_v54 }
 0x247   :  { %5513 = vmatpush1.bf16.msra.mxu1 %v7212_v45  ;;  %v7826_v62 = vadd.f32 %v5218_v57, %v5178_v56  ;;  %v5180_v0 = vadd.f32 %v5179_v59, %v7821_v19  ;;  %5544 = vmatprep.mubr.bf16.mxu1 %v7766_v14  ;;  %v7196_v19 = vcombine.low %v847_v51, %v851_v52  ;;  %v815_v45 = vld [vmem:[#allocation5 + $0x1450] sm:$0xff] }
 0x248   :  { %v5220_v1 = vpop.f32.mrf.mxu1  ;;  %5514 = vmatprep.subr.bf16.mxu1 %v7205_v55  ;;  %v5181_v53 = vpop.f32.mrf.mxu0  ;;  %v7044_v55 = vcombine.low %v695_v32, %v699_v35  ;;  %v7165_v50 = vcombine.high %v815_v45, %v819_v5  ;;  %v679_v51 = vld [vmem:[#allocation5 + $0x1010] sm:$0xff]  ;;  %v7164_v59 = vcombine.low %v815_v45, %v819_v5 }
 0x249   :  { %v7831_v22 = vadd.f32 %v5220_v1, %v5180_v0  ;;  %5474 = vmatpush1.bf16.msra.mxu0 %v7076_v58  ;;  %v683_v52 = vld [vmem:[#allocation5 + $0x1030] sm:$0xff]  ;;  %v7036_v58 = vcombine.low %v687_v63, %v691_v54 }
 0x24a   :  { %v5222_v13 = vpop.f32.mrf.mxu1  ;;  %v5182_v15 = vpop.f32.mrf.mxu0  ;;  %5475 = vmatprep.subr.bf16.mxu0 %v7069_v61  ;;  %v807_v56 = vld [vmem:[#allocation5 + $0x1410] sm:$0xff]  ;;  %v7028_v7 = vcombine.low %v679_v51, %v683_v52 }
 0x24b   :  { %5515 = vmatpush1.bf16.msra.mxu1 %v7204_v60  ;;  %v811_v57 = vld [vmem:[#allocation5 + $0x1430] sm:$0xff]  ;;  %v7029_v60 = vcombine.high %v679_v51, %v683_v52 }
 0x24c   :  { %v5223_v20 = vpop.f32.mrf.mxu1  ;;  %5516 = vmatprep.subr.bf16.mxu1 %v7197_v4  ;;  %v7157_v61 = vcombine.high %v807_v56, %v811_v57  ;;  %v799_v0 = vld [vmem:[#allocation5 + $0x13d0] sm:$0xff]  ;;  %v7156_v53 = vcombine.low %v807_v56, %v811_v57 }
 0x24d   :  { %5476 = vmatpush1.bf16.msra.mxu0 %v7068_v25  ;;  %v803_v1 = vld [vmem:[#allocation5 + $0x13f0] sm:$0xff] }
 0x24e   :  { %5477 = vmatprep.subr.bf16.mxu0 %v7061_v17  ;;  %v927_v4 = vld [vmem:[#allocation5 + $0x17d0] sm:$0xff]  ;;  %v7149_v9 = vcombine.high %v799_v0, %v803_v1  ;;  %v7148_v17 = vcombine.low %v799_v0, %v803_v1 }
 0x24f   :  { %5517 = vmatpush1.bf16.msra.mxu1 %v7196_v19  ;;  %v7277_v10 = vcombine.high %v927_v4, %v931_v6  ;;  %v791_v13 = vld [vmem:[#allocation5 + $0x1390] sm:$0xff]  ;;  %v7276_v20 = vcombine.low %v927_v4, %v931_v6 }
 0x250   :  { %5518 = vmatprep.subr.bf16.mxu1 %v7189_v21  ;;  %v795_v25 = vld [vmem:[#allocation5 + $0x13b0] sm:$0xff] }
 0x251   :  { %5478 = vmatpush1.bf16.msra.mxu0 %v7060_v30  ;;  %v919_v15 = vld [vmem:[#allocation5 + $0x1790] sm:$0xff]  ;;  %v7141_v21 = vcombine.high %v791_v13, %v795_v25 }
 0x252   :  { %5479 = vmatprep.subr.bf16.mxu0 %v7053_v28  ;;  %v923_v19 = vld [vmem:[#allocation5 + $0x17b0] sm:$0xff] }
 0x253   :  { %5519 = vmatpush1.bf16.msra.mxu1 %v7188_v27  ;;  %v7269_v23 = vcombine.high %v919_v15, %v923_v19  ;;  %v787_v24 = vld [vmem:[#allocation5 + $0x1370] sm:$0xff]  ;;  %v7140_v27 = vcombine.low %v791_v13, %v795_v25  ;;  %v7268_v28 = vcombine.low %v919_v15, %v923_v19 }
 0x254   :  { %5520 = vmatprep.subr.bf16.mxu1 %v7181_v31  ;;  %v911_v26 = vld [vmem:[#allocation5 + $0x1750] sm:$0xff]  ;;  %v7133_v31 = vcombine.high %v783_v29, %v787_v24 }
 0x255   :  { %5480 = vmatpush1.bf16.msra.mxu0 %v7052_v39  ;;  %v915_v30 = vld [vmem:[#allocation5 + $0x1770] sm:$0xff] }
 0x256   :  { %5481 = vmatprep.subr.bf16.mxu0 %v7045_v41  ;;  %v7261_v32 = vcombine.high %v911_v26, %v915_v30  ;;  %v775_v35 = vld [vmem:[#allocation5 + $0x1310] sm:$0xff]  ;;  %v7260_v41 = vcombine.low %v911_v26, %v915_v30  ;;  %v228_v26 = vld [vmem:[#allocation5 + $0x1f8] sm:$0xff] }
 0x257   :  { %5521 = vmatpush1.bf16.msra.mxu1 %v7180_v40  ;;  %v779_v43 = vld [vmem:[#allocation5 + $0x1330] sm:$0xff]  ;;  %v7132_v40 = vcombine.low %v783_v29, %v787_v24  ;;  %v224_v24 = vld [vmem:[#allocation5 + $0x1d8] sm:$0xff] }
 0x258   :  { %5522 = vmatprep.subr.bf16.mxu1 %v7173_v42  ;;  %v903_v36 = vld [vmem:[#allocation5 + $0x1710] sm:$0xff]  ;;  %v7125_v42 = vcombine.high %v775_v35, %v779_v43  ;;  %v352_v30 = vld [vmem:[#allocation5 + $0x5d8] sm:$0xff] }
 0x259   :  { %5482 = vmatpush1.bf16.msra.mxu0 %v7044_v55  ;;  %v907_v39 = vld [vmem:[#allocation5 + $0x1730] sm:$0xff] }
 0x25a   :  { %5483 = vmatprep.subr.bf16.mxu0 %v7037_v49  ;;  %v7253_v63 = vcombine.high %v903_v36, %v907_v39  ;;  %v767_v54 = vld [vmem:[#allocation5 + $0x12d0] sm:$0xff]  ;;  %v7252_v49 = vcombine.low %v903_v36, %v907_v39  ;;  %v220_v36 = vld [vmem:[#allocation5 + $0x1b8] sm:$0xff] }
 0x25b   :  { %5523 = vmatpush1.bf16.msra.mxu1 %v7172_v48  ;;  %v771_v45 = vld [vmem:[#allocation5 + $0x12f0] sm:$0xff]  ;;  %v7124_v48 = vcombine.low %v775_v35, %v779_v43  ;;  %v216_v43 = vld [vmem:[#allocation5 + $0x198] sm:$0xff] }
 0x25c   :  { %5524 = vmatprep.subr.bf16.mxu1 %v7165_v50  ;;  %v895_v5 = vld [vmem:[#allocation5 + $0x16d0] sm:$0xff]  ;;  %v7117_v50 = vcombine.high %v767_v54, %v771_v45  ;;  %v344_v39 = vld [vmem:[#allocation5 + $0x598] sm:$0xff] }
 0x25d   :  { %5484 = vmatpush1.bf16.msra.mxu0 %v7036_v58  ;;  %v899_v55 = vld [vmem:[#allocation5 + $0x16f0] sm:$0xff] }
 0x25e   :  { %5485 = vmatprep.subr.bf16.mxu0 %v7029_v60  ;;  %v7245_v51 = vcombine.high %v895_v5, %v899_v55  ;;  %v759_v52 = vld [vmem:[#allocation5 + $0x1290] sm:$0xff]  ;;  %v7244_v60 = vcombine.low %v895_v5, %v899_v55  ;;  %v212_v5 = vld [vmem:[#allocation5 + $0x178] sm:$0xff] }
 0x25f   :  { %5525 = vmatpush1.bf16.msra.mxu1 %v7164_v59  ;;  %v763_v56 = vld [vmem:[#allocation5 + $0x12b0] sm:$0xff]  ;;  %v7116_v59 = vcombine.low %v767_v54, %v771_v45  ;;  %v208_v45 = vld [vmem:[#allocation5 + $0x158] sm:$0xff] }
 0x260   :  { %5526 = vmatprep.subr.bf16.mxu1 %v7157_v61  ;;  %v887_v57 = vld [vmem:[#allocation5 + $0x1690] sm:$0xff]  ;;  %v7109_v61 = vcombine.high %v759_v52, %v763_v56 }
 0x261   :  { %5486 = vmatpush1.bf16.msra.mxu0 %v7028_v7  ;;  %v891_v58 = vld [vmem:[#allocation5 + $0x16b0] sm:$0xff] }
 0x262   :  { %5487 = vmatprep.subr.bf16.mxu0 %v7149_v9  ;;  %v7237_v0 = vcombine.high %v887_v57, %v891_v58  ;;  %v751_v1 = vld [vmem:[#allocation5 + $0x1250] sm:$0xff]  ;;  %v7236_v9 = vcombine.low %v887_v57, %v891_v58  ;;  %v6559_v58 = vcombine.high %v208_v45, %v212_v5 }
 0x263   :  { %5527 = vmatpush1.bf16.msra.mxu1 %v7156_v53  ;;  %v755_v4 = vld [vmem:[#allocation5 + $0x1270] sm:$0xff]  ;;  %v7108_v53 = vcombine.low %v759_v52, %v763_v56  ;;  %v6566_v52 = vcombine.low %v216_v43, %v220_v36 }
 0x264   :  { %5528 = vmatprep.subr.bf16.mxu1 %v7277_v10  ;;  %v879_v6 = vld [vmem:[#allocation5 + $0x1650] sm:$0xff]  ;;  %v7101_v10 = vcombine.high %v751_v1, %v755_v4 }
 0x265   :  { %5488 = vmatpush2.bf16.msra.mxu0 %v7148_v17  ;;  %v883_v7 = vld [vmem:[#allocation5 + $0x1670] sm:$0xff] }
 0x266   :  { %5489 = vmatprep.subr.bf16.mxu0 %v7141_v21  ;;  %v7229_v13 = vcombine.high %v879_v6, %v883_v7  ;;  %v743_v25 = vld [vmem:[#allocation5 + $0x1210] sm:$0xff]  ;;  %v7228_v21 = vcombine.low %v879_v6, %v883_v7  ;;  %v328_v6 = vld [vmem:[#allocation5 + $0x518] sm:$0xff] }
 0x267   :  { %5529 = vmatpush2.bf16.msra.mxu1 %v7276_v20  ;;  %v747_v15 = vld [vmem:[#allocation5 + $0x1230] sm:$0xff]  ;;  %v7100_v20 = vcombine.low %v751_v1, %v755_v4  ;;  %v200_v1 = vld [vmem:[#allocation5 + $0x118] sm:$0xff] }
 0x268   :  { %5530 = vmatprep.subr.bf16.mxu1 %v7269_v23  ;;  %v871_v19 = vld [vmem:[#allocation5 + $0x1610] sm:$0xff]  ;;  %v7093_v23 = vcombine.high %v743_v25, %v747_v15  ;;  %v204_v4 = vld [vmem:[#allocation5 + $0x138] sm:$0xff] }
 0x269   :  { %5490 = vmatpush2.bf16.msra.mxu0 %v7140_v27  ;;  %v875_v17 = vld [vmem:[#allocation5 + $0x1630] sm:$0xff]  ;;  %v356_v27 = vld [vmem:[#allocation5 + $0x5f8] sm:$0xff] }
 0x26a   :  { %5491 = vmatprep.subr.bf16.mxu0 %v7133_v31  ;;  %v7221_v29 = vcombine.high %v871_v19, %v875_v17  ;;  %v7220_v31 = vcombine.low %v871_v19, %v875_v17  ;;  %v6703_v35 = vcombine.high %v352_v30, %v356_v27  ;;  %v332_v7 = vld [vmem:[#allocation5 + $0x538] sm:$0xff] }
 0x26b   :  { %5531 = vmatpush2.bf16.msra.mxu1 %v7268_v28  ;;  %v7092_v28 = vcombine.low %v743_v25, %v747_v15  ;;  %v6551_v25 = vcombine.high %v200_v1, %v204_v4  ;;  %v6679_v19 = vcombine.high %v328_v6, %v332_v7  ;;  %v192_v17 = vld [vmem:[#allocation5 + $0xd8] sm:$0xff] }
 0x26c   :  { %5532 = vmatprep.subr.bf16.mxu1 %v7261_v32  ;;  %v6575_v32 = vcombine.high %v224_v24, %v228_v26 }
 0x26d   :  { %5492 = vmatpush2.bf16.msra.mxu0 %v7132_v40  ;;  %v348_v40 = vld [vmem:[#allocation5 + $0x5b8] sm:$0xff] }
 0x26e   :  { %5493 = vmatprep.subr.bf16.mxu0 %v7125_v42  ;;  %v6702_v42 = vcombine.low %v352_v30, %v356_v27  ;;  %v6695_v54 = vcombine.high %v344_v39, %v348_v40  ;;  %v6694_v57 = vcombine.low %v344_v39, %v348_v40  ;;  %v188_v30 = vld [vmem:[#allocation5 + $0xb8] sm:$0xff] }
 0x26f   :  { %5533 = vmatpush2.bf16.msra.mxu1 %v7260_v41  ;;  %v6574_v41 = vcombine.low %v224_v24, %v228_v26  ;;  %v184_v26 = vld [vmem:[#allocation5 + $0x98] sm:$0xff] }
 0x270   :  { %5534 = vmatprep.subr.bf16.mxu1 %v7253_v63  ;;  %v6567_v63 = vcombine.high %v216_v43, %v220_v36  ;;  %v312_v27 = vld [vmem:[#allocation5 + $0x498] sm:$0xff] }
 0x271   :  { %5494 = vmatpush2.bf16.msra.mxu0 %v7124_v48  ;;  %v336_v48 = vld [vmem:[#allocation5 + $0x558] sm:$0xff] }
 0x272   :  { %5495 = vmatprep.subr.bf16.mxu0 %v7117_v50  ;;  %v176_v36 = vld [vmem:[#allocation5 + $0x58] sm:$0xff] }
 0x273   :  { %5535 = vmatpush2.bf16.msra.mxu1 %v7252_v49  ;;  %v340_v49 = vld [vmem:[#allocation5 + $0x578] sm:$0xff] }
 0x274   :  { %5536 = vmatprep.subr.bf16.mxu1 %v7245_v51  ;;  %v180_v39 = vld [vmem:[#allocation5 + $0x78] sm:$0xff] }
 0x275   :  { %5496 = vmatpush2.bf16.msra.mxu0 %v7116_v59  ;;  %v304_v40 = vld [vmem:[#allocation5 + $0x458] sm:$0xff] }
 0x276   :  { %5497 = vmatprep.subr.bf16.mxu0 %v7109_v61 }
 0x277   :  { %5537 = vmatpush2.bf16.msra.mxu1 %v7244_v60 }
 0x278   :  { %5538 = vmatprep.subr.bf16.mxu1 %v7237_v0  ;;  %v6687_v0 = vcombine.high %v336_v48, %v340_v49 }
 0x279   :  { %5498 = vmatpush2.bf16.msra.mxu0 %v7108_v53 }
 0x27a   :  { %5499 = vmatprep.subr.bf16.mxu0 %v7101_v10  ;;  %v6558_v10 = vcombine.low %v208_v45, %v212_v5  ;;  %v168_v5 = vld [vmem:[#allocation5 + $0x18] sm:$0xff] }
 0x27b   :  { %5539 = vmatpush2.bf16.msra.mxu1 %v7236_v9 }
 0x27c   :  { %5540 = vmatprep.subr.bf16.mxu1 %v7229_v13 }
 0x27d   :  { %5500 = vmatpush2.bf16.msra.mxu0 %v7100_v20  ;;  %v320_v20 = vld [vmem:[#allocation5 + $0x4d8] sm:$0xff] }
 0x27e   :  { %5501 = vmatprep.subr.bf16.mxu0 %v7093_v23  ;;  %v6550_v23 = vcombine.low %v200_v1, %v204_v4 }
 0x27f   :  { %5541 = vmatpush2.bf16.msra.mxu1 %v7228_v21  ;;  %v324_v21 = vld [vmem:[#allocation5 + $0x4f8] sm:$0xff] }
 0x280   :  { %5542 = vmatprep.subr.bf16.mxu1 %v7221_v29  ;;  %v6671_v24 = vcombine.high %v320_v20, %v324_v21 }
 0x281   :  { %5502 = vmatpush2.bf16.msra.mxu0 %v7092_v28  ;;  %v316_v28 = vld [vmem:[#allocation5 + $0x4b8] sm:$0xff] }
 0x282   :  { %5553 = vmatprep.subr.bf16.mxu0 %v6575_v32  ;;  %v6670_v32 = vcombine.low %v320_v20, %v324_v21  ;;  %v6663_v43 = vcombine.high %v312_v27, %v316_v28  ;;  %v404_v20 = vld [vmem:[#allocation5 + $0x778] sm:$0xff] }
 0x283   :  { %5543 = vmatpush2.bf16.msra.mxu1 %v7220_v31 }
 0x284   :  { %5594 = vmatprep.subr.bf16.mxu1 %v6703_v35  ;;  %v5259_v55 = vpop.f32.mrf.mxu0  ;;  %5504 = vmatmul.mubr.bf16.vlgmr.msra.gmra.mxu0 %v7773_v34  ;;  %v6535_v35 = vcombine.high %v184_v26, %v188_v30 }
 0x285   :  { %v5260_v50 = vadd.f32 %v5259_v55, %v7826_v62  ;;  %5554 = vmatpush1.bf16.msra.mxu0 %v6574_v41  ;;  %5585 = vmatprep.mubr.bf16.mxu0 %v7711_v11  ;;  %v196_v11 = vld [vmem:[#allocation5 + $0xf8] sm:$0xff] }
 0x286   :  { %v5300_v51 = vpop.f32.mrf.mxu1  ;;  %5545 = vmatmul.mubr.bf16.vlgmr.msra.gmra.mxu1 %v7777_v38  ;;  %v5261_v56 = vpop.f32.mrf.mxu0  ;;  %5555 = vmatprep.subr.bf16.mxu0 %v6567_v63  ;;  %v6543_v29 = vcombine.high %v192_v17, %v196_v11  ;;  %v6542_v31 = vcombine.low %v192_v17, %v196_v11  ;;  %v308_v41 = vld [vmem:[#allocation5 + $0x478] sm:$0xff]  ;;  %v6662_v63 = vcombine.low %v312_v27, %v316_v28 }
 0x287   :  { %5595 = vmatpush1.bf16.msra.mxu1 %v6702_v42  ;;  %v7836_v59 = vadd.f32 %v5300_v51, %v5260_v50  ;;  %v5262_v60 = vadd.f32 %v5261_v56, %v7831_v22  ;;  %5626 = vmatprep.mubr.bf16.mxu1 %v7716_v16  ;;  %v6686_v22 = vcombine.low %v336_v48, %v340_v49  ;;  %v172_v55 = vld [vmem:[#allocation5 + $0x38] sm:$0xff] }
 0x288   :  { %v5302_v61 = vpop.f32.mrf.mxu1  ;;  %5596 = vmatprep.subr.bf16.mxu1 %v6695_v54  ;;  %v5263_v62 = vpop.f32.mrf.mxu0  ;;  %v6678_v16 = vcombine.low %v328_v6, %v332_v7  ;;  %v6534_v42 = vcombine.low %v184_v26, %v188_v30  ;;  %v6527_v54 = vcombine.high %v176_v36, %v180_v39  ;;  %v6655_v45 = vcombine.high %v304_v40, %v308_v41  ;;  %v296_v48 = vld [vmem:[#allocation5 + $0x418] sm:$0xff] }
 0x289   :  { %v7841_v53 = vadd.f32 %v5302_v61, %v5262_v60  ;;  %5556 = vmatpush1.bf16.msra.mxu0 %v6566_v52  ;;  %v300_v49 = vld [vmem:[#allocation5 + $0x438] sm:$0xff]  ;;  %v6526_v50 = vcombine.low %v176_v36, %v180_v39  ;;  %v6654_v51 = vcombine.low %v304_v40, %v308_v41  ;;  %v6519_v52 = vcombine.high %v168_v5, %v172_v55 }
 0x28a   :  { %v5304_v9 = vpop.f32.mrf.mxu1  ;;  %v5264_v13 = vpop.f32.mrf.mxu0  ;;  %5557 = vmatprep.subr.bf16.mxu0 %v6559_v58  ;;  %v6647_v56 = vcombine.high %v296_v48, %v300_v49  ;;  %v292_v58 = vld [vmem:[#allocation5 + $0x3f8] sm:$0xff]  ;;  %v6646_v1 = vcombine.low %v296_v48, %v300_v49 }
 0x28b   :  { %5597 = vmatpush1.bf16.msra.mxu1 %v6694_v57  ;;  %v288_v57 = vld [vmem:[#allocation5 + $0x3d8] sm:$0xff] }
 0x28c   :  { %v5305_v15 = vpop.f32.mrf.mxu1  ;;  %5598 = vmatprep.subr.bf16.mxu1 %v6687_v0  ;;  %v416_v60 = vld [vmem:[#allocation5 + $0x7d8] sm:$0xff]  ;;  %v6518_v0 = vcombine.low %v168_v5, %v172_v55  ;;  %v6639_v4 = vcombine.high %v288_v57, %v292_v58  ;;  %v6638_v13 = vcombine.low %v288_v57, %v292_v58 }
 0x28d   :  { %5558 = vmatpush1.bf16.msra.mxu0 %v6558_v10  ;;  %v420_v61 = vld [vmem:[#allocation5 + $0x7f8] sm:$0xff] }
 0x28e   :  { %5559 = vmatprep.subr.bf16.mxu0 %v6551_v25  ;;  %v6767_v62 = vcombine.high %v416_v60, %v420_v61  ;;  %v280_v6 = vld [vmem:[#allocation5 + $0x398] sm:$0xff] }
 0x28f   :  { %5599 = vmatpush1.bf16.msra.mxu1 %v6686_v22  ;;  %v284_v7 = vld [vmem:[#allocation5 + $0x3b8] sm:$0xff]  ;;  %v6766_v22 = vcombine.low %v416_v60, %v420_v61 }
 0x290   :  { %5600 = vmatprep.subr.bf16.mxu1 %v6679_v19  ;;  %v408_v9 = vld [vmem:[#allocation5 + $0x798] sm:$0xff]  ;;  %v6631_v25 = vcombine.high %v280_v6, %v284_v7  ;;  %v6630_v21 = vcombine.low %v280_v6, %v284_v7 }
 0x291   :  { %5560 = vmatpush1.bf16.msra.mxu0 %v6550_v23  ;;  %v412_v10 = vld [vmem:[#allocation5 + $0x7b8] sm:$0xff] }
 0x292   :  { %5561 = vmatprep.subr.bf16.mxu0 %v6543_v29  ;;  %v6759_v15 = vcombine.high %v408_v9, %v412_v10  ;;  %v272_v19 = vld [vmem:[#allocation5 + $0x358] sm:$0xff]  ;;  %v6758_v23 = vcombine.low %v408_v9, %v412_v10 }
 0x293   :  { %5601 = vmatpush1.bf16.msra.mxu1 %v6678_v16  ;;  %v276_v17 = vld [vmem:[#allocation5 + $0x378] sm:$0xff] }
 0x294   :  { %5602 = vmatprep.subr.bf16.mxu1 %v6671_v24  ;;  %v400_v11 = vld [vmem:[#allocation5 + $0x758] sm:$0xff]  ;;  %v6623_v16 = vcombine.high %v272_v19, %v276_v17  ;;  %v6622_v28 = vcombine.low %v272_v19, %v276_v17 }
 0x295   :  { %5562 = vmatpush1.bf16.msra.mxu0 %v6542_v31  ;;  %v6751_v29 = vcombine.high %v400_v11, %v404_v20  ;;  %v264_v24 = vld [vmem:[#allocation5 + $0x318] sm:$0xff]  ;;  %v6750_v31 = vcombine.low %v400_v11, %v404_v20 }
 0x296   :  { %5563 = vmatprep.subr.bf16.mxu0 %v6535_v35  ;;  %v268_v26 = vld [vmem:[#allocation5 + $0x338] sm:$0xff] }
 0x297   :  { %5603 = vmatpush1.bf16.msra.mxu1 %v6670_v32  ;;  %v392_v30 = vld [vmem:[#allocation5 + $0x718] sm:$0xff]  ;;  %v6615_v32 = vcombine.high %v264_v24, %v268_v26  ;;  %v6614_v41 = vcombine.low %v264_v24, %v268_v26  ;;  %v957_v24 = vsub.s32 5, %v7698_v44 }
 0x298   :  { %5604 = vmatprep.subr.bf16.mxu1 %v6663_v43  ;;  %v396_v27 = vld [vmem:[#allocation5 + $0x738] sm:$0xff] }
 0x299   :  { %5564 = vmatpush1.bf16.msra.mxu0 %v6534_v42  ;;  %v6743_v35 = vcombine.high %v392_v30, %v396_v27  ;;  %v256_v43 = vld [vmem:[#allocation5 + $0x2d8] sm:$0xff]  ;;  %v6742_v42 = vcombine.low %v392_v30, %v396_v27 }
 0x29a   :  { %5565 = vmatprep.subr.bf16.mxu0 %v6527_v54  ;;  %v260_v36 = vld [vmem:[#allocation5 + $0x2f8] sm:$0xff] }
 0x29b   :  { %5605 = vmatpush1.bf16.msra.mxu1 %v6662_v63  ;;  %v384_v39 = vld [vmem:[#allocation5 + $0x6d8] sm:$0xff]  ;;  %v6607_v63 = vcombine.high %v256_v43, %v260_v36  ;;  %v6606_v49 = vcombine.low %v256_v43, %v260_v36 }
 0x29c   :  { %5606 = vmatprep.subr.bf16.mxu1 %v6655_v45  ;;  %v388_v40 = vld [vmem:[#allocation5 + $0x6f8] sm:$0xff] }
 0x29d   :  { %5566 = vmatpush1.bf16.msra.mxu0 %v6526_v50  ;;  %v6735_v54 = vcombine.high %v384_v39, %v388_v40  ;;  %v248_v45 = vld [vmem:[#allocation5 + $0x298] sm:$0xff]  ;;  %v6734_v50 = vcombine.low %v384_v39, %v388_v40 }
 0x29e   :  { %5567 = vmatprep.subr.bf16.mxu0 %v6519_v52  ;;  %v252_v5 = vld [vmem:[#allocation5 + $0x2b8] sm:$0xff] }
 0x29f   :  { %5607 = vmatpush1.bf16.msra.mxu1 %v6654_v51  ;;  %v376_v55 = vld [vmem:[#allocation5 + $0x698] sm:$0xff]  ;;  %v6599_v51 = vcombine.high %v248_v45, %v252_v5  ;;  %v6598_v61 = vcombine.low %v248_v45, %v252_v5 }
 0x2a0   :  { %5608 = vmatprep.subr.bf16.mxu1 %v6647_v56  ;;  %v380_v48 = vld [vmem:[#allocation5 + $0x6b8] sm:$0xff] }
 0x2a1   :  { %5568 = vmatpush1.bf16.msra.mxu0 %v6518_v0  ;;  %v6727_v52 = vcombine.high %v376_v55, %v380_v48  ;;  %v240_v56 = vld [vmem:[#allocation5 + $0x258] sm:$0xff]  ;;  %v6726_v0 = vcombine.low %v376_v55, %v380_v48 }
 0x2a2   :  { %5569 = vmatprep.subr.bf16.mxu0 %v6639_v4  ;;  %v244_v57 = vld [vmem:[#allocation5 + $0x278] sm:$0xff] }
 0x2a3   :  { %5609 = vmatpush1.bf16.msra.mxu1 %v6646_v1  ;;  %v368_v58 = vld [vmem:[#allocation5 + $0x658] sm:$0xff]  ;;  %v6591_v1 = vcombine.high %v240_v56, %v244_v57  ;;  %v6590_v10 = vcombine.low %v240_v56, %v244_v57 }
 0x2a4   :  { %5610 = vmatprep.subr.bf16.mxu1 %v6767_v62  ;;  %v372_v60 = vld [vmem:[#allocation5 + $0x678] sm:$0xff] }
 0x2a5   :  { %5570 = vmatpush2.bf16.msra.mxu0 %v6638_v13  ;;  %v6719_v4 = vcombine.high %v368_v58, %v372_v60  ;;  %v232_v62 = vld [vmem:[#allocation5 + $0x218] sm:$0xff]  ;;  %v6718_v13 = vcombine.low %v368_v58, %v372_v60 }
 0x2a6   :  { %5571 = vmatprep.subr.bf16.mxu0 %v6631_v25  ;;  %v236_v6 = vld [vmem:[#allocation5 + $0x238] sm:$0xff] }
 0x2a7   :  { %5611 = vmatpush2.bf16.msra.mxu1 %v6766_v22  ;;  %v360_v7 = vld [vmem:[#allocation5 + $0x618] sm:$0xff]  ;;  %v6583_v22 = vcombine.high %v232_v62, %v236_v6  ;;  %v6582_v20 = vcombine.low %v232_v62, %v236_v6 }
 0x2a8   :  { %5612 = vmatprep.subr.bf16.mxu1 %v6759_v15  ;;  %v364_v9 = vld [vmem:[#allocation5 + $0x638] sm:$0xff] }
 0x2a9   :  { %5572 = vmatpush2.bf16.msra.mxu0 %v6630_v21  ;;  %v6711_v25 = vcombine.high %v360_v7, %v364_v9  ;;  %v480_v15 = vld [vmem:[#allocation5 + $0x9d8] sm:$0xff]  ;;  %v953_v21 = vsub.s32 4, %v7698_v44 }
 0x2aa   :  { %5573 = vmatprep.subr.bf16.mxu0 %v6623_v16  ;;  %v484_v19 = vld [vmem:[#allocation5 + $0x9f8] sm:$0xff] }
 0x2ab   :  { %5613 = vmatpush2.bf16.msra.mxu1 %v6758_v23  ;;  %v608_v17 = vld [vmem:[#allocation5 + $0xdd8] sm:$0xff]  ;;  %v6710_v23 = vcombine.low %v360_v7, %v364_v9  ;;  %v6831_v16 = vcombine.high %v480_v15, %v484_v19 }
 0x2ac   :  { %5614 = vmatprep.subr.bf16.mxu1 %v6751_v29  ;;  %v612_v11 = vld [vmem:[#allocation5 + $0xdf8] sm:$0xff] }
 0x2ad   :  { %5574 = vmatpush2.bf16.msra.mxu0 %v6622_v28  ;;  %v6959_v29 = vcombine.high %v608_v17, %v612_v11  ;;  %v472_v26 = vld [vmem:[#allocation5 + $0x998] sm:$0xff]  ;;  %v6958_v43 = vcombine.low %v608_v17, %v612_v11 }
 0x2ae   :  { %5575 = vmatprep.subr.bf16.mxu0 %v6615_v32  ;;  %v476_v30 = vld [vmem:[#allocation5 + $0x9b8] sm:$0xff] }
 0x2af   :  { %5615 = vmatpush2.bf16.msra.mxu1 %v6750_v31  ;;  %v600_v27 = vld [vmem:[#allocation5 + $0xd98] sm:$0xff]  ;;  %v7512_v31 = vld [vmem:[#allocation7] sm:$0xff]  ;;  %v6823_v36 = vcombine.high %v472_v26, %v476_v30  ;;  %v6822_v48 = vcombine.low %v472_v26, %v476_v30 }
 0x2b0   :  { %5616 = vmatprep.subr.bf16.mxu1 %v6743_v35  ;;  %v604_v28 = vld [vmem:[#allocation5 + $0xdb8] sm:$0xff]  ;;  %v954_v32 = vrot.slane %v7512_v31, %v953_v21  ;;  %v6830_v35 = vcombine.low %v480_v15, %v484_v19  ;;  %v958_v39 = vrot.slane %v7512_v31, %v957_v24 }
 0x2b1   :  { %5576 = vmatpush2.bf16.msra.mxu0 %v6614_v41  ;;  %v6951_v40 = vcombine.high %v600_v27, %v604_v28  ;;  %v464_v41 = vld [vmem:[#allocation5 + $0x958] sm:$0xff] }
 0x2b2   :  { %5577 = vmatprep.subr.bf16.mxu0 %v6607_v63  ;;  %v596_v45 = vld [vmem:[#allocation5 + $0xd78] sm:$0xff] }
 0x2b3   :  { %5617 = vmatpush2.bf16.msra.mxu1 %v6742_v42  ;;  %v468_v42 = vld [vmem:[#allocation5 + $0x978] sm:$0xff] }
 0x2b4   :  { %5618 = vmatprep.subr.bf16.mxu1 %v6735_v54  ;;  %v592_v54 = vld [vmem:[#allocation5 + $0xd58] sm:$0xff]  ;;  %v6814_v62 = vcombine.low %v464_v41, %v468_v42 }
 0x2b5   :  { %5578 = vmatpush2.bf16.msra.mxu0 %v6606_v49  ;;  %v6943_v58 = vcombine.high %v592_v54, %v596_v45  ;;  %v460_v60 = vld [vmem:[#allocation5 + $0x938] sm:$0xff]  ;;  %v6942_v7 = vcombine.low %v592_v54, %v596_v45 }
 0x2b6   :  { %5579 = vmatprep.subr.bf16.mxu0 %v6599_v51  ;;  %v6815_v51 = vcombine.high %v464_v41, %v468_v42  ;;  %v580_v15 = vld [vmem:[#allocation5 + $0xcf8] sm:$0xff] }
 0x2b7   :  { %5619 = vmatpush2.bf16.msra.mxu1 %v6734_v50  ;;  %v6950_v50 = vcombine.low %v600_v27, %v604_v28  ;;  %v444_v21 = vld [vmem:[#allocation5 + $0x8b8] sm:$0xff] }
 0x2b8   :  { %5620 = vmatprep.subr.bf16.mxu1 %v6727_v52  ;;  %v432_v27 = vld [vmem:[#allocation5 + $0x858] sm:$0xff] }
 0x2b9   :  { %5580 = vmatpush2.bf16.msra.mxu0 %v6598_v61  ;;  %v436_v28 = vld [vmem:[#allocation5 + $0x878] sm:$0xff] }
 0x2ba   :  { %5581 = vmatprep.subr.bf16.mxu0 %v6591_v1  ;;  %v560_v31 = vld [vmem:[#allocation5 + $0xc58] sm:$0xff]  ;;  %v6782_v54 = vcombine.low %v432_v27, %v436_v28 }
 0x2bb   :  { %5621 = vmatpush2.bf16.msra.mxu1 %v6726_v0  ;;  %v584_v0 = vld [vmem:[#allocation5 + $0xd18] sm:$0xff] }
 0x2bc   :  { %5622 = vmatprep.subr.bf16.mxu1 %v6719_v4  ;;  %v428_v41 = vld [vmem:[#allocation5 + $0x838] sm:$0xff] }
 0x2bd   :  { %5582 = vmatpush2.bf16.msra.mxu0 %v6590_v10  ;;  %v552_v42 = vld [vmem:[#allocation5 + $0xc18] sm:$0xff] }
 0x2be   :  { %5583 = vmatprep.subr.bf16.mxu0 %v6583_v22  ;;  %v448_v22 = vld [vmem:[#allocation5 + $0x8d8] sm:$0xff] }
 0x2bf   :  { %5623 = vmatpush2.bf16.msra.mxu1 %v6718_v13 }
 0x2c0   :  { %5624 = vmatprep.subr.bf16.mxu1 %v6711_v25  ;;  %v576_v25 = vld [vmem:[#allocation5 + $0xcd8] sm:$0xff] }
 0x2c1   :  { %5584 = vmatpush2.bf16.msra.mxu0 %v6582_v20  ;;  %v6927_v11 = vcombine.high %v576_v25, %v580_v15  ;;  %v440_v20 = vld [vmem:[#allocation5 + $0x898] sm:$0xff]  ;;  %v6926_v24 = vcombine.low %v576_v25, %v580_v15 }
 0x2c2   :  { %5635 = vmatprep.subr.bf16.mxu0 %v6831_v16  ;;  %v572_v16 = vld [vmem:[#allocation5 + $0xcb8] sm:$0xff]  ;;  %v6791_v26 = vcombine.high %v440_v20, %v444_v21 }
 0x2c3   :  { %5625 = vmatpush2.bf16.msra.mxu1 %v6710_v23  ;;  %v568_v23 = vld [vmem:[#allocation5 + $0xc98] sm:$0xff] }
 0x2c4   :  { %5676 = vmatprep.subr.bf16.mxu1 %v6959_v29  ;;  %v5341_v63 = vpop.f32.mrf.mxu0  ;;  %5586 = vmatmul.mubr.bf16.vlgmr.msra.gmra.mxu0 %v7729_v33  ;;  %v456_v33 = vld [vmem:[#allocation5 + $0x918] sm:$0xff]  ;;  %v6919_v30 = vcombine.high %v568_v23, %v572_v16 }
 0x2c5   :  { %v5342_v5 = vadd.f32 %v5341_v63, %v954_v32  ;;  %5636 = vmatpush1.bf16.msra.mxu0 %v6830_v35  ;;  %5667 = vmatprep.mubr.bf16.mxu0 %v7737_v46  ;;  %v6807_v9 = vcombine.high %v456_v33, %v460_v60  ;;  %v452_v46 = vld [vmem:[#allocation5 + $0x8f8] sm:$0xff]  ;;  %v6806_v19 = vcombine.low %v456_v33, %v460_v60 }
 0x2c6   :  { %v5382_v55 = vpop.f32.mrf.mxu1  ;;  %5627 = vmatmul.mubr.bf16.vlgmr.msra.gmra.mxu1 %v7735_v37  ;;  %v5343_v49 = vpop.f32.mrf.mxu0  ;;  %5637 = vmatprep.subr.bf16.mxu0 %v6823_v36  ;;  %v588_v37 = vld [vmem:[#allocation5 + $0xd38] sm:$0xff]  ;;  %v6799_v17 = vcombine.high %v448_v22, %v452_v46  ;;  %v6798_v29 = vcombine.low %v448_v22, %v452_v46  ;;  %v6790_v35 = vcombine.low %v440_v20, %v444_v21 }
 0x2c7   :  { %5677 = vmatpush1.bf16.msra.mxu1 %v6958_v43  ;;  %v7847_v52 = vadd.f32 %v5382_v55, %v5342_v5  ;;  %v5344_v56 = vadd.f32 %v5343_v49, %v958_v39  ;;  %5708 = vmatprep.mubr.bf16.mxu1 %v7740_v47  ;;  %v6935_v13 = vcombine.high %v584_v0, %v588_v37  ;;  %v564_v32 = vld [vmem:[#allocation5 + $0xc78] sm:$0xff] }
 0x2c8   :  { %v5384_v57 = vpop.f32.mrf.mxu1  ;;  %5678 = vmatprep.subr.bf16.mxu1 %v6951_v40  ;;  %v5345_v61 = vpop.f32.mrf.mxu0  ;;  %v6934_v47 = vcombine.low %v584_v0, %v588_v37  ;;  %v6918_v43 = vcombine.low %v568_v23, %v572_v16  ;;  %v6783_v36 = vcombine.high %v432_v27, %v436_v28  ;;  %v6911_v39 = vcombine.high %v560_v31, %v564_v32  ;;  %v424_v40 = vld [vmem:[#allocation5 + $0x818] sm:$0xff] }
 0x2c9   :  { %v7851_v1 = vadd.f32 %v5384_v57, %v5344_v56  ;;  %5638 = vmatpush1.bf16.msra.mxu0 %v6822_v48  ;;  %v556_v63 = vld [vmem:[#allocation5 + $0xc38] sm:$0xff]  ;;  %v6910_v45 = vcombine.low %v560_v31, %v564_v32  ;;  %v6775_v5 = vcombine.high %v424_v40, %v428_v41  ;;  %v6774_v56 = vcombine.low %v424_v40, %v428_v41 }
 0x2ca   :  { %v5386_v4 = vpop.f32.mrf.mxu1  ;;  %v5346_v6 = vpop.f32.mrf.mxu0  ;;  %5639 = vmatprep.subr.bf16.mxu0 %v6815_v51  ;;  %v6903_v55 = vcombine.high %v552_v42, %v556_v63  ;;  %v544_v48 = vld [vmem:[#allocation5 + $0xbd8] sm:$0xff]  ;;  %v6902_v57 = vcombine.low %v552_v42, %v556_v63 }
 0x2cb   :  { %5679 = vmatpush1.bf16.msra.mxu1 %v6950_v50  ;;  %v548_v49 = vld [vmem:[#allocation5 + $0xbf8] sm:$0xff] }
 0x2cc   :  { %v5387_v10 = vpop.f32.mrf.mxu1  ;;  %5680 = vmatprep.subr.bf16.mxu1 %v6943_v58  ;;  %v672_v50 = vld [vmem:[#allocation5 + $0xfd8] sm:$0xff]  ;;  %v6895_v58 = vcombine.high %v544_v48, %v548_v49  ;;  %v6894_v4 = vcombine.low %v544_v48, %v548_v49 }
 0x2cd   :  { %5640 = vmatpush1.bf16.msra.mxu0 %v6814_v62  ;;  %v676_v51 = vld [vmem:[#allocation5 + $0xff8] sm:$0xff] }
 0x2ce   :  { %5641 = vmatprep.subr.bf16.mxu0 %v6807_v9  ;;  %v7023_v33 = vcombine.high %v672_v50, %v676_v51  ;;  %v536_v60 = vld [vmem:[#allocation5 + $0xb98] sm:$0xff]  ;;  %v7022_v62 = vcombine.low %v672_v50, %v676_v51 }
 0x2cf   :  { %5681 = vmatpush1.bf16.msra.mxu1 %v6942_v7  ;;  %v540_v61 = vld [vmem:[#allocation5 + $0xbb8] sm:$0xff] }
 0x2d0   :  { %5682 = vmatprep.subr.bf16.mxu1 %v6935_v13  ;;  %v664_v0 = vld [vmem:[#allocation5 + $0xf98] sm:$0xff]  ;;  %v6887_v6 = vcombine.high %v536_v60, %v540_v61  ;;  %v6886_v46 = vcombine.low %v536_v60, %v540_v61 }
 0x2d1   :  { %5642 = vmatpush1.bf16.msra.mxu0 %v6806_v19  ;;  %v668_v37 = vld [vmem:[#allocation5 + $0xfb8] sm:$0xff] }
 0x2d2   :  { %5643 = vmatprep.subr.bf16.mxu0 %v6799_v17  ;;  %v7015_v7 = vcombine.high %v664_v0, %v668_v37  ;;  %v528_v9 = vld [vmem:[#allocation5 + $0xb58] sm:$0xff]  ;;  %v7014_v25 = vcombine.low %v664_v0, %v668_v37 }
 0x2d3   :  { %5683 = vmatpush1.bf16.msra.mxu1 %v6934_v47  ;;  %v532_v10 = vld [vmem:[#allocation5 + $0xb78] sm:$0xff] }
 0x2d4   :  { %5684 = vmatprep.subr.bf16.mxu1 %v6927_v11  ;;  %v656_v13 = vld [vmem:[#allocation5 + $0xf58] sm:$0xff]  ;;  %v6879_v15 = vcombine.high %v528_v9, %v532_v10  ;;  %v6878_v21 = vcombine.low %v528_v9, %v532_v10 }
 0x2d5   :  { %5644 = vmatpush1.bf16.msra.mxu0 %v6798_v29  ;;  %v660_v22 = vld [vmem:[#allocation5 + $0xf78] sm:$0xff] }
 0x2d6   :  { %5645 = vmatprep.subr.bf16.mxu0 %v6791_v26  ;;  %v7007_v19 = vcombine.high %v656_v13, %v660_v22  ;;  %v520_v47 = vld [vmem:[#allocation5 + $0xb18] sm:$0xff]  ;;  %v7006_v23 = vcombine.low %v656_v13, %v660_v22 }
 0x2d7   :  { %5685 = vmatpush1.bf16.msra.mxu1 %v6926_v24  ;;  %v524_v17 = vld [vmem:[#allocation5 + $0xb38] sm:$0xff] }
 0x2d8   :  { %5686 = vmatprep.subr.bf16.mxu1 %v6919_v30  ;;  %v648_v11 = vld [vmem:[#allocation5 + $0xf18] sm:$0xff]  ;;  %v6871_v16 = vcombine.high %v520_v47, %v524_v17  ;;  %v6870_v28 = vcombine.low %v520_v47, %v524_v17 }
 0x2d9   :  { %5646 = vmatpush1.bf16.msra.mxu0 %v6790_v35  ;;  %v652_v20 = vld [vmem:[#allocation5 + $0xf38] sm:$0xff] }
 0x2da   :  { %5647 = vmatprep.subr.bf16.mxu0 %v6783_v36  ;;  %v6999_v29 = vcombine.high %v648_v11, %v652_v20  ;;  %v512_v24 = vld [vmem:[#allocation5 + $0xad8] sm:$0xff]  ;;  %v6998_v31 = vcombine.low %v648_v11, %v652_v20 }
 0x2db   :  { %5687 = vmatpush1.bf16.msra.mxu1 %v6918_v43  ;;  %v516_v26 = vld [vmem:[#allocation5 + $0xaf8] sm:$0xff] }
 0x2dc   :  { %5688 = vmatprep.subr.bf16.mxu1 %v6911_v39  ;;  %v640_v30 = vld [vmem:[#allocation5 + $0xed8] sm:$0xff]  ;;  %v6863_v32 = vcombine.high %v512_v24, %v516_v26  ;;  %v6862_v41 = vcombine.low %v512_v24, %v516_v26 }
 0x2dd   :  { %5648 = vmatpush1.bf16.msra.mxu0 %v6782_v54  ;;  %v644_v27 = vld [vmem:[#allocation5 + $0xef8] sm:$0xff] }
 0x2de   :  { %5649 = vmatprep.subr.bf16.mxu0 %v6775_v5  ;;  %v6991_v35 = vcombine.high %v640_v30, %v644_v27  ;;  %v504_v43 = vld [vmem:[#allocation5 + $0xa98] sm:$0xff]  ;;  %v6990_v42 = vcombine.low %v640_v30, %v644_v27 }
 0x2df   :  { %5689 = vmatpush1.bf16.msra.mxu1 %v6910_v45  ;;  %v508_v36 = vld [vmem:[#allocation5 + $0xab8] sm:$0xff] }
 0x2e0   :  { %5690 = vmatprep.subr.bf16.mxu1 %v6903_v55  ;;  %v632_v39 = vld [vmem:[#allocation5 + $0xe98] sm:$0xff]  ;;  %v6855_v63 = vcombine.high %v504_v43, %v508_v36  ;;  %v6854_v49 = vcombine.low %v504_v43, %v508_v36 }
 0x2e1   :  { %5650 = vmatpush1.bf16.msra.mxu0 %v6774_v56  ;;  %v636_v40 = vld [vmem:[#allocation5 + $0xeb8] sm:$0xff] }
 0x2e2   :  { %5651 = vmatprep.subr.bf16.mxu0 %v6895_v58  ;;  %v6983_v54 = vcombine.high %v632_v39, %v636_v40  ;;  %v496_v45 = vld [vmem:[#allocation5 + $0xa58] sm:$0xff]  ;;  %v6982_v50 = vcombine.low %v632_v39, %v636_v40 }
 0x2e3   :  { %5691 = vmatpush1.bf16.msra.mxu1 %v6902_v57  ;;  %v500_v5 = vld [vmem:[#allocation5 + $0xa78] sm:$0xff] }
 0x2e4   :  { %5692 = vmatprep.subr.bf16.mxu1 %v7023_v33  ;;  %v624_v55 = vld [vmem:[#allocation5 + $0xe58] sm:$0xff]  ;;  %v6847_v51 = vcombine.high %v496_v45, %v500_v5  ;;  %v6846_v61 = vcombine.low %v496_v45, %v500_v5 }
 0x2e5   :  { %5652 = vmatpush2.bf16.msra.mxu0 %v6894_v4  ;;  %v628_v48 = vld [vmem:[#allocation5 + $0xe78] sm:$0xff] }
 0x2e6   :  { %5653 = vmatprep.subr.bf16.mxu0 %v6887_v6  ;;  %v6975_v56 = vcombine.high %v624_v55, %v628_v48  ;;  %v488_v57 = vld [vmem:[#allocation5 + $0xa18] sm:$0xff]  ;;  %v6974_v0 = vcombine.low %v624_v55, %v628_v48 }
 0x2e7   :  { %5693 = vmatpush2.bf16.msra.mxu1 %v7022_v62  ;;  %v492_v58 = vld [vmem:[#allocation5 + $0xa38] sm:$0xff] }
 0x2e8   :  { %5694 = vmatprep.subr.bf16.mxu1 %v7015_v7  ;;  %v616_v33 = vld [vmem:[#allocation5 + $0xe18] sm:$0xff]  ;;  %v6839_v37 = vcombine.high %v488_v57, %v492_v58  ;;  %v6838_v10 = vcombine.low %v488_v57, %v492_v58 }
 0x2e9   :  { %5654 = vmatpush2.bf16.msra.mxu0 %v6886_v46  ;;  %v620_v60 = vld [vmem:[#allocation5 + $0xe38] sm:$0xff] }
 0x2ea   :  { %5655 = vmatprep.subr.bf16.mxu0 %v6879_v15  ;;  %v6967_v4 = vcombine.high %v616_v33, %v620_v60  ;;  %v736_v62 = vld [vmem:[#allocation5 + $0x11d8] sm:$0xff]  ;;  %v6966_v13 = vcombine.low %v616_v33, %v620_v60 }
 0x2eb   :  { %5695 = vmatpush2.bf16.msra.mxu1 %v7014_v25  ;;  %v740_v6 = vld [vmem:[#allocation5 + $0x11f8] sm:$0xff] }
 0x2ec   :  { %5696 = vmatprep.subr.bf16.mxu1 %v7007_v19  ;;  %v864_v7 = vld [vmem:[#allocation5 + $0x15d8] sm:$0xff]  ;;  %v7087_v22 = vcombine.high %v736_v62, %v740_v6  ;;  %v7086_v17 = vcombine.low %v736_v62, %v740_v6 }
 0x2ed   :  { %5656 = vmatpush2.bf16.msra.mxu0 %v6878_v21  ;;  %v868_v9 = vld [vmem:[#allocation5 + $0x15f8] sm:$0xff] }
 0x2ee   :  { %5657 = vmatprep.subr.bf16.mxu0 %v6871_v16  ;;  %v7215_v46 = vcombine.high %v864_v7, %v868_v9  ;;  %v728_v25 = vld [vmem:[#allocation5 + $0x1198] sm:$0xff]  ;;  %v7214_v11 = vcombine.low %v864_v7, %v868_v9 }
 0x2ef   :  { %5697 = vmatpush2.bf16.msra.mxu1 %v7006_v23  ;;  %v732_v15 = vld [vmem:[#allocation5 + $0x11b8] sm:$0xff] }
 0x2f0   :  { %5698 = vmatprep.subr.bf16.mxu1 %v6999_v29  ;;  %v856_v19 = vld [vmem:[#allocation5 + $0x1598] sm:$0xff]  ;;  %v7079_v20 = vcombine.high %v728_v25, %v732_v15 }
 0x2f1   :  { %5658 = vmatpush2.bf16.msra.mxu0 %v6870_v28  ;;  %v860_v47 = vld [vmem:[#allocation5 + $0x15b8] sm:$0xff]  ;;  %v7078_v28 = vcombine.low %v728_v25, %v732_v15 }
 0x2f2   :  { %5659 = vmatprep.subr.bf16.mxu0 %v6863_v32  ;;  %v7207_v21 = vcombine.high %v856_v19, %v860_v47  ;;  %v720_v23 = vld [vmem:[#allocation5 + $0x1158] sm:$0xff]  ;;  %v7206_v32 = vcombine.low %v856_v19, %v860_v47 }
 0x2f3   :  { %5699 = vmatpush2.bf16.msra.mxu1 %v6998_v31  ;;  %v724_v16 = vld [vmem:[#allocation5 + $0x1178] sm:$0xff] }
 0x2f4   :  { %5700 = vmatprep.subr.bf16.mxu1 %v6991_v35  ;;  %v848_v24 = vld [vmem:[#allocation5 + $0x1558] sm:$0xff]  ;;  %v7071_v35 = vcombine.high %v720_v23, %v724_v16  ;;  %v7070_v45 = vcombine.low %v720_v23, %v724_v16 }
 0x2f5   :  { %5660 = vmatpush2.bf16.msra.mxu0 %v6862_v41  ;;  %v852_v26 = vld [vmem:[#allocation5 + $0x1578] sm:$0xff] }
 0x2f6   :  { %5661 = vmatprep.subr.bf16.mxu0 %v6855_v63  ;;  %v712_v40 = vld [vmem:[#allocation5 + $0x1118] sm:$0xff] }
 0x2f7   :  { %5701 = vmatpush2.bf16.msra.mxu1 %v6990_v42  ;;  %v716_v41 = vld [vmem:[#allocation5 + $0x1138] sm:$0xff] }
 0x2f8   :  { %5702 = vmatprep.subr.bf16.mxu1 %v6983_v54  ;;  %v844_v42 = vld [vmem:[#allocation5 + $0x1538] sm:$0xff]  ;;  %v7063_v55 = vcombine.high %v712_v40, %v716_v41  ;;  %v7062_v57 = vcombine.low %v712_v40, %v716_v41 }
 0x2f9   :  { %5662 = vmatpush2.bf16.msra.mxu0 %v6854_v49  ;;  %v696_v60 = vld [vmem:[#allocation5 + $0x1098] sm:$0xff] }
 0x2fa   :  { %5663 = vmatprep.subr.bf16.mxu0 %v6847_v51  ;;  %v832_v51 = vld [vmem:[#allocation5 + $0x14d8] sm:$0xff] }
 0x2fb   :  { %5703 = vmatpush2.bf16.msra.mxu1 %v6982_v50  ;;  %v704_v50 = vld [vmem:[#allocation5 + $0x10d8] sm:$0xff] }
 0x2fc   :  { %5704 = vmatprep.subr.bf16.mxu1 %v6975_v56  ;;  %v836_v56 = vld [vmem:[#allocation5 + $0x14f8] sm:$0xff] }
 0x2fd   :  { %5664 = vmatpush2.bf16.msra.mxu0 %v6846_v61  ;;  %v7183_v33 = vcombine.high %v832_v51, %v836_v56  ;;  %v700_v61 = vld [vmem:[#allocation5 + $0x10b8] sm:$0xff]  ;;  %v7182_v62 = vcombine.low %v832_v51, %v836_v56 }
 0x2fe   :  { %5665 = vmatprep.subr.bf16.mxu0 %v6839_v37  ;;  %v828_v37 = vld [vmem:[#allocation5 + $0x14b8] sm:$0xff]  ;;  %v7047_v6 = vcombine.high %v696_v60, %v700_v61 }
 0x2ff   :  { %5705 = vmatpush2.bf16.msra.mxu1 %v6974_v0  ;;  %v824_v0 = vld [vmem:[#allocation5 + $0x1498] sm:$0xff] }
 0x300   :  { %5706 = vmatprep.subr.bf16.mxu1 %v6967_v4  ;;  %v7175_v7 = vcombine.high %v824_v0, %v828_v37  ;;  %v688_v9 = vld [vmem:[#allocation5 + $0x1058] sm:$0xff]  ;;  %v7174_v25 = vcombine.low %v824_v0, %v828_v37 }
 0x301   :  { %5666 = vmatpush2.bf16.msra.mxu0 %v6838_v10  ;;  %v692_v10 = vld [vmem:[#allocation5 + $0x1078] sm:$0xff] }
 0x302   :  { %5717 = vmatprep.subr.bf16.mxu0 %v7087_v22  ;;  %v820_v22 = vld [vmem:[#allocation5 + $0x1478] sm:$0xff]  ;;  %v7039_v15 = vcombine.high %v688_v9, %v692_v10 }
 0x303   :  { %5707 = vmatpush2.bf16.msra.mxu1 %v6966_v13  ;;  %v816_v13 = vld [vmem:[#allocation5 + $0x1458] sm:$0xff] }
 0x304   :  { %5758 = vmatprep.subr.bf16.mxu1 %v7215_v46  ;;  %v5423_v29 = vpop.f32.mrf.mxu0  ;;  %5668 = vmatmul.mubr.bf16.vlgmr.msra.gmra.mxu0 %v7755_v2  ;;  %v7199_v2 = vcombine.high %v848_v24, %v852_v26  ;;  %v7046_v46 = vcombine.low %v696_v60, %v700_v61  ;;  %v7167_v19 = vcombine.high %v816_v13, %v820_v22  ;;  %v680_v47 = vld [vmem:[#allocation5 + $0x1018] sm:$0xff] }
 0x305   :  { %v5424_v30 = vadd.f32 %v5423_v29, %v7847_v52  ;;  %5718 = vmatpush1.bf16.msra.mxu0 %v7086_v17  ;;  %5749 = vmatprep.mubr.bf16.mxu0 %v7763_v12  ;;  %v708_v12 = vld [vmem:[#allocation5 + $0x10f8] sm:$0xff]  ;;  %v7166_v23 = vcombine.low %v816_v13, %v820_v22 }
 0x306   :  { %v5464_v27 = vpop.f32.mrf.mxu1  ;;  %5709 = vmatmul.mubr.bf16.vlgmr.msra.gmra.mxu1 %v7761_v3  ;;  %v5425_v31 = vpop.f32.mrf.mxu0  ;;  %5719 = vmatprep.subr.bf16.mxu0 %v7079_v20  ;;  %v840_v3 = vld [vmem:[#allocation5 + $0x1518] sm:$0xff]  ;;  %v7055_v58 = vcombine.high %v704_v50, %v708_v12  ;;  %v7054_v4 = vcombine.low %v704_v50, %v708_v12 }
 0x307   :  { %5759 = vmatpush1.bf16.msra.mxu1 %v7214_v11  ;;  %v7856_v43 = vadd.f32 %v5464_v27, %v5424_v30  ;;  %v5426_v36 = vadd.f32 %v5425_v31, %v7851_v1  ;;  %5790 = vmatprep.mubr.bf16.mxu1 %v7766_v14  ;;  %v7198_v1 = vcombine.low %v848_v24, %v852_v26  ;;  %v684_v17 = vld [vmem:[#allocation5 + $0x1038] sm:$0xff] }
 0x308   :  { %v5466_v39 = vpop.f32.mrf.mxu1  ;;  %5760 = vmatprep.subr.bf16.mxu1 %v7207_v21  ;;  %v5427_v52 = vpop.f32.mrf.mxu0  ;;  %v7191_v49 = vcombine.high %v840_v3, %v844_v42  ;;  %v7190_v14 = vcombine.low %v840_v3, %v844_v42  ;;  %v808_v11 = vld [vmem:[#allocation5 + $0x1418] sm:$0xff]  ;;  %v7038_v21 = vcombine.low %v688_v9, %v692_v10  ;;  %v7031_v16 = vcombine.high %v680_v47, %v684_v17 }
 0x309   :  { %v7861_v63 = vadd.f32 %v5466_v39, %v5426_v36  ;;  %5720 = vmatpush1.bf16.msra.mxu0 %v7078_v28  ;;  %v812_v20 = vld [vmem:[#allocation5 + $0x1438] sm:$0xff]  ;;  %v7030_v28 = vcombine.low %v680_v47, %v684_v17 }
 0x30a   :  { %v5468_v54 = vpop.f32.mrf.mxu1  ;;  %v5428_v5 = vpop.f32.mrf.mxu0  ;;  %5721 = vmatprep.subr.bf16.mxu0 %v7071_v35  ;;  %v7159_v29 = vcombine.high %v808_v11, %v812_v20  ;;  %v800_v24 = vld [vmem:[#allocation5 + $0x13d8] sm:$0xff]  ;;  %v7158_v31 = vcombine.low %v808_v11, %v812_v20 }
 0x30b   :  { %5761 = vmatpush1.bf16.msra.mxu1 %v7206_v32  ;;  %v804_v26 = vld [vmem:[#allocation5 + $0x13f8] sm:$0xff] }
 0x30c   :  { %v5469_v48 = vpop.f32.mrf.mxu1  ;;  %5762 = vmatprep.subr.bf16.mxu1 %v7199_v2  ;;  %v928_v30 = vld [vmem:[#allocation5 + $0x17d8] sm:$0xff]  ;;  %v7151_v32 = vcombine.high %v800_v24, %v804_v26  ;;  %v7150_v41 = vcombine.low %v800_v24, %v804_v26 }
 0x30d   :  { %5722 = vmatpush1.bf16.msra.mxu0 %v7070_v45  ;;  %v932_v27 = vld [vmem:[#allocation5 + $0x17f8] sm:$0xff] }
 0x30e   :  { %5723 = vmatprep.subr.bf16.mxu0 %v7063_v55  ;;  %v7279_v35 = vcombine.high %v928_v30, %v932_v27  ;;  %v792_v36 = vld [vmem:[#allocation5 + $0x1398] sm:$0xff]  ;;  %v7278_v52 = vcombine.low %v928_v30, %v932_v27 }
 0x30f   :  { %5763 = vmatpush1.bf16.msra.mxu1 %v7198_v1  ;;  %v796_v39 = vld [vmem:[#allocation5 + $0x13b8] sm:$0xff] }
 0x310   :  { %5764 = vmatprep.subr.bf16.mxu1 %v7191_v49  ;;  %v920_v2 = vld [vmem:[#allocation5 + $0x1798] sm:$0xff]  ;;  %v7143_v3 = vcombine.high %v792_v36, %v796_v39  ;;  %v7142_v55 = vcombine.low %v792_v36, %v796_v39 }
 0x311   :  { %5724 = vmatpush1.bf16.msra.mxu0 %v7062_v57  ;;  %v924_v40 = vld [vmem:[#allocation5 + $0x17b8] sm:$0xff] }
 0x312   :  { %5725 = vmatprep.subr.bf16.mxu0 %v7055_v58  ;;  %v7271_v42 = vcombine.high %v920_v2, %v924_v40  ;;  %v784_v54 = vld [vmem:[#allocation5 + $0x1358] sm:$0xff]  ;;  %v7270_v48 = vcombine.low %v920_v2, %v924_v40  ;;  %v7447_v40 = vld [vmem:[#allocation8 + $0x78] sm:$0xff]  }
 0x313   :  { %5765 = vmatpush1.bf16.msra.mxu1 %v7190_v14  ;;  %v788_v45 = vld [vmem:[#allocation5 + $0x1378] sm:$0xff] }
 0x314   :  { %5766 = vmatprep.subr.bf16.mxu1 %v7183_v33  ;;  %v912_v5 = vld [vmem:[#allocation5 + $0x1758] sm:$0xff]  ;;  %v7135_v49 = vcombine.high %v784_v54, %v788_v45  ;;  %v7134_v14 = vcombine.low %v784_v54, %v788_v45  ;;  %v7450_v54 = vld [vmem:[#allocation8 + $0xb8] sm:$0xff]  }
 0x315   :  { %5726 = vmatpush1.bf16.msra.mxu0 %v7054_v4  ;;  %v916_v1 = vld [vmem:[#allocation5 + $0x1778] sm:$0xff] }
 0x316   :  { %5727 = vmatprep.subr.bf16.mxu0 %v7047_v6  ;;  %v7263_v50 = vcombine.high %v912_v5, %v916_v1  ;;  %v776_v12 = vld [vmem:[#allocation5 + $0x1318] sm:$0xff]  ;;  %v7262_v58 = vcombine.low %v912_v5, %v916_v1 }
 0x317   :  { %5767 = vmatpush1.bf16.msra.mxu1 %v7182_v62  ;;  %v780_v51 = vld [vmem:[#allocation5 + $0x1338] sm:$0xff] }
 0x318   :  { %5768 = vmatprep.subr.bf16.mxu1 %v7175_v7  ;;  %v904_v56 = vld [vmem:[#allocation5 + $0x1718] sm:$0xff]  ;;  %v7127_v33 = vcombine.high %v776_v12, %v780_v51  ;;  %v7126_v62 = vcombine.low %v776_v12, %v780_v51  ;;  %v7455_v12 = vld [vmem:[#allocation8 + $0x68] sm:$0xff]  }
 0x319   :  { %5728 = vmatpush1.bf16.msra.mxu0 %v7046_v46  ;;  %v908_v57 = vld [vmem:[#allocation5 + $0x1738] sm:$0xff] }
 0x31a   :  { %5729 = vmatprep.subr.bf16.mxu0 %v7039_v15  ;;  %v7255_v60 = vcombine.high %v904_v56, %v908_v57  ;;  %v768_v61 = vld [vmem:[#allocation5 + $0x12d8] sm:$0xff]  ;;  %v7254_v6 = vcombine.low %v904_v56, %v908_v57  ;;  %v7456_v56 = vld [vmem:[#allocation8 + $0xe8] sm:$0xff]  }
 0x31b   :  { %5769 = vmatpush1.bf16.msra.mxu1 %v7174_v25  ;;  %v772_v0 = vld [vmem:[#allocation5 + $0x12f8] sm:$0xff] }
 0x31c   :  { %5770 = vmatprep.subr.bf16.mxu1 %v7167_v19  ;;  %v896_v37 = vld [vmem:[#allocation5 + $0x16d8] sm:$0xff]  ;;  %v7119_v7 = vcombine.high %v768_v61, %v772_v0  ;;  %v7118_v25 = vcombine.low %v768_v61, %v772_v0  ;;  %v7460_v61 = vld [vmem:[#allocation8 + $0xe0] sm:$0xff]  }
 0x31d   :  { %5730 = vmatpush1.bf16.msra.mxu0 %v7038_v21  ;;  %v900_v4 = vld [vmem:[#allocation5 + $0x16f8] sm:$0xff]  ;;  %v7461_v0 = vld [vmem:[#allocation8 + $0x20] sm:$0xff]  }
 0x31e   :  { %5731 = vmatprep.subr.bf16.mxu0 %v7031_v16  ;;  %v7247_v9 = vcombine.high %v896_v37, %v900_v4  ;;  %v760_v10 = vld [vmem:[#allocation5 + $0x1298] sm:$0xff]  ;;  %v7246_v15 = vcombine.low %v896_v37, %v900_v4  ;;  %v7462_v37 = vld [vmem:[#allocation8 + $0xa0] sm:$0xff]   ;;  %v7463_v4 = vld [vmem:[#allocation8 + $0x58] sm:$0xff]  }
 0x31f   :  { %5771 = vmatpush1.bf16.msra.mxu1 %v7166_v23  ;;  %v764_v13 = vld [vmem:[#allocation5 + $0x12b8] sm:$0xff] }
 0x320   :  { %5772 = vmatprep.subr.bf16.mxu1 %v7159_v29  ;;  %v888_v22 = vld [vmem:[#allocation5 + $0x1698] sm:$0xff]  ;;  %v7111_v19 = vcombine.high %v760_v10, %v764_v13  ;;  %v7110_v23 = vcombine.low %v760_v10, %v764_v13 }
 0x321   :  { %5732 = vmatpush1.bf16.msra.mxu0 %v7030_v28  ;;  %v892_v46 = vld [vmem:[#allocation5 + $0x16b8] sm:$0xff] }
 0x322   :  { %5733 = vmatprep.subr.bf16.mxu0 %v7151_v32  ;;  %v7239_v47 = vcombine.high %v888_v22, %v892_v46  ;;  %v752_v17 = vld [vmem:[#allocation5 + $0x1258] sm:$0xff]  ;;  %v7238_v16 = vcombine.low %v888_v22, %v892_v46  ;;  %v7471_v46 = vld [vmem:[#allocation8 + $0x48] sm:$0xff]  }
 0x323   :  { %5773 = vmatpush1.bf16.msra.mxu1 %v7158_v31  ;;  %v756_v11 = vld [vmem:[#allocation5 + $0x1278] sm:$0xff] }
 0x324   :  { %5774 = vmatprep.subr.bf16.mxu1 %v7279_v35  ;;  %v880_v20 = vld [vmem:[#allocation5 + $0x1658] sm:$0xff]  ;;  %v7103_v29 = vcombine.high %v752_v17, %v756_v11  ;;  %v7102_v31 = vcombine.low %v752_v17, %v756_v11  ;;  %v7475_v17 = vld [vmem:[#allocation8 + $0x40] sm:$0xff]  }
 0x325   :  { %5734 = vmatpush2.bf16.msra.mxu0 %v7150_v41  ;;  %v884_v21 = vld [vmem:[#allocation5 + $0x1678] sm:$0xff]  ;;  %v7448_v41 = vld [vmem:[#allocation8 + $0xf8] sm:$0xff]   ;;  %v7476_v11 = vld [vmem:[#allocation8 + $0xc0] sm:$0xff]  }
 0x326   :  { %5735 = vmatprep.subr.bf16.mxu0 %v7143_v3  ;;  %v7231_v24 = vcombine.high %v880_v20, %v884_v21  ;;  %v744_v26 = vld [vmem:[#allocation5 + $0x1218] sm:$0xff]  ;;  %v7230_v32 = vcombine.low %v880_v20, %v884_v21  ;;  %v5802_v3 = vmax.f32 %v7841_v53, 0.0  ;;  %v7477_v21 = vld [vmem:[#allocation8] sm:$0xff]  }
 0x327   :  { %5775 = vmatpush2.bf16.msra.mxu1 %v7278_v52  ;;  %v748_v30 = vld [vmem:[#allocation5 + $0x1238] sm:$0xff]  ;;  %v5800_v52 = vmax.f32 %v7811_v18, 0.0 }
 0x328   :  { %5776 = vmatprep.subr.bf16.mxu1 %v7271_v42  ;;  %v872_v27 = vld [vmem:[#allocation5 + $0x1618] sm:$0xff]  ;;  %v7095_v35 = vcombine.high %v744_v26, %v748_v30  ;;  %v7094_v39 = vcombine.low %v744_v26, %v748_v30  ;;  %v7449_v42 = vld [vmem:[#allocation8 + $0x38] sm:$0xff]  }
 0x329   :  { %5736 = vmatpush2.bf16.msra.mxu0 %v7142_v55  ;;  %v876_v28 = vld [vmem:[#allocation5 + $0x1638] sm:$0xff]  ;;  %v5808_v5 = vpack.c.bf16 %v5800_v52, %v5800_v52  ;;  %v7480_v30 = vld [vmem:[#allocation8 + $0x138] sm:$0xff]   ;;  %v7500_v52 = vld [vmem:[#allocation8 + $0x1a8] sm:$0xff]  }
 0x32a   :  { %5737 = vmatprep.subr.bf16.mxu0 %v7135_v49  ;;  %v7223_v36 = vcombine.high %v872_v27, %v876_v28  ;;  %v7222_v2 = vcombine.low %v872_v27, %v876_v28  ;;  %v7451_v45 = vld [vmem:[#allocation8 + $0x70] sm:$0xff]  }
 0x32b   :  { %5777 = vmatpush2.bf16.msra.mxu1 %v7270_v48  ;;  %v7452_v55 = vld [vmem:[#allocation8 + $0xf0] sm:$0xff]   ;;  %v5810_v48 = vpack.c.bf16 %v5802_v3, %v5802_v3  ;;  %v7501_v3 = vld [vmem:[#allocation8 + $0x1e0] sm:$0xff]  }
 0x32c   :  { %5778 = vmatprep.subr.bf16.mxu1 %v7263_v50  ;;  %v7453_v18 = vld [vmem:[#allocation8 + $0x30] sm:$0xff]  }
 0x32d   :  { %5738 = vmatpush2.bf16.msra.mxu0 %v7134_v14  ;;  %v7454_v50 = vld [vmem:[#allocation8 + $0xb0] sm:$0xff]   ;;  %v7457_v14 = vld [vmem:[#allocation8 + $0x28] sm:$0xff]  }
 0x32e   :  { %5739 = vmatprep.subr.bf16.mxu0 %v7127_v33  ;;  %v7459_v33 = vld [vmem:[#allocation8 + $0x60] sm:$0xff]   ;;  %v7468_v10 = vld [vmem:[#allocation8 + $0xd0] sm:$0xff]  }
 0x32f   :  { %5779 = vmatpush2.bf16.msra.mxu1 %v7262_v58  ;;  %v7469_v13 = vld [vmem:[#allocation8 + $0x10] sm:$0xff]  }
 0x330   :  { %5780 = vmatprep.subr.bf16.mxu1 %v7255_v60  ;;  %v7470_v22 = vld [vmem:[#allocation8 + $0x90] sm:$0xff]  }
 0x331   :  { %5740 = vmatpush2.bf16.msra.mxu0 %v7126_v62  ;;  %v7464_v62 = vld [vmem:[#allocation8 + $0xd8] sm:$0xff]   ;;  %v7481_v28 = vld [vmem:[#allocation8 + $0x170] sm:$0xff]  }
 0x332   :  { %5741 = vmatprep.subr.bf16.mxu0 %v7119_v7  ;;  %v7466_v7 = vld [vmem:[#allocation8 + $0x98] sm:$0xff]  }
 0x333   :  { %5781 = vmatpush2.bf16.msra.mxu1 %v7254_v6  ;;  %v7465_v6 = vld [vmem:[#allocation8 + $0x18] sm:$0xff]  }
 0x334   :  { %5782 = vmatprep.subr.bf16.mxu1 %v7247_v9  ;;  %v7467_v9 = vld [vmem:[#allocation8 + $0x50] sm:$0xff]  }
 0x335   :  { %5742 = vmatpush2.bf16.msra.mxu0 %v7118_v25  ;;  %v7472_v25 = vld [vmem:[#allocation8 + $0xc8] sm:$0xff]  }
 0x336   :  { %5743 = vmatprep.subr.bf16.mxu0 %v7111_v19  ;;  %v7473_v19 = vld [vmem:[#allocation8 + $0x8] sm:$0xff]  }
 0x337   :  { %5783 = vmatpush2.bf16.msra.mxu1 %v7246_v15 }
 0x338   :  { %5784 = vmatprep.subr.bf16.mxu1 %v7239_v47  ;;  %v7474_v47 = vld [vmem:[#allocation8 + $0x88] sm:$0xff]  }
 0x339   :  { %5744 = vmatpush2.bf16.msra.mxu0 %v7110_v23  ;;  %v5799_v23 = vmax.f32 %v7806_v8, 0.0  ;;  %v7497_v8 = vld [vmem:[#allocation8 + $0x1f0] sm:$0xff]  }
 0x33a   :  { %5745 = vmatprep.subr.bf16.mxu0 %v7103_v29  ;;  %v7479_v29 = vld [vmem:[#allocation8 + $0x178] sm:$0xff]  }
 0x33b   :  { %5785 = vmatpush2.bf16.msra.mxu1 %v7238_v16  ;;  %v7478_v16 = vld [vmem:[#allocation8 + $0x80] sm:$0xff]   ;;  %v5807_v27 = vpack.c.bf16 %v5799_v23, %v5799_v23 }
 0x33c   :  { %5786 = vmatprep.subr.bf16.mxu1 %v7231_v24  ;;  %v5801_v24 = vmax.f32 %v7836_v59, 0.0  ;;  %v7483_v59 = vld [vmem:[#allocation8 + $0x168] sm:$0xff]  }
 0x33d   :  { %5746 = vmatpush2.bf16.msra.mxu0 %v7102_v31 }
 0x33e   :  { %5747 = vmatprep.subr.bf16.mxu0 %v7095_v35  ;;  %v5809_v31 = vpack.c.bf16 %v5801_v24, %v5801_v24 }
 0x33f   :  { %5787 = vmatpush2.bf16.msra.mxu1 %v7230_v32  ;;  %v7496_v32 = vld [vmem:[#allocation8 + $0x1b8] sm:$0xff]  }
 0x340   :  { %5788 = vmatprep.subr.bf16.mxu1 %v7223_v36  ;;  %v7482_v36 = vld [vmem:[#allocation8 + $0x130] sm:$0xff]  }
 0x341   :  { %5748 = vmatpush2.bf16.msra.mxu0 %v7094_v39  ;;  %v7498_v39 = vld [vmem:[#allocation8 + $0x1b0] sm:$0xff]  }
 0x342   :  { %7345 = vmatprep.subr.bf16.mxu0 %v7447_v40  ;;  %v7484_v40 = vld [vmem:[#allocation8 + $0x128] sm:$0xff]  }
 0x343   :  { %5789 = vmatpush2.bf16.msra.mxu1 %v7222_v2  ;;  %v7499_v2 = vld [vmem:[#allocation8 + $0x1e8] sm:$0xff]  }
 0x344   :  { %7367 = vmatprep.subr.bf16.mxu1 %v7448_v41  ;;  %v7865_v1 = vpop.f32.mrf.mxu0  ;;  %5750 = vmatmul.mubr.bf16.vlgmr.msra.gmra.mxu0 %v7773_v34  ;;  %v7485_v41 = vld [vmem:[#allocation8 + $0x160] sm:$0xff]  }
 0x345   :  { %7346 = vmatpush3.bf16.msra.mxu0 %v7449_v42  ;;  %6366 = vmatprep.mubr.bf16.mxu0 %v5808_v5  ;;  %v7486_v42 = vld [vmem:[#allocation8 + $0x120] sm:$0xff]   ;;  %v7503_v5 = vld [vmem:[#allocation8 + $0x1d8] sm:$0xff]  }
 0x346   :  { %v7868_v49 = vpop.f32.mrf.mxu1  ;;  %5791 = vmatmul.mubr.bf16.vlgmr.msra.gmra.mxu1 %v7777_v38  ;;  %v5507_v53 = vpop.f32.mrf.mxu0  ;;  %7347 = vmatprep.subr.bf16.mxu0 %v7451_v45  ;;  %v7458_v38 = vld [vmem:[#allocation8 + $0xa8] sm:$0xff]   ;;  %v7502_v45 = vld [vmem:[#allocation8 + $0x1a0] sm:$0xff]  }
 0x347   :  { %7368 = vmatpush3.bf16.msra.mxu1 %v7450_v54  ;;  %6406 = vmatprep.mubr.bf16.mxu1 %v5810_v48  ;;  %v5508_v15 = vadd.f32 %v5507_v53, %v7861_v63  ;;  %v7495_v63 = vld [vmem:[#allocation8 + $0x1f8] sm:$0xff]   ;;  %v7489_v48 = vld [vmem:[#allocation8 + $0x150] sm:$0xff]  }
 0x348   :  { %v5548_v51 = vpop.f32.mrf.mxu1  ;;  %v5509_v57 = vpop.f32.mrf.mxu0  ;;  %7369 = vmatprep.subr.bf16.mxu1 %v7452_v55  ;;  %v7487_v54 = vld [vmem:[#allocation8 + $0x158] sm:$0xff]   ;;  %v7490_v53 = vld [vmem:[#allocation8 + $0x110] sm:$0xff]  }
 0x349   :  { %7348 = vmatpush3.bf16.msra.mxu0 %v7453_v18  ;;  %v5549_v20 = vadd.f32 %v5548_v51, %v5508_v15  ;;  %v7488_v55 = vld [vmem:[#allocation8 + $0x118] sm:$0xff]   ;;  %v7492_v51 = vld [vmem:[#allocation8 + $0x108] sm:$0xff]   ;;  %v7493_v57 = vld [vmem:[#allocation8 + $0x140] sm:$0xff]  }
 0x34a   :  { %v5550_v34 = vpop.f32.mrf.mxu1  ;;  %v5510_v58 = vpop.f32.mrf.mxu0  ;;  %7349 = vmatprep.subr.bf16.mxu0 %v7455_v12  ;;  %v7504_v18 = vld [vmem:[#allocation8 + $0x198] sm:$0xff]   ;;  %v7491_v12 = vld [vmem:[#allocation8 + $0x148] sm:$0xff]  }
 0x34b   :  { %7370 = vmatpush3.bf16.msra.mxu1 %v7454_v50  ;;  %v5804_v26 = vmax.f32 %v5549_v20, 0.0  ;;  %v5506_v50 = vadd.f32 %v7865_v1, %v7856_v43  ;;  %v7494_v34 = vld [vmem:[#allocation8 + $0x100] sm:$0xff]  }
 0x34c   :  { %v5551_v60 = vpop.f32.mrf.mxu1  ;;  %7371 = vmatprep.subr.bf16.mxu1 %v7456_v56 }
 0x34d   :  { %7350 = vmatpush3.bf16.msra.mxu0 %v7457_v14  ;;  %v5812_v35 = vpack.c.bf16 %v5804_v26, %v5804_v26  ;;  %v5547_v56 = vadd.f32 %v7868_v49, %v5506_v50  ;;  %v961_v14 = vsub.s32 6, %v7698_v44 }
 0x34e   :  { %7351 = vmatprep.subr.bf16.mxu0 %v7459_v33  ;;  %v7513_v33 = vld [vmem:[#allocation7] sm:$0xff] }
 0x34f   :  { %7372 = vmatpush3.bf16.msra.mxu1 %v7458_v38  ;;  %v5803_v58 = vmax.f32 %v5547_v56, 0.0  ;;  %v965_v38 = vsub.s32 7, %v7698_v44  ;;  %v962_v43 = vrot.slane %v7513_v33, %v961_v14 }
 0x350   :  { %7373 = vmatprep.subr.bf16.mxu1 %v7460_v61 }
 0x351   :  { %7352 = vmatpush3.bf16.msra.mxu0 %v7461_v0  ;;  %v5811_v1 = vpack.c.bf16 %v5803_v58, %v5803_v58  ;;  %v966_v60 = vrot.slane %v7513_v33, %v965_v38  ;;  %v7505_v0 = vld [vmem:[#allocation8 + $0x1d0] sm:$0xff]  }
 0x352   :  { %7353 = vmatprep.subr.bf16.mxu0 %v7463_v4  ;;  %v7506_v4 = vld [vmem:[#allocation8 + $0x190] sm:$0xff]  }
 0x353   :  { %7374 = vmatpush3.bf16.msra.mxu1 %v7462_v37 }
 0x354   :  { %7375 = vmatprep.subr.bf16.mxu1 %v7464_v62 }
 0x355   :  { %7354 = vmatpush3.bf16.msra.mxu0 %v7465_v6 }
 0x356   :  { %7355 = vmatprep.subr.bf16.mxu0 %v7467_v9 }
 0x357   :  { %7376 = vmatpush3.bf16.msra.mxu1 %v7466_v7 }
 0x358   :  { %7377 = vmatprep.subr.bf16.mxu1 %v7468_v10 }
 0x359   :  { %7356 = vmatpush3.bf16.msra.mxu0 %v7469_v13  ;;  %v7507_v13 = vld [vmem:[#allocation8 + $0x1c8] sm:$0xff]  }
 0x35a   :  { %7357 = vmatprep.subr.bf16.mxu0 %v7471_v46  ;;  %v7508_v46 = vld [vmem:[#allocation8 + $0x188] sm:$0xff]  }
 0x35b   :  { %7378 = vmatpush3.bf16.msra.mxu1 %v7470_v22 }
 0x35c   :  { %7379 = vmatprep.subr.bf16.mxu1 %v7472_v25 }
 0x35d   :  { %7358 = vmatpush3.bf16.msra.mxu0 %v7473_v19  ;;  %v7509_v19 = vld [vmem:[#allocation8 + $0x1c0] sm:$0xff]  }
 0x35e   :  { %7359 = vmatprep.subr.bf16.mxu0 %v7475_v17 }
 0x35f   :  { %7380 = vmatpush3.bf16.msra.mxu1 %v7474_v47  ;;  %v7510_v47 = vld [vmem:[#allocation8 + $0x180] sm:$0xff]  }
 0x360   :  { %7381 = vmatprep.subr.bf16.mxu1 %v7476_v11 }
 0x361   :  { %7360 = vmatpush3.bf16.msra.mxu0 %v7477_v21 }
 0x362   :  { %7389 = vmatprep.subr.bf16.mxu0 %v7479_v29 }
 0x363   :  { %7382 = vmatpush3.bf16.msra.mxu1 %v7478_v16 }
 0x364   :  { %7411 = vmatprep.subr.bf16.mxu1 %v7495_v63  ;;  %6367 = vmatmul.mubr.bf16.vlgmr.msra.gmra.mxu0 %v5807_v27 }
 0x365   :  { %7390 = vmatpush3.bf16.msra.mxu0 %v7480_v30  ;;  %6446 = vmatprep.mubr.bf16.mxu0 %v5812_v35 }
 0x366   :  { %6407 = vmatmul.mubr.bf16.vlgmr.msra.gmra.mxu1 %v5809_v31  ;;  %7391 = vmatprep.subr.bf16.mxu0 %v7481_v28 }
 0x367   :  { %7412 = vmatpush3.bf16.msra.mxu1 %v7496_v32 }
 0x368   :  { %7413 = vmatprep.subr.bf16.mxu1 %v7497_v8 }
 0x369   :  { %7392 = vmatpush3.bf16.msra.mxu0 %v7482_v36 }
 0x36a   :  { %7393 = vmatprep.subr.bf16.mxu0 %v7483_v59 }
 0x36b   :  { %7414 = vmatpush3.bf16.msra.mxu1 %v7498_v39 }
 0x36c   :  { %7415 = vmatprep.subr.bf16.mxu1 %v7499_v2 }
 0x36d   :  { %7394 = vmatpush3.bf16.msra.mxu0 %v7484_v40 }
 0x36e   :  { %7395 = vmatprep.subr.bf16.mxu0 %v7485_v41 }
 0x36f   :  { %7416 = vmatpush3.bf16.msra.mxu1 %v7500_v52 }
 0x370   :  { %7417 = vmatprep.subr.bf16.mxu1 %v7501_v3 }
 0x371   :  { %7396 = vmatpush3.bf16.msra.mxu0 %v7486_v42 }
 0x372   :  { %7397 = vmatprep.subr.bf16.mxu0 %v7487_v54 }
 0x373   :  { %7418 = vmatpush3.bf16.msra.mxu1 %v7502_v45 }
 0x374   :  { %7419 = vmatprep.subr.bf16.mxu1 %v7503_v5 }
 0x375   :  { %7398 = vmatpush3.bf16.msra.mxu0 %v7488_v55 }
 0x376   :  { %7399 = vmatprep.subr.bf16.mxu0 %v7489_v48  ;;  %v7280_v48 = vld [vmem:[#allocation10] ss:$0 sm:$0xff] }
 0x377   :  { %7420 = vmatpush3.bf16.msra.mxu1 %v7504_v18 }
 0x378   :  { %7421 = vmatprep.subr.bf16.mxu1 %v7505_v0 }
 0x379   :  { %7400 = vmatpush3.bf16.msra.mxu0 %v7490_v53 }
 0x37a   :  { %7401 = vmatprep.subr.bf16.mxu0 %v7491_v12 }
 0x37b   :  { %7422 = vmatpush3.bf16.msra.mxu1 %v7506_v4 }
 0x37c   :  { %7423 = vmatprep.subr.bf16.mxu1 %v7507_v13 }
 0x37d   :  { %7402 = vmatpush3.bf16.msra.mxu0 %v7492_v51 }
 0x37e   :  { %7403 = vmatprep.subr.bf16.mxu0 %v7493_v57 }
 0x37f   :  { %7424 = vmatpush3.bf16.msra.mxu1 %v7508_v46 }
 0x380   :  { %7425 = vmatprep.subr.bf16.mxu1 %v7509_v19 }
 0x381   :  { %7404 = vmatpush3.bf16.msra.mxu0 %v7494_v34 }
 0x383   :  { %7426 = vmatpush3.bf16.msra.mxu1 %v7510_v47 }
 0x384   :  { %v5587_v61 = vpop.f32.mrf.mxu0  ;;  %6447 = vmatmul.mubr.bf16.vlgmr.msra.gmra.mxu0 %v5811_v1 }
 0x385   :  { %v5588_v37 = vadd.f32 %v5587_v61, %v962_v43 }
 0x386   :  { %v5628_v49 = vpop.f32.mrf.mxu1  ;;  %v5589_v62 = vpop.f32.mrf.mxu0 }
 0x387   :  { %v5629_v6 = vadd.f32 %v5628_v49, %v5588_v37  ;;  %v5590_v7 = vadd.f32 %v5589_v62, %v966_v60 }
 0x388   :  { %v5630_v9 = vpop.f32.mrf.mxu1  ;;  %v5591_v10 = vpop.f32.mrf.mxu0 }
 0x389   :  { %v5631_v44 = vadd.f32 %v5630_v9, %v5590_v7 }
 0x38a   :  { %v5632_v22 = vpop.f32.mrf.mxu1  ;;  %v5592_v25 = vpop.f32.mrf.mxu0 }
 0x38c   :  { %v5633_v15 = vpop.f32.mrf.mxu1 }
 0x3c4   :  { %v5669_v17 = vpop.f32.mrf.mxu0 }
 0x3c5   :  { %v5670_v11 = vadd.f32 %v5669_v17, %v5629_v6 }
 0x3c6   :  { %v5710_v20 = vpop.f32.mrf.mxu1  ;;  %v5671_v21 = vpop.f32.mrf.mxu0 }
 0x3c7   :  { %v5711_v23 = vadd.f32 %v5710_v20, %v5670_v11  ;;  %v5672_v30 = vadd.f32 %v5671_v21, %v5631_v44 }
 0x3c8   :  { %v5712_v16 = vpop.f32.mrf.mxu1  ;;  %v5673_v29 = vpop.f32.mrf.mxu0 }
 0x3c9   :  { %v5713_v28 = vadd.f32 %v5712_v16, %v5672_v30 }
 0x3ca   :  { %v5714_v24 = vpop.f32.mrf.mxu1  ;;  %v5674_v63 = vpop.f32.mrf.mxu0 }
 0x3cc   :  { %v5715_v26 = vpop.f32.mrf.mxu1 }
 0x404   :  { %v5751_v27 = vpop.f32.mrf.mxu0 }
 0x405   :  { %v5752_v31 = vadd.f32 %v5751_v27, %v5711_v23 }
 0x406   :  { %v5792_v32 = vpop.f32.mrf.mxu1  ;;  %v5753_v35 = vpop.f32.mrf.mxu0 }
 0x407   :  { %v5793_v8 = vadd.f32 %v5792_v32, %v5752_v31  ;;  %v5754_v36 = vadd.f32 %v5753_v35, %v5713_v28 }
 0x408   :  { %v5794_v59 = vpop.f32.mrf.mxu1  ;;  %v5755_v39 = vpop.f32.mrf.mxu0 }
 0x409   :  { %v5795_v2 = vadd.f32 %v5794_v59, %v5754_v36  ;;  %v5805_v41 = vmax.f32 %v5793_v8, 0.0 }
 0x40a   :  { %v5796_v40 = vpop.f32.mrf.mxu1  ;;  %v5756_v52 = vpop.f32.mrf.mxu0 }
 0x40b   :  { %v5806_v3 = vmax.f32 %v5795_v2, 0.0  ;;  %v5813_v45 = vpack.c.bf16 %v5805_v41, %v5805_v41 }
 0x40c   :  { %v5797_v42 = vpop.f32.mrf.mxu1 }
 0x40d   :  { %v5814_v54 = vpack.c.bf16 %v5806_v3, %v5806_v3 }
 0x40f   :  { %6486 = vmatprep.mubr.bf16.mxu1 %v5814_v54 }
 0x410   :  { %6487 = vmatmul.mubr.bf16.vlgmr.msra.gmra.mxu1 %v5813_v45 }
 0x424   :  { %v7361_v5 = vpop.f32.mrf.mxu0 }
 0x426   :  { %v7383_v55 = vpop.f32.mrf.mxu1  ;;  %v7362_v18 = vpop.f32.mrf.mxu0 }
 0x427   :  { %v7363_v53 = vadd.f32 %v7362_v18, %v7361_v5 }
 0x428   :  { %v7384_v50 = vpop.f32.mrf.mxu1  ;;  %v7364_v51 = vpop.f32.mrf.mxu0 }
 0x429   :  { %v7385_v12 = vadd.f32 %v7384_v50, %v7383_v55  ;;  %v6369_v56 = vadd.f32 %v7363_v53, %v7280_v48 }
 0x42a   :  { %v7386_v57 = vpop.f32.mrf.mxu1  ;;  %v7365_v34 = vpop.f32.mrf.mxu0 }
 0x42b   :  { %v6409_v14 = vadd.f32 %v7385_v12, %v6369_v56 }
 0x42c   :  { %v7387_v58 = vpop.f32.mrf.mxu1 }
 0x444   :  { %v7405_v38 = vpop.f32.mrf.mxu0 }
 0x446   :  { %v7406_v33 = vpop.f32.mrf.mxu0 }
 0x447   :  { %v7407_v43 = vadd.f32 %v7406_v33, %v7405_v38 }
 0x448   :  { %v7408_v1 = vpop.f32.mrf.mxu0 }
 0x449   :  { %v6449_v60 = vadd.f32 %v7407_v43, %v6409_v14 }
 0x44a   :  { %v7409_v61 = vpop.f32.mrf.mxu0 }
 0x4d0   :  { %v7427_v0 = vpop.f32.mrf.mxu1 }
 0x4d2   :  { %v7428_v37 = vpop.f32.mrf.mxu1 }
 0x4d3   :  { %v7429_v49 = vadd.f32 %v7428_v37, %v7427_v0 }
 0x4d4   :  { %v7430_v4 = vpop.f32.mrf.mxu1 }
 0x4d5   :  { %v6489_v62 = vadd.f32 %v7429_v49, %v6449_v60 }
 0x4d6   :  { %v7431_v6 = vpop.f32.mrf.mxu1 }
 0x4d7   :  { %6494 = vst [vmem:[#allocation11] sm:$0x3] %v6489_v62 }
 0x4d8   :  { %7625 = shalt.err (!%p7622_p1)
}
 0x4d9   :  { %6504 = dma.vmem_to_hbm [thread:$0]  %s6502_s4, 32, %s7887_s5, [#allocation4]  }
 0x4da   :  { %7640 = dma.done.wait [#allocation4], 32  }
 0x4db   :  { %7641 = vsyncadd [#allocation4], 4294967264 }
 0x4dc   :  { %6508 = vsyncpa [#allocation3], 1 }
 0x4dd   :  { %6509 = vsyncpa [#allocation6], 1 }
 0x4de   :  { %6510 = vsyncpa [#allocation9], 1 }
 0x4df   :  { %6511 = vsyncpa [#allocation4], 1 }

</bundles_post_ra>
